<compile_context>
chip_gen: v7x
topology: tpu7x:2x2x1
jax: 0.10.0
libtpu: 0.0.40
codegen_flags: <defaults>
</compile_context>

<pallas_src>
import functools

import numpy as np
import jax
import jax.numpy as jnp
from jax.experimental import pallas as pl
from jax.experimental.pallas import tpu as pltpu


# Static architecture constants of DuelingCNN.
KH = KW = 5                    # conv kernel size
ST = 4                         # conv stride
UP = 84                        # upsample target (84 x 84)
H1 = (UP - KH) // ST + 1       # 20 : conv1 output spatial size
H2 = (H1 - KH) // ST + 1       # 4  : conv2 output spatial size
C1 = 16                        # conv1 output channels
C2 = 32                        # conv2 output channels
FC_H = 256                     # hidden units per branch
FLAT = C2 * H2 * H2            # 512


# ----------------------------------------------------------------------------
# Fused Pallas kernel: upsample + conv1 + conv2 + fc(a/v) + dueling combine
# ----------------------------------------------------------------------------
def _fused_dueling_kernel(x_ref, s1_ref, m1_ref, cb1_ref, s2_ref, m2_ref, cb2_ref,
                          w1_ref, b1_ref, w2_ref, b2_ref, o_ref, *, batch, n_act):
    f32 = jnp.float32
    r1 = batch * H1            # conv1 output rows, ordered (b, ho)
    r2 = batch * H2            # conv2 output rows, ordered (h2, b)

    x = x_ref[...]                                                  # (B*H, C*W)

    # ---- conv1 (+ fused nearest upsample) -----------------------------------
    # S1 gathers, for each kernel row offset i, the source image row feeding
    # upsampled row 4*ho+i; M1 folds the width upsample, the kernel column
    # offsets and the channel contraction into one (C*W, H1*C1) matrix per i.
    p1 = jnp.dot(s1_ref[...], x, preferred_element_type=f32)        # (5*B*H1, C*W)
    acc1 = jnp.zeros((r1, H1 * C1), f32)
    for i in range(KH):
        acc1 = acc1 + jnp.dot(p1[i * r1:(i + 1) * r1, :], m1_ref[i],
                              preferred_element_type=f32)
    h1 = jnp.maximum(acc1 + cb1_ref[...], 0.0)                      # (B*H1, H1*C1)

    # ---- conv2 ---------------------------------------------------------------
    p2 = jnp.dot(s2_ref[...], h1, preferred_element_type=f32)       # (5*B*H2, H1*C1)
    acc2 = jnp.zeros((r2, H2 * C2), f32)
    for i in range(KH):
        acc2 = acc2 + jnp.dot(p2[i * r2:(i + 1) * r2, :], m2_ref[i],
                              preferred_element_type=f32)
    h2 = jnp.maximum(acc2 + cb2_ref[...], 0.0)                      # (B*H2, H2*C2)

    # ---- fc1 (advantage & value branches concatenated) ----------------------
    # The torch NCHW flatten is folded into w1: one 128-row weight block per
    # conv2 output row h2, so no in-kernel reshape/transpose is needed.
    hfc = jnp.zeros((batch, 2 * FC_H), f32)
    for t in range(H2):
        hfc = hfc + jnp.dot(h2[t * batch:(t + 1) * batch, :], w1_ref[t],
                            preferred_element_type=f32)
    hfc = jnp.maximum(hfc + b1_ref[...], 0.0)                       # (B, 512)

    # ---- fc2 (block-diagonal adv/value) + dueling combine --------------------
    out = b2_ref[...]                                               # (1, out_pad)
    for t in range(4):                                              # 4 * 128 = 512
        out = out + jnp.dot(hfc[:, t * 128:(t + 1) * 128], w2_ref[t],
                            preferred_element_type=f32)             # (B, out_pad)

    a = out[:, :n_act]                                              # (B, A)
    v = out[:, n_act:n_act + 1]                                     # (B, 1)
    # torch: v + a - torch.mean(a)  (global mean over the whole (B, A) tensor)
    o_ref[...] = out + (v - jnp.mean(a))    # cols < A hold q; rest sliced outside


# ----------------------------------------------------------------------------
# Constant 0/1 gather matrices (depend only on static shapes -> numpy)
# ----------------------------------------------------------------------------
def _make_selection_constants(batch, h_in, w_in):
    # conv1 row gather: source row of the *original* image for upsampled row 4*ho+i
    i_g, ho_g = np.meshgrid(np.arange(KH), np.arange(H1), indexing="ij")
    src_h = ((ST * ho_g + i_g) * h_in) // UP                        # (5, H1)
    s1 = np.zeros((KH, batch * H1, batch * h_in), np.float32)
    ii, bb, hh = np.meshgrid(np.arange(KH), np.arange(batch), np.arange(H1),
                             indexing="ij")
    s1[ii, bb * H1 + hh, bb * h_in + src_h[ii, hh]] = 1.0
    s1 = s1.reshape(KH * batch * H1, batch * h_in)

    # A1[j, wi, wo] = 1 iff upsampled column 4*wo+j reads original column wi
    j_g, wo_g = np.meshgrid(np.arange(KW), np.arange(H1), indexing="ij")
    src_w = ((ST * wo_g + j_g) * w_in) // UP                        # (5, H1)
    a1 = (src_w[:, None, :] == np.arange(w_in)[None, :, None]).astype(np.float32)

    # conv2 row gather: conv1 row 4*h2+i; output rows ordered (h2, b)
    s2 = np.zeros((KH, batch * H2, batch * H1), np.float32)
    ii, tt, bb = np.meshgrid(np.arange(KH), np.arange(H2), np.arange(batch),
                             indexing="ij")
    s2[ii, tt * batch + bb, bb * H1 + ST * tt + ii] = 1.0
    s2 = s2.reshape(KH * batch * H2, batch * H1)

    # A2[j, wo, w2] = 1 iff conv1 column wo == 4*w2 + j
    j_g, w2_g = np.meshgrid(np.arange(KW), np.arange(H2), indexing="ij")
    a2 = ((ST * w2_g + j_g)[:, None, :]
          == np.arange(H1)[None, :, None]).astype(np.float32)

    # fc1 row permutation: ours (h2, w2, c) -> torch NCHW flatten (c, h2, w2)
    h2g, w2g, cg = np.meshgrid(np.arange(H2), np.arange(H2), np.arange(C2),
                               indexing="ij")
    perm = (cg * (H2 * H2) + h2g * H2 + w2g).reshape(-1)            # (512,)
    return s1, a1, s2, a2, perm


# ----------------------------------------------------------------------------
# Weight-side repacking into the fused-kernel operand layout (tiny XLA glue)
# ----------------------------------------------------------------------------
def prepare_inputs(params, batch, c_in, h_in, w_in):
    hp = jax.lax.Precision.HIGHEST
    s1, a1, s2, a2, perm = _make_selection_constants(batch, h_in, w_in)
    n_act = params["fc2a_w"].shape[1]
    out_pad = 128 * (-(-(n_act + 1) // 128))                        # lane-dense width

    # conv1: M1[i, (c,wi), (wo,o)] = sum_j A1[j,wi,wo] * w1[o,c,i,j]
    m1 = jnp.einsum("jvw,ocij->icvwo", jnp.asarray(a1), params["conv1_w"],
                    precision=hp).reshape(KH, c_in * w_in, H1 * C1)
    cb1 = jnp.tile(params["conv1_b"], H1).reshape(1, H1 * C1)

    # conv2: M2[i, (wo,c), (w2,o)] = sum_j A2[j,wo,w2] * w2[o,c,i,j]
    m2 = jnp.einsum("jvw,ocij->ivcwo", jnp.asarray(a2), params["conv2_w"],
                    precision=hp).reshape(KH, H1 * C1, H2 * C2)
    cb2 = jnp.tile(params["conv2_b"], H2).reshape(1, H2 * C2)

    # fc1: concat adv/value branches, fold torch flatten order into the rows,
    # split into one 128-row block per conv2 output row h2.
    w1cat = jnp.concatenate([params["fc1a_w"], params["fc1v_w"]], axis=1)  # (512,512)
    w1blk = w1cat[jnp.asarray(perm)].reshape(H2, H2 * C2, 2 * FC_H)
    b1cat = jnp.concatenate([params["fc1a_b"], params["fc1v_b"]]).reshape(1, 2 * FC_H)

    # fc2: block-diagonal [advantage | value], zero-padded to out_pad lanes.
    w2cat = jnp.zeros((2 * FC_H, out_pad), jnp.float32)
    w2cat = w2cat.at[:FC_H, :n_act].set(params["fc2a_w"])
    w2cat = w2cat.at[FC_H:, n_act].set(params["fc2v_w"][:, 0])
    w2blk = w2cat.reshape(4, 128, out_pad)
    b2cat = jnp.zeros((1, out_pad), jnp.float32)
    b2cat = b2cat.at[0, :n_act].set(params["fc2a_b"])
    b2cat = b2cat.at[0, n_act].set(params["fc2v_b"][0])

    arrays = (jnp.asarray(s1), m1, cb1, jnp.asarray(s2), m2, cb2,
              w1blk, b1cat, w2blk, b2cat)
    return arrays, n_act, out_pad


# ----------------------------------------------------------------------------
# Parameters + forward
# ----------------------------------------------------------------------------
def init_params(key, num_in_channels=1, num_out_channels=5):
    ks = jax.random.split(key, 12)

    def rnd(k, shape, scale):
        return jax.random.normal(k, shape, jnp.float32) * scale

    # conv weights in torch (O, C, kh, kw) layout; fc weights stored as (in, out).
    return {
        "conv1_w": rnd(ks[0], (C1, num_in_channels, KH, KW), 0.10),
        "conv1_b": rnd(ks[1], (C1,), 0.10),
        "conv2_w": rnd(ks[2], (C2, C1, KH, KW), 0.05),
        "conv2_b": rnd(ks[3], (C2,), 0.05),
        "fc1a_w": rnd(ks[4], (FLAT, FC_H), 0.05),
        "fc1a_b": rnd(ks[5], (FC_H,), 0.05),
        "fc2a_w": rnd(ks[6], (FC_H, num_out_channels), 0.05),
        "fc2a_b": rnd(ks[7], (num_out_channels,), 0.05),
        "fc1v_w": rnd(ks[8], (FLAT, FC_H), 0.05),
        "fc1v_b": rnd(ks[9], (FC_H,), 0.05),
        "fc2v_w": rnd(ks[10], (FC_H, 1), 0.05),
        "fc2v_b": rnd(ks[11], (1,), 0.05),
    }


def dueling_cnn_forward(params, x):
    """Matches DuelingCNN.forward: (B, C_in, H, W) -> (B, num_out_channels)."""
    batch, c_in, h_in, w_in = x.shape
    weights, n_act, out_pad = prepare_inputs(params, batch, c_in, h_in, w_in)

    # x.float(); rows (b, h), cols (c, w) -- a 2 KB layout shuffle of the raw input.
    x2d = jnp.transpose(x.astype(jnp.float32), (0, 2, 1, 3)).reshape(
        batch * h_in, c_in * w_in)

    inputs = (x2d,) + weights

    def vspec(shape):
        nd = len(shape)
        return pl.BlockSpec(shape, lambda i, nd=nd: (0,) * nd)

    out = pl.pallas_call(
        functools.partial(_fused_dueling_kernel, batch=batch, n_act=n_act),
        out_shape=jax.ShapeDtypeStruct((batch, out_pad), jnp.float32),
        grid=(1,),
        in_specs=[vspec(a.shape) for a in inputs],
        out_specs=vspec((batch, out_pad)),
        compiler_params=pltpu.CompilerParams(dimension_semantics=("arbitrary",)),
    )(*inputs)
    return out[:, :n_act]


# ----------------------------------------------------------------------------
# Plain-JAX reference of the torch module (validation only)
# ----------------------------------------------------------------------------
def dueling_cnn_reference(params, x):
    hp = jax.lax.Precision.HIGHEST
    x = x.astype(jnp.float32)
    b, _, h, w = x.shape
    rows = (jnp.arange(UP) * h) // UP
    cols = (jnp.arange(UP) * w) // UP
    xu = x[:, :, rows][:, :, :, cols]
    y = jax.lax.conv_general_dilated(xu, params["conv1_w"], (ST, ST), "VALID",
                                     dimension_numbers=("NCHW", "OIHW", "NCHW"),
                                     precision=hp)
    y = jax.nn.relu(y + params["conv1_b"][None, :, None, None])
    y = jax.lax.conv_general_dilated(y, params["conv2_w"], (ST, ST), "VALID",
                                     dimension_numbers=("NCHW", "OIHW", "NCHW"),
                                     precision=hp)
    y = jax.nn.relu(y + params["conv2_b"][None, :, None, None])
    flat = y.reshape(b, -1)
    a = jax.nn.relu(jnp.dot(flat, params["fc1a_w"], precision=hp) + params["fc1a_b"])
    a = jnp.dot(a, params["fc2a_w"], precision=hp) + params["fc2a_b"]
    v = jax.nn.relu(jnp.dot(flat, params["fc1v_w"], precision=hp) + params["fc1v_b"])
    v = jnp.dot(v, params["fc2v_w"], precision=hp) + params["fc2v_b"]
    return v + a - jnp.mean(a)


if __name__ == "__main__":
    key = jax.random.PRNGKey(0)
    pkey, xkey = jax.random.split(key)
    params = init_params(pkey, num_in_channels=1, num_out_channels=5)
    x = jax.random.normal(xkey, (2, 1, 16, 16), jnp.float32)   # small DuelingCNN input

    out = jax.jit(dueling_cnn_forward)(params, x)
    out = jax.block_until_ready(out)
    assert out.shape == (2, 5) and out.dtype == jnp.float32

    ref = jax.block_until_ready(jax.jit(dueling_cnn_reference)(params, x))
    err = float(jnp.max(jnp.abs(out - ref)))
    assert err < 2e-2, f"mismatch vs reference: {err}"

    print("KERNEL_OK")
</pallas_src>

<mosaic_0001>
module attributes {stable_mosaic.version = 11 : i64} {
  func.func @_fused_dueling_kernel(%arg0: i32, %arg1: memref<32x16xf32, #tpu.memory_space<vmem>>, %arg2: memref<200x32xf32, #tpu.memory_space<vmem>>, %arg3: memref<5x16x320xf32, #tpu.memory_space<vmem>>, %arg4: memref<1x320xf32, #tpu.memory_space<vmem>>, %arg5: memref<40x40xf32, #tpu.memory_space<vmem>>, %arg6: memref<5x320x128xf32, #tpu.memory_space<vmem>>, %arg7: memref<1x128xf32, #tpu.memory_space<vmem>>, %arg8: memref<4x128x512xf32, #tpu.memory_space<vmem>>, %arg9: memref<1x512xf32, #tpu.memory_space<vmem>>, %arg10: memref<4x128x128xf32, #tpu.memory_space<vmem>>, %arg11: memref<1x128xf32, #tpu.memory_space<vmem>>, %arg12: memref<2x128xf32, #tpu.memory_space<vmem>>) attributes {dimension_semantics = [#tpu.dimension_semantics<arbitrary>], iteration_bounds = array<i64: 1>, scalar_prefetch = 0 : i64, scratch_operands = 0 : i64, tpu.core_type = #tpu.core_type<tc>, window_params = [{pipeline_mode = #tpu.pipeline_mode<synchronous>, transform_indices = @transform_0, window_bounds = array<i64: 32, 16>}, {pipeline_mode = #tpu.pipeline_mode<synchronous>, transform_indices = @transform_1, window_bounds = array<i64: 200, 32>}, {pipeline_mode = #tpu.pipeline_mode<synchronous>, transform_indices = @transform_2, window_bounds = array<i64: 5, 16, 320>}, {pipeline_mode = #tpu.pipeline_mode<synchronous>, transform_indices = @transform_3, window_bounds = array<i64: 1, 320>}, {pipeline_mode = #tpu.pipeline_mode<synchronous>, transform_indices = @transform_4, window_bounds = array<i64: 40, 40>}, {pipeline_mode = #tpu.pipeline_mode<synchronous>, transform_indices = @transform_5, window_bounds = array<i64: 5, 320, 128>}, {pipeline_mode = #tpu.pipeline_mode<synchronous>, transform_indices = @transform_6, window_bounds = array<i64: 1, 128>}, {pipeline_mode = #tpu.pipeline_mode<synchronous>, transform_indices = @transform_7, window_bounds = array<i64: 4, 128, 512>}, {pipeline_mode = #tpu.pipeline_mode<synchronous>, transform_indices = @transform_8, window_bounds = array<i64: 1, 512>}, {pipeline_mode = #tpu.pipeline_mode<synchronous>, transform_indices = @transform_9, window_bounds = array<i64: 4, 128, 128>}, {pipeline_mode = #tpu.pipeline_mode<synchronous>, transform_indices = @transform_10, window_bounds = array<i64: 1, 128>}, {pipeline_mode = #tpu.pipeline_mode<synchronous>, transform_indices = @transform_11, window_bounds = array<i64: 2, 128>}]} {
    %c0 = arith.constant 0 : index
    %c0_0 = arith.constant 0 : index
    %0 = vector.load %arg1[%c0, %c0_0] : memref<32x16xf32, #tpu.memory_space<vmem>>, vector<32x16xf32>
    %c0_1 = arith.constant 0 : index
    %c0_2 = arith.constant 0 : index
    %1 = vector.load %arg2[%c0_1, %c0_2] : memref<200x32xf32, #tpu.memory_space<vmem>>, vector<200x32xf32>
    %cst = arith.constant dense<0.000000e+00> : vector<200x16xf32>
    %2 = tpu.matmul %1, %0, %cst {dimension_numbers = #tpu.dot_dimension_numbers<[1], [0], [0], [1], [0, 0, 1, 1], [], []>} : vector<200x32xf32>, vector<32x16xf32>, vector<200x16xf32> -> vector<200x16xf32>
    %cst_3 = arith.constant 0.000000e+00 : f32
    %3 = vector.broadcast %cst_3 : f32 to vector<40x320xf32>
    %4 = vector.extract_strided_slice %2 {offsets = [0, 0], sizes = [40, 16], strides = [1, 1]} : vector<200x16xf32> to vector<40x16xf32>
    %c0_4 = arith.constant 0 : index
    %c0_5 = arith.constant 0 : index
    %c0_6 = arith.constant 0 : index
    %5 = vector.load %arg3[%c0_4, %c0_5, %c0_6] : memref<5x16x320xf32, #tpu.memory_space<vmem>>, vector<1x16x320xf32>
    %6 = vector.shape_cast %5 : vector<1x16x320xf32> to vector<16x320xf32>
    %cst_7 = arith.constant dense<0.000000e+00> : vector<40x320xf32>
    %7 = tpu.matmul %4, %6, %cst_7 {dimension_numbers = #tpu.dot_dimension_numbers<[1], [0], [0], [1], [0, 0, 1, 1], [], []>} : vector<40x16xf32>, vector<16x320xf32>, vector<40x320xf32> -> vector<40x320xf32>
    %8 = arith.addf %3, %7 : vector<40x320xf32>
    %9 = vector.extract_strided_slice %2 {offsets = [40, 0], sizes = [40, 16], strides = [1, 1]} : vector<200x16xf32> to vector<40x16xf32>
    %c1 = arith.constant 1 : index
    %c0_8 = arith.constant 0 : index
    %c0_9 = arith.constant 0 : index
    %10 = vector.load %arg3[%c1, %c0_8, %c0_9] : memref<5x16x320xf32, #tpu.memory_space<vmem>>, vector<1x16x320xf32>
    %11 = vector.shape_cast %10 : vector<1x16x320xf32> to vector<16x320xf32>
    %cst_10 = arith.constant dense<0.000000e+00> : vector<40x320xf32>
    %12 = tpu.matmul %9, %11, %cst_10 {dimension_numbers = #tpu.dot_dimension_numbers<[1], [0], [0], [1], [0, 0, 1, 1], [], []>} : vector<40x16xf32>, vector<16x320xf32>, vector<40x320xf32> -> vector<40x320xf32>
    %13 = arith.addf %8, %12 : vector<40x320xf32>
    %14 = vector.extract_strided_slice %2 {offsets = [80, 0], sizes = [40, 16], strides = [1, 1]} : vector<200x16xf32> to vector<40x16xf32>
    %c2 = arith.constant 2 : index
    %c0_11 = arith.constant 0 : index
    %c0_12 = arith.constant 0 : index
    %15 = vector.load %arg3[%c2, %c0_11, %c0_12] : memref<5x16x320xf32, #tpu.memory_space<vmem>>, vector<1x16x320xf32>
    %16 = vector.shape_cast %15 : vector<1x16x320xf32> to vector<16x320xf32>
    %cst_13 = arith.constant dense<0.000000e+00> : vector<40x320xf32>
    %17 = tpu.matmul %14, %16, %cst_13 {dimension_numbers = #tpu.dot_dimension_numbers<[1], [0], [0], [1], [0, 0, 1, 1], [], []>} : vector<40x16xf32>, vector<16x320xf32>, vector<40x320xf32> -> vector<40x320xf32>
    %18 = arith.addf %13, %17 : vector<40x320xf32>
    %19 = vector.extract_strided_slice %2 {offsets = [120, 0], sizes = [40, 16], strides = [1, 1]} : vector<200x16xf32> to vector<40x16xf32>
    %c3 = arith.constant 3 : index
    %c0_14 = arith.constant 0 : index
    %c0_15 = arith.constant 0 : index
    %20 = vector.load %arg3[%c3, %c0_14, %c0_15] : memref<5x16x320xf32, #tpu.memory_space<vmem>>, vector<1x16x320xf32>
    %21 = vector.shape_cast %20 : vector<1x16x320xf32> to vector<16x320xf32>
    %cst_16 = arith.constant dense<0.000000e+00> : vector<40x320xf32>
    %22 = tpu.matmul %19, %21, %cst_16 {dimension_numbers = #tpu.dot_dimension_numbers<[1], [0], [0], [1], [0, 0, 1, 1], [], []>} : vector<40x16xf32>, vector<16x320xf32>, vector<40x320xf32> -> vector<40x320xf32>
    %23 = arith.addf %18, %22 : vector<40x320xf32>
    %24 = vector.extract_strided_slice %2 {offsets = [160, 0], sizes = [40, 16], strides = [1, 1]} : vector<200x16xf32> to vector<40x16xf32>
    %c4 = arith.constant 4 : index
    %c0_17 = arith.constant 0 : index
    %c0_18 = arith.constant 0 : index
    %25 = vector.load %arg3[%c4, %c0_17, %c0_18] : memref<5x16x320xf32, #tpu.memory_space<vmem>>, vector<1x16x320xf32>
    %26 = vector.shape_cast %25 : vector<1x16x320xf32> to vector<16x320xf32>
    %cst_19 = arith.constant dense<0.000000e+00> : vector<40x320xf32>
    %27 = tpu.matmul %24, %26, %cst_19 {dimension_numbers = #tpu.dot_dimension_numbers<[1], [0], [0], [1], [0, 0, 1, 1], [], []>} : vector<40x16xf32>, vector<16x320xf32>, vector<40x320xf32> -> vector<40x320xf32>
    %28 = arith.addf %23, %27 : vector<40x320xf32>
    %c0_20 = arith.constant 0 : index
    %c0_21 = arith.constant 0 : index
    %29 = vector.load %arg4[%c0_20, %c0_21] : memref<1x320xf32, #tpu.memory_space<vmem>>, vector<1x320xf32>
    %30 = vector.broadcast %29 : vector<1x320xf32> to vector<40x320xf32>
    %31 = arith.addf %28, %30 : vector<40x320xf32>
    %cst_22 = arith.constant 0.000000e+00 : f32
    %32 = vector.broadcast %cst_22 : f32 to vector<40x320xf32>
    %33 = arith.maximumf %31, %32 : vector<40x320xf32>
    %c0_23 = arith.constant 0 : index
    %c0_24 = arith.constant 0 : index
    %34 = vector.load %arg5[%c0_23, %c0_24] : memref<40x40xf32, #tpu.memory_space<vmem>>, vector<40x40xf32>
    %cst_25 = arith.constant dense<0.000000e+00> : vector<40x320xf32>
    %35 = tpu.matmul %34, %33, %cst_25 {dimension_numbers = #tpu.dot_dimension_numbers<[1], [0], [0], [1], [0, 0, 1, 1], [], []>} : vector<40x40xf32>, vector<40x320xf32>, vector<40x320xf32> -> vector<40x320xf32>
    %cst_26 = arith.constant 0.000000e+00 : f32
    %36 = vector.broadcast %cst_26 : f32 to vector<8x128xf32>
    %37 = vector.extract_strided_slice %35 {offsets = [0, 0], sizes = [8, 320], strides = [1, 1]} : vector<40x320xf32> to vector<8x320xf32>
    %c0_27 = arith.constant 0 : index
    %c0_28 = arith.constant 0 : index
    %c0_29 = arith.constant 0 : index
    %38 = vector.load %arg6[%c0_27, %c0_28, %c0_29] : memref<5x320x128xf32, #tpu.memory_space<vmem>>, vector<1x320x128xf32>
    %39 = vector.shape_cast %38 : vector<1x320x128xf32> to vector<320x128xf32>
    %cst_30 = arith.constant dense<0.000000e+00> : vector<8x128xf32>
    %40 = tpu.matmul %37, %39, %cst_30 {dimension_numbers = #tpu.dot_dimension_numbers<[1], [0], [0], [1], [0, 0, 1, 1], [], []>} : vector<8x320xf32>, vector<320x128xf32>, vector<8x128xf32> -> vector<8x128xf32>
    %41 = arith.addf %36, %40 : vector<8x128xf32>
    %42 = vector.extract_strided_slice %35 {offsets = [8, 0], sizes = [8, 320], strides = [1, 1]} : vector<40x320xf32> to vector<8x320xf32>
    %c1_31 = arith.constant 1 : index
    %c0_32 = arith.constant 0 : index
    %c0_33 = arith.constant 0 : index
    %43 = vector.load %arg6[%c1_31, %c0_32, %c0_33] : memref<5x320x128xf32, #tpu.memory_space<vmem>>, vector<1x320x128xf32>
    %44 = vector.shape_cast %43 : vector<1x320x128xf32> to vector<320x128xf32>
    %cst_34 = arith.constant dense<0.000000e+00> : vector<8x128xf32>
    %45 = tpu.matmul %42, %44, %cst_34 {dimension_numbers = #tpu.dot_dimension_numbers<[1], [0], [0], [1], [0, 0, 1, 1], [], []>} : vector<8x320xf32>, vector<320x128xf32>, vector<8x128xf32> -> vector<8x128xf32>
    %46 = arith.addf %41, %45 : vector<8x128xf32>
    %47 = vector.extract_strided_slice %35 {offsets = [16, 0], sizes = [8, 320], strides = [1, 1]} : vector<40x320xf32> to vector<8x320xf32>
    %c2_35 = arith.constant 2 : index
    %c0_36 = arith.constant 0 : index
    %c0_37 = arith.constant 0 : index
    %48 = vector.load %arg6[%c2_35, %c0_36, %c0_37] : memref<5x320x128xf32, #tpu.memory_space<vmem>>, vector<1x320x128xf32>
    %49 = vector.shape_cast %48 : vector<1x320x128xf32> to vector<320x128xf32>
    %cst_38 = arith.constant dense<0.000000e+00> : vector<8x128xf32>
    %50 = tpu.matmul %47, %49, %cst_38 {dimension_numbers = #tpu.dot_dimension_numbers<[1], [0], [0], [1], [0, 0, 1, 1], [], []>} : vector<8x320xf32>, vector<320x128xf32>, vector<8x128xf32> -> vector<8x128xf32>
    %51 = arith.addf %46, %50 : vector<8x128xf32>
    %52 = vector.extract_strided_slice %35 {offsets = [24, 0], sizes = [8, 320], strides = [1, 1]} : vector<40x320xf32> to vector<8x320xf32>
    %c3_39 = arith.constant 3 : index
    %c0_40 = arith.constant 0 : index
    %c0_41 = arith.constant 0 : index
    %53 = vector.load %arg6[%c3_39, %c0_40, %c0_41] : memref<5x320x128xf32, #tpu.memory_space<vmem>>, vector<1x320x128xf32>
    %54 = vector.shape_cast %53 : vector<1x320x128xf32> to vector<320x128xf32>
    %cst_42 = arith.constant dense<0.000000e+00> : vector<8x128xf32>
    %55 = tpu.matmul %52, %54, %cst_42 {dimension_numbers = #tpu.dot_dimension_numbers<[1], [0], [0], [1], [0, 0, 1, 1], [], []>} : vector<8x320xf32>, vector<320x128xf32>, vector<8x128xf32> -> vector<8x128xf32>
    %56 = arith.addf %51, %55 : vector<8x128xf32>
    %57 = vector.extract_strided_slice %35 {offsets = [32, 0], sizes = [8, 320], strides = [1, 1]} : vector<40x320xf32> to vector<8x320xf32>
    %c4_43 = arith.constant 4 : index
    %c0_44 = arith.constant 0 : index
    %c0_45 = arith.constant 0 : index
    %58 = vector.load %arg6[%c4_43, %c0_44, %c0_45] : memref<5x320x128xf32, #tpu.memory_space<vmem>>, vector<1x320x128xf32>
    %59 = vector.shape_cast %58 : vector<1x320x128xf32> to vector<320x128xf32>
    %cst_46 = arith.constant dense<0.000000e+00> : vector<8x128xf32>
    %60 = tpu.matmul %57, %59, %cst_46 {dimension_numbers = #tpu.dot_dimension_numbers<[1], [0], [0], [1], [0, 0, 1, 1], [], []>} : vector<8x320xf32>, vector<320x128xf32>, vector<8x128xf32> -> vector<8x128xf32>
    %61 = arith.addf %56, %60 : vector<8x128xf32>
    %c0_47 = arith.constant 0 : index
    %c0_48 = arith.constant 0 : index
    %62 = vector.load %arg7[%c0_47, %c0_48] : memref<1x128xf32, #tpu.memory_space<vmem>>, vector<1x128xf32>
    %63 = vector.broadcast %62 : vector<1x128xf32> to vector<8x128xf32>
    %64 = arith.addf %61, %63 : vector<8x128xf32>
    %cst_49 = arith.constant 0.000000e+00 : f32
    %65 = vector.broadcast %cst_49 : f32 to vector<8x128xf32>
    %66 = arith.maximumf %64, %65 : vector<8x128xf32>
    %cst_50 = arith.constant 0.000000e+00 : f32
    %67 = vector.broadcast %cst_50 : f32 to vector<2x512xf32>
    %68 = vector.extract_strided_slice %66 {offsets = [0, 0], sizes = [2, 128], strides = [1, 1]} : vector<8x128xf32> to vector<2x128xf32>
    %c0_51 = arith.constant 0 : index
    %c0_52 = arith.constant 0 : index
    %c0_53 = arith.constant 0 : index
    %69 = vector.load %arg8[%c0_51, %c0_52, %c0_53] : memref<4x128x512xf32, #tpu.memory_space<vmem>>, vector<1x128x512xf32>
    %70 = vector.shape_cast %69 : vector<1x128x512xf32> to vector<128x512xf32>
    %cst_54 = arith.constant dense<0.000000e+00> : vector<2x512xf32>
    %71 = tpu.matmul %68, %70, %cst_54 {dimension_numbers = #tpu.dot_dimension_numbers<[1], [0], [0], [1], [0, 0, 1, 1], [], []>} : vector<2x128xf32>, vector<128x512xf32>, vector<2x512xf32> -> vector<2x512xf32>
    %72 = arith.addf %67, %71 : vector<2x512xf32>
    %73 = vector.extract_strided_slice %66 {offsets = [2, 0], sizes = [2, 128], strides = [1, 1]} : vector<8x128xf32> to vector<2x128xf32>
    %c1_55 = arith.constant 1 : index
    %c0_56 = arith.constant 0 : index
    %c0_57 = arith.constant 0 : index
    %74 = vector.load %arg8[%c1_55, %c0_56, %c0_57] : memref<4x128x512xf32, #tpu.memory_space<vmem>>, vector<1x128x512xf32>
    %75 = vector.shape_cast %74 : vector<1x128x512xf32> to vector<128x512xf32>
    %cst_58 = arith.constant dense<0.000000e+00> : vector<2x512xf32>
    %76 = tpu.matmul %73, %75, %cst_58 {dimension_numbers = #tpu.dot_dimension_numbers<[1], [0], [0], [1], [0, 0, 1, 1], [], []>} : vector<2x128xf32>, vector<128x512xf32>, vector<2x512xf32> -> vector<2x512xf32>
    %77 = arith.addf %72, %76 : vector<2x512xf32>
    %78 = vector.extract_strided_slice %66 {offsets = [4, 0], sizes = [2, 128], strides = [1, 1]} : vector<8x128xf32> to vector<2x128xf32>
    %c2_59 = arith.constant 2 : index
    %c0_60 = arith.constant 0 : index
    %c0_61 = arith.constant 0 : index
    %79 = vector.load %arg8[%c2_59, %c0_60, %c0_61] : memref<4x128x512xf32, #tpu.memory_space<vmem>>, vector<1x128x512xf32>
    %80 = vector.shape_cast %79 : vector<1x128x512xf32> to vector<128x512xf32>
    %cst_62 = arith.constant dense<0.000000e+00> : vector<2x512xf32>
    %81 = tpu.matmul %78, %80, %cst_62 {dimension_numbers = #tpu.dot_dimension_numbers<[1], [0], [0], [1], [0, 0, 1, 1], [], []>} : vector<2x128xf32>, vector<128x512xf32>, vector<2x512xf32> -> vector<2x512xf32>
    %82 = arith.addf %77, %81 : vector<2x512xf32>
    %83 = vector.extract_strided_slice %66 {offsets = [6, 0], sizes = [2, 128], strides = [1, 1]} : vector<8x128xf32> to vector<2x128xf32>
    %c3_63 = arith.constant 3 : index
    %c0_64 = arith.constant 0 : index
    %c0_65 = arith.constant 0 : index
    %84 = vector.load %arg8[%c3_63, %c0_64, %c0_65] : memref<4x128x512xf32, #tpu.memory_space<vmem>>, vector<1x128x512xf32>
    %85 = vector.shape_cast %84 : vector<1x128x512xf32> to vector<128x512xf32>
    %cst_66 = arith.constant dense<0.000000e+00> : vector<2x512xf32>
    %86 = tpu.matmul %83, %85, %cst_66 {dimension_numbers = #tpu.dot_dimension_numbers<[1], [0], [0], [1], [0, 0, 1, 1], [], []>} : vector<2x128xf32>, vector<128x512xf32>, vector<2x512xf32> -> vector<2x512xf32>
    %87 = arith.addf %82, %86 : vector<2x512xf32>
    %c0_67 = arith.constant 0 : index
    %c0_68 = arith.constant 0 : index
    %88 = vector.load %arg9[%c0_67, %c0_68] : memref<1x512xf32, #tpu.memory_space<vmem>>, vector<1x512xf32>
    %89 = vector.broadcast %88 : vector<1x512xf32> to vector<2x512xf32>
    %90 = arith.addf %87, %89 : vector<2x512xf32>
    %cst_69 = arith.constant 0.000000e+00 : f32
    %91 = vector.broadcast %cst_69 : f32 to vector<2x512xf32>
    %92 = arith.maximumf %90, %91 : vector<2x512xf32>
    %c0_70 = arith.constant 0 : index
    %c0_71 = arith.constant 0 : index
    %93 = vector.load %arg11[%c0_70, %c0_71] : memref<1x128xf32, #tpu.memory_space<vmem>>, vector<1x128xf32>
    %94 = vector.extract_strided_slice %92 {offsets = [0, 0], sizes = [2, 128], strides = [1, 1]} : vector<2x512xf32> to vector<2x128xf32>
    %c0_72 = arith.constant 0 : index
    %c0_73 = arith.constant 0 : index
    %c0_74 = arith.constant 0 : index
    %95 = vector.load %arg10[%c0_72, %c0_73, %c0_74] : memref<4x128x128xf32, #tpu.memory_space<vmem>>, vector<1x128x128xf32>
    %96 = vector.shape_cast %95 : vector<1x128x128xf32> to vector<128x128xf32>
    %cst_75 = arith.constant dense<0.000000e+00> : vector<2x128xf32>
    %97 = tpu.matmul %94, %96, %cst_75 {dimension_numbers = #tpu.dot_dimension_numbers<[1], [0], [0], [1], [0, 0, 1, 1], [], []>} : vector<2x128xf32>, vector<128x128xf32>, vector<2x128xf32> -> vector<2x128xf32>
    %98 = vector.broadcast %93 : vector<1x128xf32> to vector<2x128xf32>
    %99 = arith.addf %98, %97 : vector<2x128xf32>
    %100 = vector.extract_strided_slice %92 {offsets = [0, 128], sizes = [2, 128], strides = [1, 1]} : vector<2x512xf32> to vector<2x128xf32>
    %c1_76 = arith.constant 1 : index
    %c0_77 = arith.constant 0 : index
    %c0_78 = arith.constant 0 : index
    %101 = vector.load %arg10[%c1_76, %c0_77, %c0_78] : memref<4x128x128xf32, #tpu.memory_space<vmem>>, vector<1x128x128xf32>
    %102 = vector.shape_cast %101 : vector<1x128x128xf32> to vector<128x128xf32>
    %cst_79 = arith.constant dense<0.000000e+00> : vector<2x128xf32>
    %103 = tpu.matmul %100, %102, %cst_79 {dimension_numbers = #tpu.dot_dimension_numbers<[1], [0], [0], [1], [0, 0, 1, 1], [], []>} : vector<2x128xf32>, vector<128x128xf32>, vector<2x128xf32> -> vector<2x128xf32>
    %104 = arith.addf %99, %103 : vector<2x128xf32>
    %105 = vector.extract_strided_slice %92 {offsets = [0, 256], sizes = [2, 128], strides = [1, 1]} : vector<2x512xf32> to vector<2x128xf32>
    %c2_80 = arith.constant 2 : index
    %c0_81 = arith.constant 0 : index
    %c0_82 = arith.constant 0 : index
    %106 = vector.load %arg10[%c2_80, %c0_81, %c0_82] : memref<4x128x128xf32, #tpu.memory_space<vmem>>, vector<1x128x128xf32>
    %107 = vector.shape_cast %106 : vector<1x128x128xf32> to vector<128x128xf32>
    %cst_83 = arith.constant dense<0.000000e+00> : vector<2x128xf32>
    %108 = tpu.matmul %105, %107, %cst_83 {dimension_numbers = #tpu.dot_dimension_numbers<[1], [0], [0], [1], [0, 0, 1, 1], [], []>} : vector<2x128xf32>, vector<128x128xf32>, vector<2x128xf32> -> vector<2x128xf32>
    %109 = arith.addf %104, %108 : vector<2x128xf32>
    %110 = vector.extract_strided_slice %92 {offsets = [0, 384], sizes = [2, 128], strides = [1, 1]} : vector<2x512xf32> to vector<2x128xf32>
    %c3_84 = arith.constant 3 : index
    %c0_85 = arith.constant 0 : index
    %c0_86 = arith.constant 0 : index
    %111 = vector.load %arg10[%c3_84, %c0_85, %c0_86] : memref<4x128x128xf32, #tpu.memory_space<vmem>>, vector<1x128x128xf32>
    %112 = vector.shape_cast %111 : vector<1x128x128xf32> to vector<128x128xf32>
    %cst_87 = arith.constant dense<0.000000e+00> : vector<2x128xf32>
    %113 = tpu.matmul %110, %112, %cst_87 {dimension_numbers = #tpu.dot_dimension_numbers<[1], [0], [0], [1], [0, 0, 1, 1], [], []>} : vector<2x128xf32>, vector<128x128xf32>, vector<2x128xf32> -> vector<2x128xf32>
    %114 = arith.addf %109, %113 : vector<2x128xf32>
    %115 = vector.extract_strided_slice %114 {offsets = [0, 0], sizes = [2, 5], strides = [1, 1]} : vector<2x128xf32> to vector<2x5xf32>
    %116 = vector.extract_strided_slice %114 {offsets = [0, 5], sizes = [2, 1], strides = [1, 1]} : vector<2x128xf32> to vector<2x1xf32>
    %117 = vector.shape_cast %115 : vector<2x5xf32> to vector<1x2x5xf32>
    %cst_88 = arith.constant dense<0.000000e+00> : vector<1xf32>
    %118 = vector.multi_reduction <add>, %117, %cst_88 [1, 2] : vector<1x2x5xf32> to vector<1xf32>
    %119 = vector.shape_cast %118 : vector<1xf32> to vector<1x1x1xf32>
    %120 = vector.extract %119[0, 0, 0] : f32 from vector<1x1x1xf32>
    %cst_89 = arith.constant 1.000000e+01 : f32
    %121 = arith.divf %120, %cst_89 : f32
    %122 = vector.broadcast %121 : f32 to vector<2x1xf32>
    %123 = arith.subf %116, %122 : vector<2x1xf32>
    %124 = vector.broadcast %123 : vector<2x1xf32> to vector<2x128xf32>
    %125 = arith.addf %114, %124 : vector<2x128xf32>
    %c0_90 = arith.constant 0 : index
    %c0_91 = arith.constant 0 : index
    %126 = vector.load %arg12[%c0_90, %c0_91] : memref<2x128xf32, #tpu.memory_space<vmem>>, vector<2x128xf32>
    tpu.vector_store %arg12[%c0_90, %c0_91], %125 {strides = array<i32>} : memref<2x128xf32, #tpu.memory_space<vmem>>, vector<2x128xf32>,
    return
  }
  func.func @transform_0(%arg0: i32) -> (i32, i32) {
    %c0_i32 = arith.constant 0 : i32
    %c0_i32_0 = arith.constant 0 : i32
    %c0_i32_1 = arith.constant 0 : i32
    return %c0_i32, %c0_i32_0 : i32, i32
  }
  func.func @transform_1(%arg0: i32) -> (i32, i32) {
    %c0_i32 = arith.constant 0 : i32
    %c0_i32_0 = arith.constant 0 : i32
    %c0_i32_1 = arith.constant 0 : i32
    return %c0_i32, %c0_i32_0 : i32, i32
  }
  func.func @transform_2(%arg0: i32) -> (i32, i32, i32) {
    %c0_i32 = arith.constant 0 : i32
    %c0_i32_0 = arith.constant 0 : i32
    %c0_i32_1 = arith.constant 0 : i32
    %c0_i32_2 = arith.constant 0 : i32
    return %c0_i32, %c0_i32_0, %c0_i32_1 : i32, i32, i32
  }
  func.func @transform_3(%arg0: i32) -> (i32, i32) {
    %c0_i32 = arith.constant 0 : i32
    %c0_i32_0 = arith.constant 0 : i32
    %c0_i32_1 = arith.constant 0 : i32
    return %c0_i32, %c0_i32_0 : i32, i32
  }
  func.func @transform_4(%arg0: i32) -> (i32, i32) {
    %c0_i32 = arith.constant 0 : i32
    %c0_i32_0 = arith.constant 0 : i32
    %c0_i32_1 = arith.constant 0 : i32
    return %c0_i32, %c0_i32_0 : i32, i32
  }
  func.func @transform_5(%arg0: i32) -> (i32, i32, i32) {
    %c0_i32 = arith.constant 0 : i32
    %c0_i32_0 = arith.constant 0 : i32
    %c0_i32_1 = arith.constant 0 : i32
    %c0_i32_2 = arith.constant 0 : i32
    return %c0_i32, %c0_i32_0, %c0_i32_1 : i32, i32, i32
  }
  func.func @transform_6(%arg0: i32) -> (i32, i32) {
    %c0_i32 = arith.constant 0 : i32
    %c0_i32_0 = arith.constant 0 : i32
    %c0_i32_1 = arith.constant 0 : i32
    return %c0_i32, %c0_i32_0 : i32, i32
  }
  func.func @transform_7(%arg0: i32) -> (i32, i32, i32) {
    %c0_i32 = arith.constant 0 : i32
    %c0_i32_0 = arith.constant 0 : i32
    %c0_i32_1 = arith.constant 0 : i32
    %c0_i32_2 = arith.constant 0 : i32
    return %c0_i32, %c0_i32_0, %c0_i32_1 : i32, i32, i32
  }
  func.func @transform_8(%arg0: i32) -> (i32, i32) {
    %c0_i32 = arith.constant 0 : i32
    %c0_i32_0 = arith.constant 0 : i32
    %c0_i32_1 = arith.constant 0 : i32
    return %c0_i32, %c0_i32_0 : i32, i32
  }
  func.func @transform_9(%arg0: i32) -> (i32, i32, i32) {
    %c0_i32 = arith.constant 0 : i32
    %c0_i32_0 = arith.constant 0 : i32
    %c0_i32_1 = arith.constant 0 : i32
    %c0_i32_2 = arith.constant 0 : i32
    return %c0_i32, %c0_i32_0, %c0_i32_1 : i32, i32, i32
  }
  func.func @transform_10(%arg0: i32) -> (i32, i32) {
    %c0_i32 = arith.constant 0 : i32
    %c0_i32_0 = arith.constant 0 : i32
    %c0_i32_1 = arith.constant 0 : i32
    return %c0_i32, %c0_i32_0 : i32, i32
  }
  func.func @transform_11(%arg0: i32) -> (i32, i32) {
    %c0_i32 = arith.constant 0 : i32
    %c0_i32_0 = arith.constant 0 : i32
    %c0_i32_1 = arith.constant 0 : i32
    return %c0_i32, %c0_i32_0 : i32, i32
  }
}

</mosaic_0001>

<bundles_post_ra>
// kernel: tile.13
= control target key start
LH: loop header
LB: loop body
LE: loop exit
PB: predicated region body
PF: predicated region fallthrough
CT: control target
= control target key end

     0   :  { %s34_s0 = inlined_call_operand.vmem [shape: f32[16], index: 0, kind: input, shape index: {}]   ;;  %s35_s1 = inlined_call_operand.vmem [shape: f32[20,16], index: 1, kind: output, shape index: {}]  }
   0x1   :  { %v4_v0 = vld [vmem:[%s34_s0] ss:$0 sm:$0xff] }
   0x2   :  { %5 = vst [vmem:[%s35_s1] sm:$0xff] %v4_v0  ;;  %10 = vst [vmem:[%s35_s1 + $0x8] sm:$0xff] %v4_v0 }
   0x3   :  { %11 = vst [vmem:[%s35_s1 + $0x10] sm:$0xff] %v4_v0 }

// kernel: tile.14
= control target key start
LH: loop header
LB: loop body
LE: loop exit
PB: predicated region body
PF: predicated region fallthrough
CT: control target
= control target key end

     0   :  { %s6_s6 = smov 3  ;;  %s20_s9 = smov 3  ;;  %vm3_vm0 = vcmask 130048   ;;  %vm10_vm1 = vcmask 1048448   ;;  %vm17_vm2 = vcmask 917248   ;;  %vm24_vm3 = vcmask 786048   ;;  %s135_s0 = inlined_call_operand.vmem [shape: f32[20,16], index: 0, kind: input, shape index: {}]   ;;  %s136_s1 = inlined_call_operand.vmem [shape: f32[1,320], index: 1, kind: output, shape index: {}]  }
   0x1   :  { %v69_v0 = vld [vmem:[%s135_s0 + $0x7] ss:$8 sm:%s6_s6]   ;;  %s85_s10 = smov 112   ;;  %v71_v1 = vld [vmem:[%s135_s0 + $0x5] ss:$8 sm:%s20_s9]   ;;  %s13_s13 = smov 3 }
   0x2   :  { %8 = vrot.lane.b32.xlu0 %v69_v0, %s85_s10  ;;  %s86_s14 = smov 80   ;;  %v70_v2 = vld [vmem:[%s135_s0 + $0x6] ss:$8 sm:%s13_s13]   ;;  %s27_s17 = smov 3  ;;  %vm31_vm4 = vcmask 654848   ;;  %vm37_vm5 = vcmask 523648  }
   0x3   :  { %22 = vrot.lane.b32.xlu1 %v71_v1, %s86_s14  ;;  %v72_v3 = vld [vmem:[%s135_s0 + $0x4] ss:$8 sm:%s27_s17]   ;;  %s87_s20 = smov 96   ;;  %v2_v4 = vld [vmem:[%s135_s0] ss:$8 sm:$0x7]  }
   0x4   :  { %s88_s23 = smov 64   ;;  %v73_v5 = vld [vmem:[%s135_s0 + $0x3] ss:$8 sm:$0x7]   ;;  %s89_s28 = smov 48   ;;  %vm43_vm6 = vcmask 392448  }
   0x5   :  { %4 = vst.msk [vmem:[#allocation0] ss:$8 sm:$0x7] %vm3_vm0, %v2_v4   ;;  %v74_v6 = vld [vmem:[%s135_s0 + $0x2] ss:$8 sm:$0x7]  }
   0x6   :  { %15 = vrot.lane.b32.xlu0 %v70_v2, %s87_s20  ;;  %s90_s29 = smov 32   ;;  %v75_v7 = vld [vmem:[%s135_s0 + $0x1] ss:$8 sm:$0x7]   ;;  %s91_s0 = smov 16   ;;  %vm49_vm7 = vcmask 261248  }
   0x7   :  { %29 = vrot.lane.b32.xlu1 %v72_v3, %s88_s23 }
   0xa   :  { %35 = vrot.lane.b32.xlu0 %v73_v5, %s89_s28 }
   0xb   :  { %41 = vrot.lane.b32.xlu1 %v74_v6, %s90_s29 }
   0xe   :  { %47 = vrot.lane.b32.xlu0 %v75_v7, %s91_s0 }
  0x74   :  { %v9_v8 = vpop.permute.xlu0 %8  }
  0x75   :  { %11 = vst.msk [vmem:[#allocation0] ss:$8 sm:$0x3] %vm10_vm1, %v9_v8   ;;  %v23_v9 = vpop.permute.xlu1 %22  }
  0x78   :  { %v16_v10 = vpop.permute.xlu0 %15  }
  0x79   :  { %18 = vst.msk [vmem:[#allocation0] ss:$8 sm:$0x3] %vm17_vm2, %v16_v10   ;;  %v30_v11 = vpop.permute.xlu1 %29  }
  0x7a   :  { %25 = vst.msk [vmem:[#allocation0] ss:$8 sm:$0x3] %vm24_vm3, %v23_v9  }
  0x7b   :  { %32 = vst.msk [vmem:[#allocation0] ss:$8 sm:$0x3] %vm31_vm4, %v30_v11  }
  0x7c   :  { %v36_v12 = vpop.permute.xlu0 %35  }
  0x7d   :  { %38 = vst.msk [vmem:[#allocation0] ss:$8 sm:$0x7] %vm37_vm5, %v36_v12   ;;  %v42_v13 = vpop.permute.xlu1 %41  }
  0x7e   :  { %44 = vst.msk [vmem:[#allocation0] ss:$8 sm:$0x7] %vm43_vm6, %v42_v13  }
  0x80   :  { %v48_v14 = vpop.permute.xlu0 %47  }
  0x81   :  { %50 = vst.msk [vmem:[#allocation0] ss:$8 sm:$0x7] %vm49_vm7, %v48_v14  }
  0x88   :  { %v54_v15 = vld [vmem:[#allocation0] sm:$0x1]  ;;  %v58_v16 = vld [vmem:[#allocation0 + $0x8] sm:$0x1]  ;;  %v63_v17 = vld [vmem:[#allocation0 + $0x10] sm:$0x1] }
  0x89   :  { %56 = vst [vmem:[%s136_s1] sm:$0x1] %v54_v15  ;;  %76 = vst [vmem:[%s136_s1 + $0x1] sm:$0x1] %v58_v16 }
  0x8a   :  { %77 = vst [vmem:[%s136_s1 + $0x2] sm:$0x1] %v63_v17 }

// kernel: tile.18
= control target key start
LH: loop header
LB: loop body
LE: loop exit
PB: predicated region body
PF: predicated region fallthrough
CT: control target
= control target key end

     0   :  { %s22_s0 = inlined_call_operand.vmem [shape: f32[32], index: 0, kind: input, shape index: {}]   ;;  %s23_s1 = inlined_call_operand.vmem [shape: f32[4,32], index: 1, kind: output, shape index: {}]  }
   0x1   :  { %v4_v0 = vld [vmem:[%s22_s0] ss:$0 sm:$0xff] }
   0x2   :  { %5 = vst [vmem:[%s23_s1] sm:$0xf] %v4_v0 }

// kernel: tile.19
= control target key start
LH: loop header
LB: loop body
LE: loop exit
PB: predicated region body
PF: predicated region fallthrough
CT: control target
= control target key end

     0   :  { %vm7_vm0 = vcmask 261120   ;;  %s37_s8 = smov 32   ;;  %s38_s9 = smov 64   ;;  %vm13_vm1 = vcmask 1048320   ;;  %vm19_vm2 = vcmask 785920   ;;  %vm25_vm3 = vcmask 523520   ;;  %s55_s0 = inlined_call_operand.vmem [shape: f32[4,32], index: 0, kind: input, shape index: {}]   ;;  %s56_s1 = inlined_call_operand.vmem [shape: f32[1,128], index: 1, kind: output, shape index: {}]  }
   0x1   :  { %v4_v0 = vld [vmem:[%s55_s0] sm:$0xf]  ;;  %s36_s0 = smov 96  }
   0x2   :  { %5 = vst [vmem:[#allocation1] sm:$0xf] %v4_v0 }
   0x9   :  { %v10_v1 = vld [vmem:[#allocation1 + $0x3] sm:$0x1]   ;;  %v22_v2 = vld [vmem:[#allocation1 + $0x1] sm:$0x1]   ;;  %v6_v3 = vld [vmem:[#allocation1] sm:$0x1]  }
   0xa   :  { %11 = vrot.lane.b32.xlu0 %v10_v1, %s36_s0  ;;  %23 = vrot.lane.b32.xlu1 %v22_v2, %s37_s8  ;;  %v16_v4 = vld [vmem:[#allocation1 + $0x2] sm:$0x1]   ;;  %8 = vst.msk [vmem:[#allocation0] sm:$0x1] %vm7_vm0, %v6_v3  }
   0xe   :  { %17 = vrot.lane.b32.xlu0 %v16_v4, %s38_s9 }
  0x7c   :  { %v12_v5 = vpop.permute.xlu0 %11   ;;  %v24_v6 = vpop.permute.xlu1 %23  }
  0x7d   :  { %14 = vst.msk [vmem:[#allocation0] sm:$0x1] %vm13_vm1, %v12_v5  }
  0x80   :  { %v18_v7 = vpop.permute.xlu0 %17  }
  0x81   :  { %20 = vst.msk [vmem:[#allocation0] sm:$0x1] %vm19_vm2, %v18_v7  }
  0x82   :  { %26 = vst.msk [vmem:[#allocation0] sm:$0x1] %vm25_vm3, %v24_v6  }
  0x89   :  { %v30_v8 = vld [vmem:[#allocation0] sm:$0x1] }
  0x8a   :  { %32 = vst [vmem:[%s56_s1] sm:$0x1] %v30_v8 }

// kernel: dueling_cnn_forward.1
= control target key start
LH: loop header
LB: loop body
LE: loop exit
PB: predicated region body
PF: predicated region fallthrough
CT: control target
= control target key end

     0   :  { %v5904_v3 = vmov 0.0|0.0   ;;  %vm5905_vm0 = vmmov 0   ;;  %v5906_v6 = vmov 0.0   ;;  %vm68_vm1 = vcmask 261120   ;;  %s8228_s0 = inlined_call_operand.vmem [shape: f32[32,16], index: 0, kind: input, shape index: {}]   ;;  %s8229_s1 = inlined_call_operand.vmem [shape: f32[200,32], index: 1, kind: input, shape index: {}]   ;;  %s8230_s2 = inlined_call_operand.vmem [shape: f32[5,16,320], index: 2, kind: input, shape index: {}]   ;;  %s8231_s3 = inlined_call_operand.vmem [shape: f32[1,320], index: 3, kind: input, shape index: {}]   ;;  %s8232_s4 = inlined_call_operand.vmem [shape: f32[40,40], index: 4, kind: input, shape index: {}]   ;;  %s8233_s5 = inlined_call_operand.vmem [shape: f32[5,320,128], index: 5, kind: input, shape index: {}]   ;;  %s8234_s6 = inlined_call_operand.vmem [shape: f32[1,128], index: 6, kind: input, shape index: {}]   ;;  %s8235_s7 = inlined_call_operand.vmem [shape: f32[4,128,512], index: 7, kind: input, shape index: {}]   ;;  %s8236_s8 = inlined_call_operand.vmem [shape: f32[1,512], index: 8, kind: input, shape index: {}]   ;;  %s8237_s9 = inlined_call_operand.vmem [shape: f32[4,128,128], index: 9, kind: input, shape index: {}]   ;;  %s8238_s10 = inlined_call_operand.vmem [shape: f32[1,128], index: 10, kind: input, shape index: {}]   ;;  %s8239_s11 = inlined_call_operand.hbm [shape: f32[2,128], index: 11, kind: output, shape index: {}]  }
   0x1   :  { %v39_v0 = vld [vmem:[%s8228_s0] sm:$0xff]  ;;  %v40_v1 = vld [vmem:[%s8228_s0 + $0x8] sm:$0xff]  ;;  %v41_v2 = vld [vmem:[%s8228_s0 + $0x10] sm:$0xff]  ;;  %5182 = vmatprep.subr.bf16.mxu0 %v5904_v3  ;;  %4752 = vmatprep.mubr.msk.f32.mxu0 %vm5905_vm0, %v5906_v6 }
   0x2   :  { %v5183_v4 = vpack.c.bf16 %v40_v1, %v39_v0  ;;  %v42_v5 = vld [vmem:[%s8228_s0 + $0x18] sm:$0xff]  ;;  %5809 = vmatprep.subr.bf16.mxu1 %v5904_v3  ;;  %4782 = vmatprep.mubr.msk.f32.mxu1 %vm5905_vm0, %v5906_v6  ;;  %v43_v8 = vld [vmem:[%s8229_s1] sm:$0xff]  ;;  %v53_v9 = vld [vmem:[%s8229_s1 + $0x50] sm:$0xff] }
   0x3   :  { %v5186_v7 = vpack.c.bf16 %v42_v5, %v41_v2  ;;  %v3892_v10 = vld [vmem:[%s8230_s2 + $0x38] sm:$0xff]  ;;  %v3895_v11 = vld [vmem:[%s8230_s2 + $0x50] sm:$0xff]  ;;  %v3894_v13 = vld [vmem:[%s8230_s2 + $0x48] sm:$0xff] }
   0x4   :  { %5184 = vmatpush3.bf16.msra.mxu0 %v5183_v4  ;;  %5811 = vmatpush3.bf16.msra.mxu1 %v5183_v4  ;;  %v3891_v12 = vld [vmem:[%s8230_s2 + $0x30] sm:$0xff]  ;;  %v44_v14 = vld [vmem:[%s8229_s1 + $0x8] sm:$0xff]  ;;  %v54_v15 = vld [vmem:[%s8229_s1 + $0x58] sm:$0xff]  ;;  %v5188_v16 = vpack.c.bf16 %v3895_v11, %v3892_v10 }
   0x5   :  { %5185 = vmatprep.subr.bf16.mxu0 %v5904_v3  ;;  %5810 = vmatprep.subr.bf16.mxu1 %v5904_v3 }
   0x8   :  { %5187 = vmatpush3.bf16.msra.mxu0 %v5186_v7  ;;  %5812 = vmatpush3.bf16.msra.mxu1 %v5186_v7 }
   0x9   :  { %5213 = vmatprep.subr.bf16.mxu0 %v5904_v3 }
   0xb   :  { %4753 = vmatmul.mubr.msk.f32.vlgmr.msra.gmra.mrb[0].mxu0 %vm68_vm1, %v43_v8  ;;  %4783 = vmatmul.mubr.msk.f32.vlgmr.msra.gmra.mrb[0].mxu1 %vm68_vm1, %v53_v9 }
   0xc   :  { %4755 = vmatprep.mubr.msk.f32.mxu0 %vm5905_vm0, %v5906_v6  ;;  %4785 = vmatprep.mubr.msk.f32.mxu1 %vm5905_vm0, %v5906_v6 }
   0xd   :  { %16 = vsyncpa [#allocation3], 0  ;;  %v5190_v17 = vpack.c.bf16 %v3894_v13, %v3891_v12  ;;  %5189 = vmatprep.subr.bf16.mxu1 %v5188_v16  ;;  %v45_v18 = vld [vmem:[%s8229_s1 + $0x10] sm:$0xff]  ;;  %v55_v19 = vld [vmem:[%s8229_s1 + $0x60] sm:$0xff]  ;;  %vm347_vm2 = vcmask 130048   ;;  %vm1466_vm3 = vcmask 326656  }
   0xe   :  { %v46_v20 = vld [vmem:[%s8229_s1 + $0x18] sm:$0xff]  ;;  %v56_v21 = vld [vmem:[%s8229_s1 + $0x68] sm:$0xff]  ;;  %v47_v22 = vld [vmem:[%s8229_s1 + $0x20] sm:$0xff]  ;;  %vm1748_vm4 = vcmask 523264   ;;  %vm3829_vm5 = vcmask 33792  }
   0xf   :  { %4756 = vmatmul.mubr.msk.f32.gmra.mrb[2].mxu0 %vm68_vm1, %v44_v14  ;;  %4786 = vmatmul.mubr.msk.f32.gmra.mrb[2].mxu1 %vm68_vm1, %v54_v15  ;;  %v57_v23 = vld [vmem:[%s8229_s1 + $0x70] sm:$0xff]  ;;  %v48_v24 = vld [vmem:[%s8229_s1 + $0x28] sm:$0xff]  ;;  %v58_v25 = vld [vmem:[%s8229_s1 + $0x78] sm:$0xff] }
  0x10   :  { %4758 = vmatprep.mubr.msk.f32.mxu0 %vm5905_vm0, %v5906_v6  ;;  %4788 = vmatprep.mubr.msk.f32.mxu1 %vm5905_vm0, %v5906_v6  ;;  %v49_v26 = vld [vmem:[%s8229_s1 + $0x30] sm:$0xff]  ;;  %v59_v27 = vld [vmem:[%s8229_s1 + $0x80] sm:$0xff]  ;;  %v50_v28 = vld [vmem:[%s8229_s1 + $0x38] sm:$0xff] }
  0x11   :  { %5191 = vmatpush1.bf16.msra.mxu1 %v5190_v17  ;;  %v60_v29 = vld [vmem:[%s8229_s1 + $0x88] sm:$0xff]  ;;  %v51_v30 = vld [vmem:[%s8229_s1 + $0x40] sm:$0xff]  ;;  %v61_v31 = vld [vmem:[%s8229_s1 + $0x90] sm:$0xff] }
  0x12   :  { %5192 = vmatprep.subr.bf16.mxu1 %v5904_v3  ;;  %v52_v32 = vld [vmem:[%s8229_s1 + $0x48] sm:$0xff]  ;;  %v62_v33 = vld [vmem:[%s8229_s1 + $0x98] sm:$0xff]  ;;  %v63_v34 = vld [vmem:[%s8229_s1 + $0xa0] sm:$0xff] }
  0x13   :  { %4759 = vmatmul.mubr.msk.f32.gmra.mrb[4].mxu0 %vm68_vm1, %v45_v18  ;;  %4789 = vmatmul.mubr.msk.f32.gmra.mrb[4].mxu1 %vm68_vm1, %v55_v19  ;;  %v64_v35 = vld [vmem:[%s8229_s1 + $0xa8] sm:$0xff]  ;;  %v65_v36 = vld [vmem:[%s8229_s1 + $0xb0] sm:$0xff]  ;;  %v66_v37 = vld [vmem:[%s8229_s1 + $0xb8] sm:$0xff] }
  0x14   :  { %4761 = vmatprep.mubr.msk.f32.mxu0 %vm5905_vm0, %v5906_v6  ;;  %4791 = vmatprep.mubr.msk.f32.mxu1 %vm5905_vm0, %v5906_v6  ;;  %v67_v38 = vld [vmem:[%s8229_s1 + $0xc0] sm:$0xff]  ;;  %v3938_v40 = vld [vmem:[%s8230_s2 + $0xb8] sm:$0xff]  ;;  %v335_v61 = vld [vmem:[%s8230_s2 + $0x8] sm:$0xff] }
  0x15   :  { %v3935_v39 = vld [vmem:[%s8230_s2 + $0xa0] sm:$0xff]  ;;  %v3896_v59 = vld [vmem:[%s8230_s2 + $0x58] sm:$0xff]  ;;  %v3951_v2 = vld [vmem:[%s8230_s2 + $0xd0] sm:$0xff] }
  0x16   :  { %v5214_v41 = vpack.c.bf16 %v3938_v40, %v3935_v39  ;;  %v3893_v58 = vld [vmem:[%s8230_s2 + $0x40] sm:$0xff]  ;;  %v3954_v4 = vld [vmem:[%s8230_s2 + $0xe8] sm:$0xff]  ;;  %v336_v40 = vld [vmem:[%s8230_s2 + $0x10] sm:$0xff] }
  0x17   :  { %4762 = vmatmul.mubr.msk.f32.gmra.mrb[6].mxu0 %vm68_vm1, %v46_v20  ;;  %4792 = vmatmul.mubr.msk.f32.gmra.mrb[6].mxu1 %vm68_vm1, %v56_v21  ;;  %v338_v62 = vld [vmem:[%s8230_s2 + $0x20] sm:$0xff]  ;;  %v5193_v5 = vpack.c.bf16 %v3896_v59, %v3893_v58  ;;  %v5221_v10 = vpack.c.bf16 %v3954_v4, %v3951_v2  ;;  %v3937_v59 = vld [vmem:[%s8230_s2 + $0xb0] sm:$0xff] }
  0x18   :  { %4764 = vmatprep.mubr.msk.f32.mxu0 %vm5905_vm0, %v5906_v6  ;;  %4794 = vmatprep.mubr.msk.f32.mxu1 %vm5905_vm0, %v5906_v6  ;;  %v5195_v7 = vpack.c.bf16 %v338_v62, %v335_v61  ;;  %v3936_v62 = vld [vmem:[%s8230_s2 + $0xa8] sm:$0xff] }
  0x19   :  { %5215 = vmatpush3.bf16.msra.mxu0 %v5214_v41  ;;  %v339_v41 = vld [vmem:[%s8230_s2 + $0x28] sm:$0xff] }
  0x1a   :  { %5220 = vmatprep.subr.bf16.mxu0 %v5904_v3 }
  0x1b   :  { %4765 = vmatmul.mubr.msk.f32.gmra.mrb[8].mxu0 %vm68_vm1, %v47_v22  ;;  %4795 = vmatmul.mubr.msk.f32.gmra.mrb[8].mxu1 %vm68_vm1, %v57_v23 }
  0x1c   :  { %4767 = vmatprep.mubr.msk.f32.mxu0 %vm5905_vm0, %v5906_v6  ;;  %4797 = vmatprep.mubr.msk.f32.mxu1 %vm5905_vm0, %v5906_v6 }
  0x1f   :  { %4768 = vmatmul.mubr.msk.f32.gmra.mrb[10].mxu0 %vm68_vm1, %v48_v24  ;;  %4798 = vmatmul.mubr.msk.f32.gmra.mrb[10].mxu1 %vm68_vm1, %v58_v25  ;;  %v334_v25 = vld [vmem:[%s8230_s2] sm:$0xff] }
  0x20   :  { %4770 = vmatprep.mubr.msk.f32.mxu0 %vm5905_vm0, %v5906_v6  ;;  %4800 = vmatprep.mubr.msk.f32.mxu1 %vm5905_vm0, %v5906_v6 }
  0x23   :  { %4771 = vmatmul.mubr.msk.f32.gmra.mrb[12].mxu0 %vm68_vm1, %v49_v26  ;;  %4801 = vmatmul.mubr.msk.f32.gmra.mrb[12].mxu1 %vm68_vm1, %v59_v27  ;;  %v337_v26 = vld [vmem:[%s8230_s2 + $0x18] sm:$0xff] }
  0x24   :  { %4773 = vmatprep.mubr.msk.f32.mxu0 %vm5905_vm0, %v5906_v6  ;;  %4803 = vmatprep.mubr.msk.f32.mxu1 %vm5905_vm0, %v5906_v6 }
  0x27   :  { %4774 = vmatmul.mubr.msk.f32.gmra.mrb[14].mxu0 %vm68_vm1, %v50_v28  ;;  %4804 = vmatmul.mubr.msk.f32.gmra.mrb[14].mxu1 %vm68_vm1, %v60_v29 }
  0x28   :  { %4776 = vmatprep.mubr.msk.f32.mxu0 %vm5905_vm0, %v5906_v6  ;;  %4806 = vmatprep.mubr.msk.f32.mxu1 %vm5905_vm0, %v5906_v6 }
  0x2b   :  { %4777 = vmatmul.mubr.msk.f32.gmra.mrb[16].mxu0 %vm68_vm1, %v51_v30  ;;  %4807 = vmatmul.mubr.msk.f32.gmra.mrb[16].mxu1 %vm68_vm1, %v61_v31  ;;  %v5197_v31 = vpack.c.bf16 %v337_v26, %v334_v25 }
  0x2c   :  { %4779 = vmatprep.mubr.msk.f32.mxu0 %vm5905_vm0, %v5906_v6  ;;  %4809 = vmatprep.mubr.msk.f32.mxu1 %vm5905_vm0, %v5906_v6 }
  0x2f   :  { %4780 = vmatmul.mubr.msk.f32.gmra.mrb[18].mxu0 %vm68_vm1, %v52_v32  ;;  %4810 = vmatmul.mubr.msk.f32.gmra.mrb[18].mxu1 %vm68_vm1, %v62_v33 }
  0x30   :  { %4812 = vmatprep.mubr.msk.f32.mxu1 %vm5905_vm0, %v5906_v6  ;;  %4888 = vmatprep.mubr.msk.f32.mxu0 %vm5905_vm0, %v5906_v6 }
  0x33   :  { %4813 = vmatmul.mubr.msk.f32.gmra.mrb[20].mxu1 %vm68_vm1, %v63_v34 }
  0x34   :  { %4815 = vmatprep.mubr.msk.f32.mxu1 %vm5905_vm0, %v5906_v6 }
  0x37   :  { %4816 = vmatmul.mubr.msk.f32.gmra.mrb[22].mxu1 %vm68_vm1, %v64_v35 }
  0x38   :  { %4818 = vmatprep.mubr.msk.f32.mxu1 %vm5905_vm0, %v5906_v6 }
  0x3b   :  { %4819 = vmatmul.mubr.msk.f32.gmra.mrb[24].mxu1 %vm68_vm1, %v65_v36 }
  0x3c   :  { %4821 = vmatprep.mubr.msk.f32.mxu1 %vm5905_vm0, %v5906_v6 }
  0x3f   :  { %4822 = vmatmul.mubr.msk.f32.gmra.mrb[26].mxu1 %vm68_vm1, %v66_v37 }
  0x40   :  { %4824 = vmatprep.mubr.msk.f32.mxu1 %vm5905_vm0, %v5906_v6 }
  0x43   :  { %4825 = vmatmul.mubr.msk.f32.gmra.mrb[28].mxu1 %vm68_vm1, %v67_v38 }
  0x44   :  { %427 = vmatprep.mubr.f32.mxu1 %v5906_v6 }
  0xde   :  { %v6159_v42 = vpop.f32.mrb[0].mxu0  ;;  %v6161_v43 = vpop.f32.mrb[0].mxu1 }
  0xdf   :  { %v4754_v44 = vpop.f32.mrb[1].mxu0  ;;  %v4784_v45 = vpop.f32.mrb[1].mxu1 }
  0xe0   :  { %v3918_v44 = vld [vmem:[%s8230_s2 + $0x68] sm:$0xff]  ;;  %v3921_v45 = vld [vmem:[%s8230_s2 + $0x80] sm:$0xff] }
  0xe2   :  { %v6163_v46 = vpop.f32.mrb[2].mxu0  ;;  %v6165_v47 = vpop.f32.mrb[2].mxu1 }
  0xe3   :  { %v4757_v48 = vpop.f32.mrb[3].mxu0  ;;  %v4787_v49 = vpop.f32.mrb[3].mxu1 }
  0xe6   :  { %v6167_v50 = vpop.f32.mrb[4].mxu0  ;;  %v6169_v51 = vpop.f32.mrb[4].mxu1 }
  0xe7   :  { %v4760_v52 = vpop.f32.mrb[5].mxu0  ;;  %v4790_v53 = vpop.f32.mrb[5].mxu1 }
  0xe8   :  { %v5200_v52 = vpack.c.bf16 %v339_v41, %v336_v40  ;;  %v5202_v53 = vpack.c.bf16 %v3921_v45, %v3918_v44 }
  0xea   :  { %v6171_v54 = vpop.f32.mrb[6].mxu0  ;;  %v6173_v55 = vpop.f32.mrb[6].mxu1 }
  0xeb   :  { %v4763_v56 = vpop.f32.mrb[7].mxu0  ;;  %v4793_v57 = vpop.f32.mrb[7].mxu1 }
  0xec   :  { %v3917_v56 = vld [vmem:[%s8230_s2 + $0x60] sm:$0xff]  ;;  %v3920_v57 = vld [vmem:[%s8230_s2 + $0x78] sm:$0xff] }
  0xed   :  { %v5204_v58 = vpack.c.bf16 %v3920_v57, %v3917_v56  ;;  %v1416_v57 = vlaneseq }
  0xee   :  { %v6181_v60 = vpop.f32.mrb[8].mxu0  ;;  %v6189_v63 = vpop.f32.mrb[8].mxu1 }
  0xef   :  { %v4766_v0 = vpop.f32.mrb[9].mxu0  ;;  %v4796_v1 = vpop.f32.mrb[9].mxu1 }
  0xf0   :  { %v3950_v0 = vld [vmem:[%s8230_s2 + $0xc8] sm:$0xff]  ;;  %v3953_v1 = vld [vmem:[%s8230_s2 + $0xe0] sm:$0xff] }
  0xf1   :  { %v5216_v4 = vpack.c.bf16 %v3953_v1, %v3950_v0 }
  0xf2   :  { %v235_v8 = vpop.f32.mrb[10].mxu0  ;;  %v6197_v9 = vpop.f32.mrb[10].mxu1 }
  0xf3   :  { %v4769_v11 = vpop.f32.mrb[11].mxu0  ;;  %3897 = vmatmul.mubr.msk.f32.vlgmr.msra.gmra.mrb[30].mxu1 %vm347_vm2, %v235_v8  ;;  %4889 = vmatmul.mubr.msk.f32.vlgmr.msra.gmra.mrb[20].mxu0 %vm347_vm2, %v6197_v9  ;;  %v4799_v12 = vpop.f32.mrb[11].mxu1 }
  0xf4   :  { %433 = vmatprep.mubr.f32.mxu1 %v5906_v6  ;;  %5194 = vmatpush3.bf16.msra.mxu1 %v5193_v5 }
  0xf5   :  { %5196 = vmatprep.subr.bf16.mxu1 %v5195_v7  ;;  %4891 = vmatprep.mubr.msk.f32.mxu0 %vm5905_vm0, %v5906_v6 }
  0xf6   :  { %v240_v13 = vpop.f32.mrb[12].mxu0  ;;  %v6205_v14 = vpop.f32.mrb[12].mxu1  ;;  %5222 = vmatpush3.bf16.msra.mxu0 %v5221_v10 }
  0xf7   :  { %v4772_v15 = vpop.f32.mrb[13].mxu0  ;;  %3898 = vmatmul.mubr.msk.f32.gmra.mrb[32].mxu1 %vm347_vm2, %v240_v13  ;;  %4892 = vmatmul.mubr.msk.f32.gmra.mrb[22].mxu0 %vm347_vm2, %v6205_v14  ;;  %v4802_v16 = vpop.f32.mrb[13].mxu1 }
  0xf8   :  { %439 = vmatprep.mubr.f32.mxu1 %v5906_v6  ;;  %4894 = vmatprep.mubr.msk.f32.mxu0 %vm5905_vm0, %v5906_v6 }
  0xfa   :  { %v245_v17 = vpop.f32.mrb[14].mxu0  ;;  %v6213_v18 = vpop.f32.mrb[14].mxu1 }
  0xfb   :  { %v4775_v19 = vpop.f32.mrb[15].mxu0  ;;  %3899 = vmatmul.mubr.msk.f32.gmra.mrb[34].mxu1 %vm347_vm2, %v245_v17  ;;  %4895 = vmatmul.mubr.msk.f32.gmra.mrb[24].mxu0 %vm347_vm2, %v6213_v18  ;;  %v4805_v20 = vpop.f32.mrb[15].mxu1 }
  0xfc   :  { %445 = vmatprep.mubr.f32.mxu1 %v5906_v6  ;;  %4897 = vmatprep.mubr.msk.f32.mxu0 %vm5905_vm0, %v5906_v6 }
  0xfe   :  { %v250_v21 = vpop.f32.mrb[16].mxu0  ;;  %v6221_v22 = vpop.f32.mrb[16].mxu1 }
  0xff   :  { %v4778_v23 = vpop.f32.mrb[17].mxu0  ;;  %3900 = vmatmul.mubr.msk.f32.gmra.mrb[36].mxu1 %vm347_vm2, %v250_v21  ;;  %4898 = vmatmul.mubr.msk.f32.gmra.mrb[26].mxu0 %vm347_vm2, %v6221_v22  ;;  %v4808_v24 = vpop.f32.mrb[17].mxu1 }
 0x100   :  { %451 = vmatprep.mubr.f32.mxu1 %v5906_v6  ;;  %4900 = vmatprep.mubr.msk.f32.mxu0 %vm5905_vm0, %v5906_v6 }
 0x102   :  { %v255_v27 = vpop.f32.mrb[18].mxu0  ;;  %v6235_v28 = vpop.f32.mrb[18].mxu1 }
 0x103   :  { %v4781_v29 = vpop.f32.mrb[19].mxu0  ;;  %3901 = vmatmul.mubr.msk.f32.gmra.mrb[38].mxu1 %vm347_vm2, %v255_v27  ;;  %4901 = vmatmul.mubr.msk.f32.gmra.mrb[28].mxu0 %vm347_vm2, %v6235_v28  ;;  %v4811_v30 = vpop.f32.mrb[19].mxu1 }
 0x104   :  { %4831 = vmatprep.mubr.msk.f32.mxu1 %vm5905_vm0, %v5906_v6  ;;  %4907 = vmatprep.mubr.msk.f32.mxu0 %vm5905_vm0, %v5906_v6 }
 0x106   :  { %v6244_v32 = vpop.f32.mrb[20].mxu1 }
 0x107   :  { %4832 = vmatmul.mubr.msk.f32.vlgmr.msra.gmra.mrb[40].mxu1 %vm347_vm2, %v235_v8  ;;  %4908 = vmatmul.mubr.msk.f32.vlgmr.msra.gmra.mrb[30].mxu0 %vm347_vm2, %v6244_v32  ;;  %v4814_v33 = vpop.f32.mrb[21].mxu1 }
 0x108   :  { %4834 = vmatprep.mubr.msk.f32.mxu1 %vm5905_vm0, %v5906_v6  ;;  %5198 = vmatpush1.bf16.msra.mxu1 %v5197_v31 }
 0x109   :  { %5199 = vmatprep.subr.bf16.mxu1 %v5904_v3  ;;  %4910 = vmatprep.mubr.msk.f32.mxu0 %vm5905_vm0, %v5906_v6 }
 0x10a   :  { %v6254_v34 = vpop.f32.mrb[22].mxu1 }
 0x10b   :  { %4835 = vmatmul.mubr.msk.f32.gmra.mrb[42].mxu1 %vm347_vm2, %v240_v13  ;;  %4911 = vmatmul.mubr.msk.f32.gmra.mrb[32].mxu0 %vm347_vm2, %v6254_v34  ;;  %v4817_v35 = vpop.f32.mrb[23].mxu1 }
 0x10c   :  { %4837 = vmatprep.mubr.msk.f32.mxu1 %vm5905_vm0, %v5906_v6  ;;  %4913 = vmatprep.mubr.msk.f32.mxu0 %vm5905_vm0, %v5906_v6 }
 0x10e   :  { %v6263_v36 = vpop.f32.mrb[24].mxu1 }
 0x10f   :  { %4838 = vmatmul.mubr.msk.f32.gmra.mrb[44].mxu1 %vm347_vm2, %v245_v17  ;;  %4914 = vmatmul.mubr.msk.f32.gmra.mrb[34].mxu0 %vm347_vm2, %v6263_v36  ;;  %v4820_v37 = vpop.f32.mrb[25].mxu1 }
 0x110   :  { %4840 = vmatprep.mubr.msk.f32.mxu1 %vm5905_vm0, %v5906_v6  ;;  %4916 = vmatprep.mubr.msk.f32.mxu0 %vm5905_vm0, %v5906_v6 }
 0x112   :  { %v6272_v38 = vpop.f32.mrb[26].mxu1 }
 0x113   :  { %4841 = vmatmul.mubr.msk.f32.gmra.mrb[46].mxu1 %vm347_vm2, %v250_v21  ;;  %4917 = vmatmul.mubr.msk.f32.gmra.mrb[36].mxu0 %vm347_vm2, %v6272_v38  ;;  %v4823_v39 = vpop.f32.mrb[27].mxu1 }
 0x114   :  { %4843 = vmatprep.mubr.msk.f32.mxu1 %vm5905_vm0, %v5906_v6  ;;  %4919 = vmatprep.mubr.msk.f32.mxu0 %vm5905_vm0, %v5906_v6 }
 0x116   :  { %v6293_v48 = vpop.f32.mrb[28].mxu1 }
 0x117   :  { %4844 = vmatmul.mubr.msk.f32.gmra.mrb[48].mxu1 %vm347_vm2, %v255_v27  ;;  %4920 = vmatmul.mubr.msk.f32.gmra.mrb[38].mxu0 %vm347_vm2, %v6293_v48  ;;  %v4826_v49 = vpop.f32.mrb[29].mxu1 }
 0x118   :  { %627 = vmatprep.mubr.f32.mxu1 %v5906_v6  ;;  %1546 = vmatprep.mubr.f32.mxu0 %v5906_v6 }
 0x11b   :  { %3907 = vmatmul.mubr.msk.f32.vlgmr.msra.gmra.mrb[30].mxu1 %vm347_vm2, %v6159_v42 }
 0x11c   :  { %633 = vmatprep.mubr.f32.mxu1 %v5906_v6  ;;  %5201 = vmatpush3.bf16.msra.mxu1 %v5200_v52 }
 0x11d   :  { %5203 = vmatprep.subr.bf16.mxu1 %v5202_v53 }
 0x11f   :  { %3908 = vmatmul.mubr.msk.f32.gmra.mrb[32].mxu1 %vm347_vm2, %v6163_v46 }
 0x120   :  { %639 = vmatprep.mubr.f32.mxu1 %v5906_v6 }
 0x123   :  { %3909 = vmatmul.mubr.msk.f32.gmra.mrb[34].mxu1 %vm347_vm2, %v6167_v50 }
 0x124   :  { %645 = vmatprep.mubr.f32.mxu1 %v5906_v6 }
 0x127   :  { %3910 = vmatmul.mubr.msk.f32.gmra.mrb[36].mxu1 %vm347_vm2, %v6171_v54 }
 0x128   :  { %651 = vmatprep.mubr.f32.mxu1 %v5906_v6 }
 0x12b   :  { %3911 = vmatmul.mubr.msk.f32.gmra.mrb[38].mxu1 %vm347_vm2, %v6181_v60 }
 0x12c   :  { %4850 = vmatprep.mubr.msk.f32.mxu1 %vm5905_vm0, %v5906_v6 }
 0x12f   :  { %4851 = vmatmul.mubr.msk.f32.vlgmr.msra.gmra.mrb[50].mxu1 %vm347_vm2, %v6159_v42  ;;  %v3919_v42 = vld [vmem:[%s8230_s2 + $0x70] sm:$0xff] }
 0x130   :  { %4853 = vmatprep.mubr.msk.f32.mxu1 %vm5905_vm0, %v5906_v6  ;;  %5205 = vmatpush1.bf16.msra.mxu1 %v5204_v58  ;;  %v6443_v58 = vshrl.u32 %v1416_v57, 7 }
 0x131   :  { %5206 = vmatprep.subr.bf16.mxu1 %v5904_v3 }
 0x133   :  { %4854 = vmatmul.mubr.msk.f32.gmra.mrb[52].mxu1 %vm347_vm2, %v6163_v46  ;;  %v3922_v46 = vld [vmem:[%s8230_s2 + $0x88] sm:$0xff] }
 0x134   :  { %4856 = vmatprep.mubr.msk.f32.mxu1 %vm5905_vm0, %v5906_v6 }
 0x137   :  { %4857 = vmatmul.mubr.msk.f32.gmra.mrb[54].mxu1 %vm347_vm2, %v6167_v50  ;;  %v3934_v50 = vld [vmem:[%s8230_s2 + $0x98] sm:$0xff] }
 0x138   :  { %4859 = vmatprep.mubr.msk.f32.mxu1 %vm5905_vm0, %v5906_v6  ;;  %v5209_v61 = vpack.c.bf16 %v3937_v59, %v3934_v50  ;;  %v1426_v59 = vsub.s32 2, %v6443_v58 }
 0x13b   :  { %4860 = vmatmul.mubr.msk.f32.gmra.mrb[56].mxu1 %vm347_vm2, %v6171_v54  ;;  %v5207_v54 = vpack.c.bf16 %v3922_v46, %v3919_v42 }
 0x13c   :  { %4862 = vmatprep.mubr.msk.f32.mxu1 %vm5905_vm0, %v5906_v6 }
 0x13f   :  { %4863 = vmatmul.mubr.msk.f32.gmra.mrb[58].mxu1 %vm347_vm2, %v6181_v60  ;;  %v3933_v60 = vld [vmem:[%s8230_s2 + $0x90] sm:$0xff] }
 0x140   :  { %834 = vmatprep.mubr.f32.mxu1 %v5906_v6  ;;  %v5211_v2 = vpack.c.bf16 %v3936_v62, %v3933_v60 }
 0x143   :  { %3923 = vmatmul.mubr.msk.f32.vlgmr.msra.gmra.mrb[30].mxu1 %vm347_vm2, %v6161_v43 }
 0x144   :  { %840 = vmatprep.mubr.f32.mxu1 %v5906_v6  ;;  %5208 = vmatpush3.bf16.msra.mxu1 %v5207_v54  ;;  %v6449_v54 = vld [vmem:[%s8231_s3] sm:$0x7] }
 0x145   :  { %5210 = vmatprep.subr.bf16.mxu1 %v5209_v61  ;;  %v1427_v1 = vrot.slane %v6449_v54, %v1426_v59 }
 0x147   :  { %3924 = vmatmul.mubr.msk.f32.gmra.mrb[32].mxu1 %vm347_vm2, %v6165_v47 }
 0x148   :  { %846 = vmatprep.mubr.f32.mxu1 %v5906_v6 }
 0x14b   :  { %3925 = vmatmul.mubr.msk.f32.gmra.mrb[34].mxu1 %vm347_vm2, %v6169_v51 }
 0x14c   :  { %852 = vmatprep.mubr.f32.mxu1 %v5906_v6 }
 0x14f   :  { %3926 = vmatmul.mubr.msk.f32.gmra.mrb[36].mxu1 %vm347_vm2, %v6173_v55 }
 0x150   :  { %858 = vmatprep.mubr.f32.mxu1 %v5906_v6 }
 0x153   :  { %3927 = vmatmul.mubr.msk.f32.gmra.mrb[38].mxu1 %vm347_vm2, %v6189_v63 }
 0x154   :  { %4869 = vmatprep.mubr.msk.f32.mxu1 %vm5905_vm0, %v5906_v6 }
 0x157   :  { %4870 = vmatmul.mubr.msk.f32.vlgmr.msra.gmra.mrb[60].mxu1 %vm347_vm2, %v6161_v43  ;;  %v3949_v43 = vld [vmem:[%s8230_s2 + $0xc0] sm:$0xff] }
 0x158   :  { %4872 = vmatprep.mubr.msk.f32.mxu1 %vm5905_vm0, %v5906_v6  ;;  %5212 = vmatpush1.bf16.msra.mxu1 %v5211_v2 }
 0x159   :  { %5217 = vmatprep.subr.bf16.mxu1 %v5216_v4 }
 0x15b   :  { %4873 = vmatmul.mubr.msk.f32.gmra.mrb[62].mxu1 %vm347_vm2, %v6165_v47  ;;  %v3952_v47 = vld [vmem:[%s8230_s2 + $0xd8] sm:$0xff] }
 0x15c   :  { %4875 = vmatprep.mubr.msk.f32.mxu1 %vm5905_vm0, %v5906_v6 }
 0x15f   :  { %4876 = vmatmul.mubr.msk.f32.gmra.mrb[64].mxu1 %vm347_vm2, %v6169_v51  ;;  %v5218_v51 = vpack.c.bf16 %v3952_v47, %v3949_v43 }
 0x160   :  { %4878 = vmatprep.mubr.msk.f32.mxu1 %vm5905_vm0, %v5906_v6 }
 0x163   :  { %4879 = vmatmul.mubr.msk.f32.gmra.mrb[66].mxu1 %vm347_vm2, %v6173_v55 }
 0x164   :  { %4881 = vmatprep.mubr.msk.f32.mxu1 %vm5905_vm0, %v5906_v6 }
 0x167   :  { %4882 = vmatmul.mubr.msk.f32.gmra.mrb[68].mxu1 %vm347_vm2, %v6189_v63 }
 0x168   :  { %1056 = vmatprep.mubr.f32.mxu1 %v5906_v6 }
 0x16b   :  { %3939 = vmatmul.mubr.msk.f32.vlgmr.msra.gmra.mrb[30].mxu1 %vm347_vm2, %v6197_v9 }
 0x16c   :  { %1062 = vmatprep.mubr.f32.mxu1 %v5906_v6  ;;  %5219 = vmatpush1.bf16.msra.mxu1 %v5218_v51 }
 0x16d   :  { %5231 = vmatprep.subr.bf16.mxu1 %v5904_v3 }
 0x16f   :  { %3940 = vmatmul.mubr.msk.f32.gmra.mrb[32].mxu1 %vm347_vm2, %v6205_v14 }
 0x170   :  { %1068 = vmatprep.mubr.f32.mxu1 %v5906_v6 }
 0x173   :  { %3941 = vmatmul.mubr.msk.f32.gmra.mrb[34].mxu1 %vm347_vm2, %v6213_v18 }
 0x174   :  { %1074 = vmatprep.mubr.f32.mxu1 %v5906_v6 }
 0x177   :  { %3942 = vmatmul.mubr.msk.f32.gmra.mrb[36].mxu1 %vm347_vm2, %v6221_v22 }
 0x178   :  { %1080 = vmatprep.mubr.f32.mxu1 %v5906_v6 }
 0x17b   :  { %3943 = vmatmul.mubr.msk.f32.gmra.mrb[38].mxu1 %vm347_vm2, %v6235_v28 }
 0x17c   :  { %1278 = vmatprep.mubr.f32.mxu1 %v5906_v6 }
 0x17f   :  { %3955 = vmatmul.mubr.msk.f32.vlgmr.msra.gmra.mrb[30].mxu1 %vm347_vm2, %v6244_v32 }
 0x180   :  { %1284 = vmatprep.mubr.f32.mxu1 %v5906_v6 }
 0x183   :  { %3956 = vmatmul.mubr.msk.f32.gmra.mrb[32].mxu1 %vm347_vm2, %v6254_v34 }
 0x184   :  { %1290 = vmatprep.mubr.f32.mxu1 %v5906_v6 }
 0x187   :  { %3957 = vmatmul.mubr.msk.f32.gmra.mrb[34].mxu1 %vm347_vm2, %v6263_v36 }
 0x188   :  { %1296 = vmatprep.mubr.f32.mxu1 %v5906_v6 }
 0x18b   :  { %3958 = vmatmul.mubr.msk.f32.gmra.mrb[36].mxu1 %vm347_vm2, %v6272_v38 }
 0x18c   :  { %1302 = vmatprep.mubr.f32.mxu1 %v5906_v6 }
 0x18f   :  { %3959 = vmatmul.mubr.msk.f32.gmra.mrb[38].mxu1 %vm347_vm2, %v6293_v48 }
 0x190   :  { %4932 = vmatprep.mubr.msk.f32.mxu1 %vm5905_vm0, %v5906_v6 }
 0x1c6   :  { %v1153_v55 = vpop.f32.mrb[20].mxu0 }
 0x1c7   :  { %v4890_v63 = vpop.f32.mrb[21].mxu0 }
 0x1ca   :  { %v1158_v5 = vpop.f32.mrb[22].mxu0 }
 0x1cb   :  { %v4893_v7 = vpop.f32.mrb[23].mxu0 }
 0x1ce   :  { %v1163_v8 = vpop.f32.mrb[24].mxu0 }
 0x1cf   :  { %v4896_v9 = vpop.f32.mrb[25].mxu0 }
 0x1d2   :  { %v6439_v10 = vpop.f32.mrb[26].mxu0 }
 0x1d3   :  { %v4899_v11 = vpop.f32.mrb[27].mxu0 }
 0x1d6   :  { %v6441_v12 = vpop.f32.mrb[28].mxu0 }
 0x1d7   :  { %v4902_v13 = vpop.f32.mrb[29].mxu0 }
 0x1da   :  { %v524_v14 = vpop.f32.mrb[40].mxu1  ;;  %v1375_v15 = vpop.f32.mrb[30].mxu0 }
 0x1db   :  { %v4833_v16 = vpop.f32.mrb[41].mxu1  ;;  %v4909_v17 = vpop.f32.mrb[31].mxu0 }
 0x1de   :  { %v529_v18 = vpop.f32.mrb[42].mxu1  ;;  %v1380_v19 = vpop.f32.mrb[32].mxu0 }
 0x1df   :  { %v4836_v20 = vpop.f32.mrb[43].mxu1  ;;  %v4912_v21 = vpop.f32.mrb[33].mxu0 }
 0x1e2   :  { %v534_v22 = vpop.f32.mrb[44].mxu1  ;;  %v1385_v23 = vpop.f32.mrb[34].mxu0 }
 0x1e3   :  { %v4839_v24 = vpop.f32.mrb[45].mxu1  ;;  %v4915_v25 = vpop.f32.mrb[35].mxu0 }
 0x1e6   :  { %v539_v26 = vpop.f32.mrb[46].mxu1  ;;  %v1390_v27 = vpop.f32.mrb[36].mxu0 }
 0x1e7   :  { %v4842_v28 = vpop.f32.mrb[47].mxu1  ;;  %v4918_v29 = vpop.f32.mrb[37].mxu0 }
 0x1ea   :  { %v544_v30 = vpop.f32.mrb[48].mxu1  ;;  %v1395_v31 = vpop.f32.mrb[38].mxu0 }
 0x1eb   :  { %v4845_v32 = vpop.f32.mrb[49].mxu1  ;;  %v4921_v33 = vpop.f32.mrb[39].mxu0 }
 0x1ec   :  { %v4009_v33 = vld [vmem:[%s8233_s5 + $0x250] sm:$0xff] }
 0x202   :  { %v724_v34 = vpop.f32.mrb[50].mxu1 }
 0x203   :  { %v725_v35 = vadd.f32 %v724_v34, %v524_v14  ;;  %v4852_v36 = vpop.f32.mrb[51].mxu1  ;;  %v4010_v34 = vld [vmem:[%s8233_s5 + $0x258] sm:$0xff] }
 0x204   :  { %v5273_v36 = vpack.c.bf16 %v4010_v34, %v4009_v33  ;;  %v3977_v34 = vld [vmem:[%s8233_s5 + $0x150] sm:$0xff] }
 0x206   :  { %v729_v37 = vpop.f32.mrb[52].mxu1 }
 0x207   :  { %v730_v38 = vadd.f32 %v729_v37, %v529_v18  ;;  %v4855_v39 = vpop.f32.mrb[53].mxu1  ;;  %v4011_v37 = vld [vmem:[%s8233_s5 + $0x260] sm:$0xff] }
 0x208   :  { %v1418_v39 = vsub.s32 0, %v6443_v58 }
 0x20a   :  { %v734_v40 = vpop.f32.mrb[54].mxu1 }
 0x20b   :  { %v735_v41 = vadd.f32 %v734_v40, %v534_v22  ;;  %v4858_v44 = vpop.f32.mrb[55].mxu1 }
 0x20c   :  { %v4013_v44 = vld [vmem:[%s8233_s5 + $0x270] sm:$0xff] }
 0x20e   :  { %v739_v45 = vpop.f32.mrb[56].mxu1 }
 0x20f   :  { %v740_v48 = vadd.f32 %v739_v45, %v539_v26  ;;  %v4861_v49 = vpop.f32.mrb[57].mxu1  ;;  %v4014_v45 = vld [vmem:[%s8233_s5 + $0x278] sm:$0xff] }
 0x210   :  { %v1419_v49 = vrot.slane %v6449_v54, %v1418_v39 }
 0x212   :  { %v744_v52 = vpop.f32.mrb[58].mxu1 }
 0x213   :  { %v745_v53 = vadd.f32 %v744_v52, %v544_v30  ;;  %v4864_v56 = vpop.f32.mrb[59].mxu1  ;;  %v6520_v52 = vld [vmem:[%s8232_s4 + $0x18] sm:$0xff] }
 0x22a   :  { %v931_v42 = vpop.f32.mrb[60].mxu1 }
 0x22b   :  { %v957_v46 = vadd.f32 %v931_v42, %v725_v35  ;;  %v4871_v50 = vpop.f32.mrb[61].mxu1  ;;  %v6483_v35 = vld [vmem:[%s8232_s4 + $0x8] sm:$0xff] }
 0x22d   :  { %v1179_v61 = vadd.f32 %v1153_v55, %v957_v46 }
 0x22e   :  { %v936_v60 = vpop.f32.mrb[62].mxu1 }
 0x22f   :  { %v960_v62 = vadd.f32 %v936_v60, %v730_v38  ;;  %v1401_v0 = vadd.f32 %v1375_v15, %v1179_v61  ;;  %v4874_v2 = vpop.f32.mrb[63].mxu1  ;;  %v4012_v38 = vld [vmem:[%s8233_s5 + $0x268] sm:$0xff] }
 0x230   :  { %v5276_v40 = vpack.c.bf16 %v4012_v38, %v4011_v37  ;;  %v3995_v37 = vld [vmem:[%s8233_s5 + $0x1e0] sm:$0xff]  ;;  %v3996_v38 = vld [vmem:[%s8233_s5 + $0x1e8] sm:$0xff] }
 0x231   :  { %v1182_v4 = vadd.f32 %v1158_v5, %v960_v62  ;;  %v1433_v47 = vadd.f32 %v1427_v1, %v1401_v0 }
 0x232   :  { %v941_v43 = vpop.f32.mrb[64].mxu1 }
 0x233   :  { %v963_v51 = vadd.f32 %v941_v43, %v735_v41  ;;  %v1404_v63 = vadd.f32 %v1380_v19, %v1182_v4  ;;  %v4877_v7 = vpop.f32.mrb[65].mxu1  ;;  %v1448_v14 = vmax.f32 %v1433_v47, 0.0  ;;  %v1422_v41 = vsub.s32 1, %v6443_v58 }
 0x235   :  { %v1436_v9 = vadd.f32 %v1427_v1, %v1404_v63  ;;  %v1185_v11 = vadd.f32 %v1163_v8, %v963_v51  ;;  %v1423_v57 = vrot.slane %v6449_v54, %v1422_v41  ;;  %v6534_v54 = vld [vmem:[%s8232_s4 + $0x20] sm:$0xff] }
 0x236   :  { %v946_v13 = vpop.f32.mrb[66].mxu1 }
 0x237   :  { %v1451_v16 = vmax.f32 %v1436_v9, 0.0  ;;  %v966_v55 = vadd.f32 %v946_v13, %v740_v48  ;;  %v1407_v17 = vadd.f32 %v1385_v23, %v1185_v11  ;;  %v4880_v18 = vpop.f32.mrb[67].mxu1  ;;  %v6508_v48 = vld [vmem:[%s8232_s4 + $0x10] sm:$0xff] }
 0x239   :  { %v5232_v15 = vpack.c.bf16 %v1451_v16, %v1448_v14  ;;  %v1188_v20 = vadd.f32 %v6439_v10, %v966_v55  ;;  %v1439_v22 = vadd.f32 %v1427_v1, %v1407_v17  ;;  %v4007_v10 = vld [vmem:[%s8233_s5 + $0x240] sm:$0xff] }
 0x23a   :  { %v951_v21 = vpop.f32.mrb[68].mxu1 }
 0x23b   :  { %v969_v24 = vadd.f32 %v951_v21, %v745_v53  ;;  %v1410_v5 = vadd.f32 %v1390_v27, %v1188_v20  ;;  %v4883_v25 = vpop.f32.mrb[69].mxu1  ;;  %5233 = vmatpush3.bf16.msra.mxu1 %v5232_v15  ;;  %v1454_v26 = vmax.f32 %v1439_v22, 0.0  ;;  %v4008_v27 = vld [vmem:[%s8233_s5 + $0x248] sm:$0xff]  ;;  %v5279_v53 = vpack.c.bf16 %v4014_v45, %v4013_v44  ;;  %v3979_v45 = vld [vmem:[%s8233_s5 + $0x160] sm:$0xff] }
 0x23c   :  { %5234 = vmatprep.subr.bf16.mxu1 %v5904_v3  ;;  %v5245_v44 = vpack.c.bf16 %v3996_v38, %v3995_v37  ;;  %v4034_v37 = vld [vmem:[%s8233_s5 + $0x308] sm:$0xff] }
 0x23d   :  { %v1442_v19 = vadd.f32 %v1427_v1, %v1410_v5  ;;  %v1191_v8 = vadd.f32 %v6441_v12, %v969_v24  ;;  %v6467_v12 = vld [vmem:[%s8232_s4] sm:$0xff] }
 0x23f   :  { %v1457_v28 = vmax.f32 %v1442_v19, 0.0  ;;  %v1413_v29 = vadd.f32 %v1395_v31, %v1191_v8  ;;  %v5270_v31 = vpack.c.bf16 %v4008_v27, %v4007_v10  ;;  %v3991_v8 = vld [vmem:[%s8233_s5 + $0x1c0] sm:$0xff]  ;;  %v3994_v10 = vld [vmem:[%s8233_s5 + $0x1d8] sm:$0xff] }
 0x241   :  { %v5235_v30 = vpack.c.bf16 %v1457_v28, %v1454_v26  ;;  %v1445_v23 = vadd.f32 %v1427_v1, %v1413_v29  ;;  %v3992_v26 = vld [vmem:[%s8233_s5 + $0x1c8] sm:$0xff]  ;;  %v3975_v29 = vld [vmem:[%s8233_s5 + $0x140] sm:$0xff] }
 0x242   :  { %v5237_v27 = vpack.c.bf16 %v3992_v26, %v3991_v8  ;;  %v1701_v8 = vld [vmem:[%s8233_s5 + $0x110] sm:$0xff]  ;;  %v1702_v26 = vld [vmem:[%s8233_s5 + $0x118] sm:$0xff] }
 0x243   :  { %5236 = vmatpush3.bf16.msra.mxu1 %v5235_v30  ;;  %v1460_v32 = vmax.f32 %v1445_v23, 0.0  ;;  %v3976_v30 = vld [vmem:[%s8233_s5 + $0x148] sm:$0xff]  ;;  %v3993_v23 = vld [vmem:[%s8233_s5 + $0x1d0] sm:$0xff] }
 0x244   :  { %4930 = vmatprep.subr.mxu1 %v5906_v6  ;;  %v5241_v33 = vpack.c.bf16 %v3994_v10, %v3993_v23  ;;  %v1703_v23 = vld [vmem:[%s8233_s5 + $0x120] sm:$0xff]  ;;  %v1704_v10 = vld [vmem:[%s8233_s5 + $0x128] sm:$0xff] }
 0x247   :  { %4931 = vmatpush3.msra.mxu1 %v1460_v32 }
 0x248   :  { %4933 = vmatmul.mubr.msk.f32.vlgmr.msra.gmra.mrb[70].mxu1 %vm1466_vm3, %v6467_v12  ;;  %5269 = vmatprep.subr.bf16.mxu1 %v5904_v3 }
 0x249   :  { %4935 = vmatprep.mubr.msk.f32.mxu1 %vm5905_vm0, %v5906_v6  ;;  %5271 = vmatpush3.bf16.msra.mxu1 %v5270_v31  ;;  %v5239_v31 = vpack.c.bf16 %v3976_v30, %v3975_v29  ;;  %v5317_v30 = vpack.c.bf16 %v1702_v26, %v1701_v8  ;;  %v1685_v8 = vld [vmem:[%s8233_s5 + $0x90] sm:$0xff]  ;;  %v1686_v26 = vld [vmem:[%s8233_s5 + $0x98] sm:$0xff] }
 0x24a   :  { %5272 = vmatprep.subr.bf16.mxu1 %v5904_v3 }
 0x24c   :  { %4936 = vmatmul.mubr.msk.f32.gmra.mrb[72].mxu1 %vm1466_vm3, %v6483_v35 }
 0x24d   :  { %4938 = vmatprep.mubr.msk.f32.mxu1 %vm5905_vm0, %v5906_v6  ;;  %5274 = vmatpush3.bf16.msra.mxu1 %v5273_v36  ;;  %v3978_v36 = vld [vmem:[%s8233_s5 + $0x158] sm:$0xff] }
 0x24e   :  { %5275 = vmatprep.subr.bf16.mxu1 %v5904_v3 }
 0x250   :  { %4939 = vmatmul.mubr.msk.f32.gmra.mrb[74].mxu1 %vm1466_vm3, %v6508_v48 }
 0x251   :  { %4941 = vmatprep.mubr.msk.f32.mxu1 %vm5905_vm0, %v5906_v6  ;;  %5277 = vmatpush3.bf16.msra.mxu1 %v5276_v40  ;;  %v5243_v40 = vpack.c.bf16 %v3978_v36, %v3977_v34  ;;  %v1706_v34 = vld [vmem:[%s8233_s5 + $0x138] sm:$0xff]  ;;  %v4033_v36 = vld [vmem:[%s8233_s5 + $0x300] sm:$0xff] }
 0x252   :  { %v1280_v56 = vpop.f32.mrb[30].mxu1  ;;  %5278 = vmatprep.subr.bf16.mxu1 %v5904_v3 }
 0x253   :  { %v1282_v42 = vpop.f32.mrb[31].mxu1  ;;  %v1431_v46 = vadd.f32 %v1419_v49, %v1280_v56 }
 0x254   :  { %4942 = vmatmul.mubr.msk.f32.gmra.mrb[76].mxu1 %vm1466_vm3, %v6520_v52  ;;  %v1432_v50 = vadd.f32 %v1423_v57, %v1282_v42  ;;  %v3981_v42 = vld [vmem:[%s8233_s5 + $0x170] sm:$0xff] }
 0x255   :  { %4944 = vmatprep.mubr.msk.f32.mxu1 %vm5905_vm0, %v5906_v6  ;;  %5280 = vmatpush3.bf16.msra.mxu1 %v5279_v53  ;;  %v1446_v1 = vmax.f32 %v1431_v46, 0.0  ;;  %v3997_v53 = vld [vmem:[%s8233_s5 + $0x1f0] sm:$0xff]  ;;  %v3982_v46 = vld [vmem:[%s8233_s5 + $0x178] sm:$0xff] }
 0x256   :  { %v1286_v61 = vpop.f32.mrb[32].mxu1  ;;  %5313 = vmatprep.subr.bf16.mxu1 %v5904_v3  ;;  %v1447_v4 = vmax.f32 %v1432_v50, 0.0  ;;  %v3999_v50 = vld [vmem:[%s8233_s5 + $0x200] sm:$0xff] }
 0x257   :  { %v1434_v60 = vadd.f32 %v1419_v49, %v1286_v61  ;;  %v1288_v62 = vpop.f32.mrb[33].mxu1 }
 0x258   :  { %v1435_v0 = vadd.f32 %v1423_v57, %v1288_v62  ;;  %4945 = vmatmul.mubr.msk.f32.gmra.mrb[78].mxu1 %vm1466_vm3, %v6534_v54 }
 0x259   :  { %v1449_v2 = vmax.f32 %v1434_v60, 0.0  ;;  %4963 = vmatprep.mubr.msk.f32.mxu1 %vm5905_vm0, %v5906_v6  ;;  %v3984_v60 = vld [vmem:[%s8233_s5 + $0x188] sm:$0xff] }
 0x25a   :  { %v1450_v43 = vmax.f32 %v1435_v0, 0.0  ;;  %v1292_v47 = vpop.f32.mrb[34].mxu1  ;;  %v4002_v0 = vld [vmem:[%s8233_s5 + $0x218] sm:$0xff] }
 0x25b   :  { %v5225_v51 = vpack.c.bf16 %v1449_v2, %v1446_v1  ;;  %v1294_v63 = vpop.f32.mrb[35].mxu1  ;;  %v1437_v9 = vadd.f32 %v1419_v49, %v1292_v47  ;;  %v3985_v1 = vld [vmem:[%s8233_s5 + $0x190] sm:$0xff]  ;;  %v4003_v47 = vld [vmem:[%s8233_s5 + $0x220] sm:$0xff] }
 0x25c   :  { %v5223_v7 = vpack.c.bf16 %v1450_v43, %v1447_v4  ;;  %v1438_v11 = vadd.f32 %v1423_v57, %v1294_v63  ;;  %v3986_v4 = vld [vmem:[%s8233_s5 + $0x198] sm:$0xff]  ;;  %v3987_v63 = vld [vmem:[%s8233_s5 + $0x1a0] sm:$0xff] }
 0x25d   :  { %v1452_v17 = vmax.f32 %v1437_v9, 0.0  ;;  %v5259_v43 = vpack.c.bf16 %v3986_v4, %v3985_v1  ;;  %v3988_v9 = vld [vmem:[%s8233_s5 + $0x1a8] sm:$0xff]  ;;  %v4039_v1 = vld [vmem:[%s8233_s5 + $0x330] sm:$0xff] }
 0x25e   :  { %v1298_v13 = vpop.f32.mrb[36].mxu1  ;;  %5224 = vmatprep.subr.bf16.mxu0 %v5223_v7  ;;  %v1453_v15 = vmax.f32 %v1438_v11, 0.0  ;;  %v5263_v11 = vpack.c.bf16 %v3988_v9, %v3987_v63  ;;  %v4041_v63 = vld [vmem:[%s8233_s5 + $0x340] sm:$0xff] }
 0x25f   :  { %v1440_v14 = vadd.f32 %v1419_v49, %v1298_v13  ;;  %v1300_v16 = vpop.f32.mrb[37].mxu1  ;;  %5226 = vmatpush1.bf16.msra.mxu0 %v5225_v51  ;;  %v4004_v51 = vld [vmem:[%s8233_s5 + $0x228] sm:$0xff]  ;;  %v4005_v13 = vld [vmem:[%s8233_s5 + $0x230] sm:$0xff] }
 0x260   :  { %v1441_v55 = vadd.f32 %v1423_v57, %v1300_v16  ;;  %v5261_v7 = vpack.c.bf16 %v4004_v51, %v4003_v47  ;;  %v4023_v47 = vld [vmem:[%s8233_s5 + $0x2b0] sm:$0xff]  ;;  %v4024_v51 = vld [vmem:[%s8233_s5 + $0x2b8] sm:$0xff] }
 0x261   :  { %v1455_v18 = vmax.f32 %v1440_v14, 0.0  ;;  %v4006_v14 = vld [vmem:[%s8233_s5 + $0x238] sm:$0xff]  ;;  %v5339_v9 = vpack.c.bf16 %v4024_v51, %v4023_v47 }
 0x262   :  { %v1456_v20 = vmax.f32 %v1441_v55, 0.0  ;;  %v1304_v21 = vpop.f32.mrb[38].mxu1  ;;  %v5265_v16 = vpack.c.bf16 %v4006_v14, %v4005_v13  ;;  %v3989_v55 = vld [vmem:[%s8233_s5 + $0x1b0] sm:$0xff]  ;;  %v4025_v13 = vld [vmem:[%s8233_s5 + $0x2c0] sm:$0xff]  ;;  %v4026_v14 = vld [vmem:[%s8233_s5 + $0x2c8] sm:$0xff] }
 0x263   :  { %v5229_v22 = vpack.c.bf16 %v1455_v18, %v1452_v17  ;;  %v1306_v24 = vpop.f32.mrb[39].mxu1  ;;  %v1443_v19 = vadd.f32 %v1419_v49, %v1304_v21  ;;  %v3980_v49 = vld [vmem:[%s8233_s5 + $0x168] sm:$0xff]  ;;  %v3990_v17 = vld [vmem:[%s8233_s5 + $0x1b8] sm:$0xff] }
 0x264   :  { %v5227_v5 = vpack.c.bf16 %v1456_v20, %v1453_v15  ;;  %v1444_v25 = vadd.f32 %v1423_v57, %v1306_v24  ;;  %v5247_v56 = vpack.c.bf16 %v3980_v49, %v3979_v45  ;;  %v5267_v18 = vpack.c.bf16 %v3990_v17, %v3989_v55  ;;  %v1683_v15 = vld [vmem:[%s8233_s5 + $0x80] sm:$0xff]  ;;  %v1684_v20 = vld [vmem:[%s8233_s5 + $0x88] sm:$0xff]  ;;  %v4044_v55 = vld [vmem:[%s8233_s5 + $0x358] sm:$0xff] }
 0x265   :  { %v1458_v32 = vmax.f32 %v1443_v19, 0.0  ;;  %v5281_v21 = vpack.c.bf16 %v1684_v20, %v1683_v15  ;;  %v1700_v24 = vld [vmem:[%s8233_s5 + $0x108] sm:$0xff]  ;;  %v5325_v45 = vpack.c.bf16 %v4034_v37, %v4033_v36  ;;  %v4017_v49 = vld [vmem:[%s8233_s5 + $0x280] sm:$0xff]  ;;  %v5343_v17 = vpack.c.bf16 %v4026_v14, %v4025_v13  ;;  %v4027_v15 = vld [vmem:[%s8233_s5 + $0x2d0] sm:$0xff] }
 0x266   :  { %v1459_v28 = vmax.f32 %v1444_v25, 0.0  ;;  %5228 = vmatprep.subr.bf16.mxu0 %v5227_v5  ;;  %v4028_v20 = vld [vmem:[%s8233_s5 + $0x2d8] sm:$0xff]  ;;  %v5285_v36 = vpack.c.bf16 %v1686_v26, %v1685_v8  ;;  %v1669_v37 = vld [vmem:[%s8233_s5 + $0x10] sm:$0xff] }
 0x267   :  { %5230 = vmatpush1.bf16.msra.mxu0 %v5229_v22  ;;  %v1699_v22 = vld [vmem:[%s8233_s5 + $0x100] sm:$0xff]  ;;  %v1674_v47 = vld [vmem:[%s8233_s5 + $0x38] sm:$0xff]  ;;  %v1677_v26 = vld [vmem:[%s8233_s5 + $0x50] sm:$0xff] }
 0x268   :  { %1490 = vmatprep.subr.mxu0 %v1459_v28  ;;  %v5314_v19 = vpack.c.bf16 %v1700_v24, %v1699_v22  ;;  %v4045_v22 = vld [vmem:[%s8233_s5 + $0x360] sm:$0xff]  ;;  %v4046_v24 = vld [vmem:[%s8233_s5 + $0x368] sm:$0xff]  ;;  %v4093_v13 = vld [vmem:[%s8233_s5 + $0x4d8] sm:$0xff] }
 0x26b   :  { %1491 = vmatpush1.msra.mxu0 %v1458_v32 }
 0x26c   :  { %3965 = vmatmul.mubr.msk.f32.vlgmr.msra.gmra.mrb[40].mxu0 %vm1466_vm3, %v6467_v12  ;;  %5238 = vmatprep.subr.bf16.mxu0 %v5237_v27  ;;  %v3998_v12 = vld [vmem:[%s8233_s5 + $0x1f8] sm:$0xff] }
 0x26d   :  { %1552 = vmatprep.mubr.f32.mxu0 %v5906_v6  ;;  %5240 = vmatpush3.bf16.msra.mxu0 %v5239_v31  ;;  %v5249_v57 = vpack.c.bf16 %v3998_v12, %v3997_v53  ;;  %v5320_v31 = vpack.c.bf16 %v1704_v10, %v1703_v23  ;;  %v4018_v53 = vld [vmem:[%s8233_s5 + $0x288] sm:$0xff]  ;;  %v4035_v12 = vld [vmem:[%s8233_s5 + $0x310] sm:$0xff] }
 0x26e   :  { %5242 = vmatprep.subr.bf16.mxu0 %v5241_v33  ;;  %v1705_v33 = vld [vmem:[%s8233_s5 + $0x130] sm:$0xff]  ;;  %v4030_v23 = vld [vmem:[%s8233_s5 + $0x2e8] sm:$0xff] }
 0x270   :  { %3966 = vmatmul.mubr.msk.f32.gmra.mrb[42].mxu0 %vm1466_vm3, %v6483_v35  ;;  %v5251_v35 = vpack.c.bf16 %v3982_v46, %v3981_v42  ;;  %v5327_v46 = vpack.c.bf16 %v4018_v53, %v4017_v49 }
 0x271   :  { %1558 = vmatprep.mubr.f32.mxu0 %v5906_v6  ;;  %5244 = vmatpush3.bf16.msra.mxu0 %v5243_v40 }
 0x272   :  { %5246 = vmatprep.subr.bf16.mxu0 %v5245_v44  ;;  %v5323_v44 = vpack.c.bf16 %v1706_v34, %v1705_v33  ;;  %v4048_v33 = vld [vmem:[%s8233_s5 + $0x378] sm:$0xff] }
 0x274   :  { %3967 = vmatmul.mubr.msk.f32.gmra.mrb[44].mxu0 %vm1466_vm3, %v6508_v48  ;;  %v4000_v48 = vld [vmem:[%s8233_s5 + $0x208] sm:$0xff] }
 0x275   :  { %1564 = vmatprep.mubr.f32.mxu0 %v5906_v6  ;;  %5248 = vmatpush3.bf16.msra.mxu0 %v5247_v56  ;;  %v5253_v61 = vpack.c.bf16 %v4000_v48, %v3999_v50  ;;  %v4036_v56 = vld [vmem:[%s8233_s5 + $0x318] sm:$0xff]  ;;  %v4019_v50 = vld [vmem:[%s8233_s5 + $0x290] sm:$0xff] }
 0x276   :  { %5250 = vmatprep.subr.bf16.mxu0 %v5249_v57  ;;  %v4020_v48 = vld [vmem:[%s8233_s5 + $0x298] sm:$0xff] }
 0x278   :  { %3968 = vmatmul.mubr.msk.f32.gmra.mrb[46].mxu0 %vm1466_vm3, %v6520_v52  ;;  %v3983_v52 = vld [vmem:[%s8233_s5 + $0x180] sm:$0xff] }
 0x279   :  { %1570 = vmatprep.mubr.f32.mxu0 %v5906_v6  ;;  %5252 = vmatpush3.bf16.msra.mxu0 %v5251_v35  ;;  %v5255_v62 = vpack.c.bf16 %v3984_v60, %v3983_v52  ;;  %v5329_v35 = vpack.c.bf16 %v4036_v56, %v4035_v12  ;;  %v4038_v52 = vld [vmem:[%s8233_s5 + $0x328] sm:$0xff]  ;;  %v5331_v60 = vpack.c.bf16 %v4020_v48, %v4019_v50  ;;  %v4031_v12 = vld [vmem:[%s8233_s5 + $0x2f0] sm:$0xff]  ;;  %v4032_v56 = vld [vmem:[%s8233_s5 + $0x2f8] sm:$0xff] }
 0x27a   :  { %5254 = vmatprep.subr.bf16.mxu0 %v5253_v61  ;;  %v4037_v61 = vld [vmem:[%s8233_s5 + $0x320] sm:$0xff]  ;;  %v1672_v48 = vld [vmem:[%s8233_s5 + $0x28] sm:$0xff] }
 0x27b   :  { %v1671_v50 = vld [vmem:[%s8233_s5 + $0x20] sm:$0xff] }
 0x27c   :  { %3969 = vmatmul.mubr.msk.f32.gmra.mrb[48].mxu0 %vm1466_vm3, %v6534_v54  ;;  %v4001_v54 = vld [vmem:[%s8233_s5 + $0x210] sm:$0xff] }
 0x27d   :  { %5256 = vmatpush3.bf16.msra.mxu0 %v5255_v62  ;;  %v5257_v2 = vpack.c.bf16 %v4002_v0, %v4001_v54  ;;  %v5333_v62 = vpack.c.bf16 %v4038_v52, %v4037_v61  ;;  %v4021_v54 = vld [vmem:[%s8233_s5 + $0x2a0] sm:$0xff]  ;;  %v4022_v0 = vld [vmem:[%s8233_s5 + $0x2a8] sm:$0xff]  ;;  %v1689_v52 = vld [vmem:[%s8233_s5 + $0xb0] sm:$0xff] }
 0x27e   :  { %v5335_v4 = vpack.c.bf16 %v4022_v0, %v4021_v54  ;;  %v4090_v54 = vld [vmem:[%s8233_s5 + $0x4c0] sm:$0xff]  ;;  %v4091_v0 = vld [vmem:[%s8233_s5 + $0x4c8] sm:$0xff] }
 0x27f   :  { %5258 = vmatprep.subr.bf16.mxu0 %v5257_v2  ;;  %v4040_v2 = vld [vmem:[%s8233_s5 + $0x338] sm:$0xff] }
 0x281   :  { %5260 = vmatpush3.bf16.msra.mxu0 %v5259_v43  ;;  %v5337_v43 = vpack.c.bf16 %v4040_v2, %v4039_v1  ;;  %v5291_v1 = vpack.c.bf16 %v1672_v48, %v1671_v50  ;;  %v1681_v48 = vld [vmem:[%s8233_s5 + $0x70] sm:$0xff] }
 0x282   :  { %5262 = vmatprep.subr.bf16.mxu0 %v5261_v7  ;;  %v4042_v7 = vld [vmem:[%s8233_s5 + $0x348] sm:$0xff] }
 0x285   :  { %5264 = vmatpush3.bf16.msra.mxu0 %v5263_v11  ;;  %v5341_v11 = vpack.c.bf16 %v4042_v7, %v4041_v63  ;;  %v1691_v63 = vld [vmem:[%s8233_s5 + $0xc0] sm:$0xff]  ;;  %v1692_v7 = vld [vmem:[%s8233_s5 + $0xc8] sm:$0xff] }
 0x286   :  { %5266 = vmatprep.subr.bf16.mxu0 %v5265_v16  ;;  %v4043_v16 = vld [vmem:[%s8233_s5 + $0x350] sm:$0xff] }
 0x289   :  { %5268 = vmatpush3.bf16.msra.mxu0 %v5267_v18  ;;  %v5345_v18 = vpack.c.bf16 %v4044_v55, %v4043_v16  ;;  %v5297_v55 = vpack.c.bf16 %v1692_v7, %v1691_v63 }
 0x28a   :  { %5282 = vmatprep.subr.bf16.mxu0 %v5281_v21 }
 0x31b   :  { %v1643_v5 = vpop.f32.mrb[70].mxu1 }
 0x31c   :  { %v4934_v25 = vpop.f32.mrb[71].mxu1 }
 0x31d   :  { %v1667_v25 = vld [vmem:[%s8233_s5] sm:$0xff] }
 0x31f   :  { %v1648_v28 = vpop.f32.mrb[72].mxu1 }
 0x320   :  { %4964 = vmatmul.mubr.msk.f32.vlgmr.msra.gmra.mrb[80].mxu1 %vm1748_vm4, %v1648_v28  ;;  %v4937_v29 = vpop.f32.mrb[73].mxu1  ;;  %v5347_v28 = vpack.c.bf16 %v4028_v20, %v4027_v15  ;;  %v1693_v20 = vld [vmem:[%s8233_s5 + $0xd0] sm:$0xff] }
 0x321   :  { %5315 = vmatpush3.bf16.msra.mxu1 %v5314_v19  ;;  %4982 = vmatprep.mubr.msk.f32.mxu1 %vm5905_vm0, %v5906_v6  ;;  %v1668_v19 = vld [vmem:[%s8233_s5 + $0x8] sm:$0xff]  ;;  %v5349_v29 = vpack.c.bf16 %v4046_v24, %v4045_v22  ;;  %v1694_v22 = vld [vmem:[%s8233_s5 + $0xd8] sm:$0xff] }
 0x322   :  { %5316 = vmatprep.subr.bf16.mxu1 %v5904_v3  ;;  %v5301_v8 = vpack.c.bf16 %v1694_v22, %v1693_v20  ;;  %v4105_v20 = vld [vmem:[%s8233_s5 + $0x530] sm:$0xff]  ;;  %v4106_v22 = vld [vmem:[%s8233_s5 + $0x538] sm:$0xff] }
 0x323   :  { %v6678_v27 = vpop.f32.mrb[74].mxu1 }
 0x324   :  { %v4940_v32 = vpop.f32.mrb[75].mxu1 }
 0x325   :  { %5318 = vmatpush3.bf16.msra.mxu1 %v5317_v30  ;;  %v4029_v30 = vld [vmem:[%s8233_s5 + $0x2e0] sm:$0xff]  ;;  %v5283_v32 = vpack.c.bf16 %v1668_v19, %v1667_v25  ;;  %v4095_v25 = vld [vmem:[%s8233_s5 + $0x4e8] sm:$0xff] }
 0x326   :  { %5319 = vmatprep.subr.bf16.mxu1 %v5904_v3  ;;  %v5351_v49 = vpack.c.bf16 %v4030_v23, %v4029_v30  ;;  %v1696_v30 = vld [vmem:[%s8233_s5 + $0xe8] sm:$0xff] }
 0x327   :  { %v6693_v38 = vpop.f32.mrb[76].mxu1 }
 0x328   :  { %v4943_v40 = vpop.f32.mrb[77].mxu1 }
 0x329   :  { %5321 = vmatpush3.bf16.msra.mxu1 %v5320_v31  ;;  %v4047_v31 = vld [vmem:[%s8233_s5 + $0x370] sm:$0xff]  ;;  %v1670_v40 = vld [vmem:[%s8233_s5 + $0x18] sm:$0xff] }
 0x32a   :  { %5322 = vmatprep.subr.bf16.mxu1 %v5904_v3  ;;  %v5353_v53 = vpack.c.bf16 %v4048_v33, %v4047_v31  ;;  %v4115_v33 = vld [vmem:[%s8233_s5 + $0x580] sm:$0xff] }
 0x32b   :  { %v6708_v57 = vpop.f32.mrb[78].mxu1 }
 0x32c   :  { %v4946_v42 = vpop.f32.mrb[79].mxu1 }
 0x32d   :  { %5324 = vmatpush3.bf16.msra.mxu1 %v5323_v44  ;;  %v1687_v44 = vld [vmem:[%s8233_s5 + $0xa0] sm:$0xff]  ;;  %v5287_v42 = vpack.c.bf16 %v1670_v40, %v1669_v37  ;;  %v1680_v40 = vld [vmem:[%s8233_s5 + $0x68] sm:$0xff] }
 0x32e   :  { %5326 = vmatprep.subr.bf16.mxu1 %v5325_v45  ;;  %v1688_v45 = vld [vmem:[%s8233_s5 + $0xa8] sm:$0xff]  ;;  %v1679_v37 = vld [vmem:[%s8233_s5 + $0x60] sm:$0xff] }
 0x330   :  { %4983 = vmatmul.mubr.msk.f32.vlgmr.msra.gmra.mrb[82].mxu1 %vm1748_vm4, %v1643_v5 }
 0x331   :  { %5328 = vmatpush3.bf16.msra.mxu1 %v5327_v46 }
 0x332   :  { %5330 = vmatprep.subr.bf16.mxu1 %v5329_v35  ;;  %v5289_v35 = vpack.c.bf16 %v1688_v45, %v1687_v44  ;;  %v1697_v44 = vld [vmem:[%s8233_s5 + $0xf0] sm:$0xff]  ;;  %v1698_v45 = vld [vmem:[%s8233_s5 + $0xf8] sm:$0xff] }
 0x333   :  { %v5309_v50 = vpack.c.bf16 %v1698_v45, %v1697_v44  ;;  %v4110_v44 = vld [vmem:[%s8233_s5 + $0x558] sm:$0xff] }
 0x335   :  { %5332 = vmatpush3.bf16.msra.mxu1 %v5331_v60  ;;  %v1690_v60 = vld [vmem:[%s8233_s5 + $0xb8] sm:$0xff] }
 0x336   :  { %5334 = vmatprep.subr.bf16.mxu1 %v5333_v62  ;;  %v5355_v62 = vpack.c.bf16 %v4032_v56, %v4031_v12  ;;  %v4099_v12 = vld [vmem:[%s8233_s5 + $0x500] sm:$0xff]  ;;  %v4100_v56 = vld [vmem:[%s8233_s5 + $0x508] sm:$0xff] }
 0x339   :  { %5336 = vmatpush3.bf16.msra.mxu1 %v5335_v4  ;;  %v5293_v4 = vpack.c.bf16 %v1690_v60, %v1689_v52  ;;  %v5415_v52 = vpack.c.bf16 %v4100_v56, %v4099_v12  ;;  %v4058_v56 = vld [vmem:[%s8233_s5 + $0x3c0] sm:$0xff] }
 0x33a   :  { %5338 = vmatprep.subr.bf16.mxu1 %v5337_v43  ;;  %v1673_v43 = vld [vmem:[%s8233_s5 + $0x30] sm:$0xff] }
 0x33b   :  { %v5295_v14 = vpack.c.bf16 %v1674_v47, %v1673_v43  ;;  %v4049_v43 = vld [vmem:[%s8233_s5 + $0x380] sm:$0xff]  ;;  %v4050_v47 = vld [vmem:[%s8233_s5 + $0x388] sm:$0xff] }
 0x33d   :  { %5340 = vmatpush3.bf16.msra.mxu1 %v5339_v9  ;;  %v5402_v9 = vpack.c.bf16 %v4091_v0, %v4090_v54  ;;  %v4102_v54 = vld [vmem:[%s8233_s5 + $0x518] sm:$0xff] }
 0x33e   :  { %5342 = vmatprep.subr.bf16.mxu1 %v5341_v11  ;;  %v4092_v11 = vld [vmem:[%s8233_s5 + $0x4d0] sm:$0xff] }
 0x33f   :  { %v6765_v21 = vpop.f32.mrb[40].mxu0  ;;  %v5405_v24 = vpack.c.bf16 %v4093_v13, %v4092_v11  ;;  %v4104_v11 = vld [vmem:[%s8233_s5 + $0x528] sm:$0xff]  ;;  %v5358_v13 = vpack.c.bf16 %v4050_v47, %v4049_v43  ;;  %v4078_v43 = vld [vmem:[%s8233_s5 + $0x460] sm:$0xff] }
 0x340   :  { %v1550_v5 = vpop.f32.mrb[41].mxu0  ;;  %v4079_v47 = vld [vmem:[%s8233_s5 + $0x468] sm:$0xff] }
 0x341   :  { %5344 = vmatpush3.bf16.msra.mxu1 %v5343_v17  ;;  %v1675_v17 = vld [vmem:[%s8233_s5 + $0x40] sm:$0xff] }
 0x342   :  { %5346 = vmatprep.subr.bf16.mxu1 %v5345_v18  ;;  %v1676_v18 = vld [vmem:[%s8233_s5 + $0x48] sm:$0xff] }
 0x343   :  { %v1554_v10 = vpop.f32.mrb[42].mxu0  ;;  %v5299_v19 = vpack.c.bf16 %v1676_v18, %v1675_v17  ;;  %v4052_v17 = vld [vmem:[%s8233_s5 + $0x398] sm:$0xff] }
 0x344   :  { %v1556_v34 = vpop.f32.mrb[43].mxu0 }
 0x345   :  { %1816 = vmatprep.mubr.f32.mxu0 %v1556_v34  ;;  %5348 = vmatpush3.bf16.msra.mxu1 %v5347_v28  ;;  %v1678_v28 = vld [vmem:[%s8233_s5 + $0x58] sm:$0xff]  ;;  %v4116_v34 = vld [vmem:[%s8233_s5 + $0x588] sm:$0xff] }
 0x346   :  { %1817 = vmatmul.mubr.f32.vlgmr.msra.gmra.mrb[50].mxu0 %v1554_v10  ;;  %5350 = vmatprep.subr.bf16.mxu1 %v5349_v29  ;;  %v1695_v29 = vld [vmem:[%s8233_s5 + $0xe0] sm:$0xff]  ;;  %v4096_v10 = vld [vmem:[%s8233_s5 + $0x4f0] sm:$0xff]  ;;  %v5303_v31 = vpack.c.bf16 %v1678_v28, %v1677_v26 }
 0x347   :  { %5284 = vmatpush3.bf16.msra.mxu0 %v5283_v32  ;;  %1959 = vmatprep.mubr.f32.mxu0 %v1550_v5  ;;  %v1560_v46 = vpop.f32.mrb[44].mxu0  ;;  %v4094_v5 = vld [vmem:[%s8233_s5 + $0x4e0] sm:$0xff]  ;;  %v4097_v32 = vld [vmem:[%s8233_s5 + $0x4f8] sm:$0xff] }
 0x348   :  { %5286 = vmatprep.subr.bf16.mxu0 %v5285_v36  ;;  %v1562_v61 = vpop.f32.mrb[45].mxu0  ;;  %v5408_v23 = vpack.c.bf16 %v4095_v25, %v4094_v5  ;;  %v5305_v36 = vpack.c.bf16 %v1696_v30, %v1695_v29  ;;  %v4123_v5 = vld [vmem:[%s8233_s5 + $0x5c0] sm:$0xff]  ;;  %v4108_v29 = vld [vmem:[%s8233_s5 + $0x548] sm:$0xff] }
 0x349   :  { %5352 = vmatpush3.bf16.msra.mxu1 %v5351_v49  ;;  %2143 = vmatprep.mubr.f32.mxu1 %v1562_v61  ;;  %v5411_v49 = vpack.c.bf16 %v4097_v32, %v4096_v10  ;;  %v1682_v61 = vld [vmem:[%s8233_s5 + $0x78] sm:$0xff]  ;;  %v4053_v25 = vld [vmem:[%s8233_s5 + $0x3a0] sm:$0xff]  ;;  %v4055_v32 = vld [vmem:[%s8233_s5 + $0x3b0] sm:$0xff] }
 0x34a   :  { %5354 = vmatprep.subr.bf16.mxu1 %v5353_v53  ;;  %v5413_v53 = vpack.c.bf16 %v4116_v34, %v4115_v33  ;;  %v5311_v0 = vpack.c.bf16 %v1682_v61, %v1681_v48  ;;  %v4107_v28 = vld [vmem:[%s8233_s5 + $0x540] sm:$0xff]  ;;  %v4126_v10 = vld [vmem:[%s8233_s5 + $0x5d8] sm:$0xff]  ;;  %v4075_v34 = vld [vmem:[%s8233_s5 + $0x448] sm:$0xff] }
 0x34b   :  { %5288 = vmatpush3.bf16.msra.mxu0 %v5287_v42  ;;  %v6833_v2 = vpop.f32.mrb[46].mxu0  ;;  %v5307_v42 = vpack.c.bf16 %v1680_v40, %v1679_v37  ;;  %v4074_v33 = vld [vmem:[%s8233_s5 + $0x440] sm:$0xff]  ;;  %v4109_v40 = vld [vmem:[%s8233_s5 + $0x550] sm:$0xff] }
 0x34c   :  { %5290 = vmatprep.subr.bf16.mxu0 %v5289_v35  ;;  %v6841_v51 = vpop.f32.mrb[47].mxu0  ;;  %v4118_v35 = vld [vmem:[%s8233_s5 + $0x598] sm:$0xff]  ;;  %v5369_v12 = vpack.c.bf16 %v4075_v34, %v4074_v33  ;;  %v4111_v61 = vld [vmem:[%s8233_s5 + $0x560] sm:$0xff] }
 0x34d   :  { %5356 = vmatpush3.bf16.msra.mxu1 %v5355_v62  ;;  %v4101_v62 = vld [vmem:[%s8233_s5 + $0x510] sm:$0xff]  ;;  %v4070_v34 = vld [vmem:[%s8233_s5 + $0x420] sm:$0xff] }
 0x34e   :  { %5401 = vmatprep.subr.bf16.mxu1 %v5904_v3  ;;  %v5419_v63 = vpack.c.bf16 %v4102_v54, %v4101_v62  ;;  %v4129_v62 = vld [vmem:[%s8233_s5 + $0x5f0] sm:$0xff]  ;;  %v4130_v54 = vld [vmem:[%s8233_s5 + $0x5f8] sm:$0xff] }
 0x34f   :  { %5292 = vmatpush3.bf16.msra.mxu0 %v5291_v1  ;;  %v6856_v16 = vpop.f32.mrb[48].mxu0  ;;  %v4119_v1 = vld [vmem:[%s8233_s5 + $0x5a0] sm:$0xff] }
 0x350   :  { %5294 = vmatprep.subr.bf16.mxu0 %v5293_v4  ;;  %2144 = vmatmul.mubr.f32.vlgmr.msra.gmra.mrb[84].mxu1 %v1560_v46  ;;  %v1574_v15 = vpop.f32.mrb[49].mxu0  ;;  %v4117_v46 = vld [vmem:[%s8233_s5 + $0x590] sm:$0xff]  ;;  %v4120_v4 = vld [vmem:[%s8233_s5 + $0x5a8] sm:$0xff] }
 0x351   :  { %5403 = vmatpush3.bf16.msra.mxu1 %v5402_v9  ;;  %5020 = vmatprep.mubr.msk.f32.mxu1 %vm5905_vm0, %v5906_v6  ;;  %v5417_v60 = vpack.c.bf16 %v4118_v35, %v4117_v46  ;;  %v5421_v7 = vpack.c.bf16 %v4120_v4, %v4119_v1  ;;  %v4103_v9 = vld [vmem:[%s8233_s5 + $0x520] sm:$0xff]  ;;  %v4076_v46 = vld [vmem:[%s8233_s5 + $0x450] sm:$0xff]  ;;  %v4077_v35 = vld [vmem:[%s8233_s5 + $0x458] sm:$0xff] }
 0x352   :  { %5404 = vmatprep.subr.bf16.mxu1 %v5904_v3  ;;  %v5423_v18 = vpack.c.bf16 %v4104_v11, %v4103_v9  ;;  %v4060_v1 = vld [vmem:[%s8233_s5 + $0x3d0] sm:$0xff]  ;;  %v4061_v4 = vld [vmem:[%s8233_s5 + $0x3d8] sm:$0xff] }
 0x353   :  { %5296 = vmatpush3.bf16.msra.mxu0 %v5295_v14  ;;  %v4121_v14 = vld [vmem:[%s8233_s5 + $0x5b0] sm:$0xff]  ;;  %v4114_v11 = vld [vmem:[%s8233_s5 + $0x578] sm:$0xff] }
 0x354   :  { %5298 = vmatprep.subr.bf16.mxu0 %v5297_v55  ;;  %v4051_v55 = vld [vmem:[%s8233_s5 + $0x390] sm:$0xff] }
 0x355   :  { %5406 = vmatpush3.bf16.msra.mxu1 %v5405_v24  ;;  %v5361_v24 = vpack.c.bf16 %v4052_v17, %v4051_v55  ;;  %v4113_v9 = vld [vmem:[%s8233_s5 + $0x570] sm:$0xff]  ;;  %v4081_v17 = vld [vmem:[%s8233_s5 + $0x478] sm:$0xff] }
 0x356   :  { %5407 = vmatprep.subr.bf16.mxu1 %v5904_v3  ;;  %v4080_v55 = vld [vmem:[%s8233_s5 + $0x470] sm:$0xff] }
 0x357   :  { %5300 = vmatpush3.bf16.msra.mxu0 %v5299_v19  ;;  %v4054_v19 = vld [vmem:[%s8233_s5 + $0x3a8] sm:$0xff] }
 0x358   :  { %5302 = vmatprep.subr.bf16.mxu0 %v5301_v8  ;;  %v5427_v8 = vpack.c.bf16 %v4106_v22, %v4105_v20  ;;  %v5364_v30 = vpack.c.bf16 %v4054_v19, %v4053_v25  ;;  %v4064_v20 = vld [vmem:[%s8233_s5 + $0x3f0] sm:$0xff]  ;;  %v4065_v22 = vld [vmem:[%s8233_s5 + $0x3f8] sm:$0xff]  ;;  %v4066_v19 = vld [vmem:[%s8233_s5 + $0x400] sm:$0xff] }
 0x359   :  { %5409 = vmatpush3.bf16.msra.mxu1 %v5408_v23  ;;  %v4125_v23 = vld [vmem:[%s8233_s5 + $0x5d0] sm:$0xff] }
 0x35a   :  { %5410 = vmatprep.subr.bf16.mxu1 %v5904_v3  ;;  %v5433_v37 = vpack.c.bf16 %v4126_v10, %v4125_v23  ;;  %v4068_v23 = vld [vmem:[%s8233_s5 + $0x410] sm:$0xff]  ;;  %v4086_v10 = vld [vmem:[%s8233_s5 + $0x4a0] sm:$0xff] }
 0x35b   :  { %5304 = vmatpush3.bf16.msra.mxu0 %v5303_v31  ;;  %v4056_v31 = vld [vmem:[%s8233_s5 + $0x3b8] sm:$0xff] }
 0x35c   :  { %5306 = vmatprep.subr.bf16.mxu0 %v5305_v36  ;;  %v5431_v36 = vpack.c.bf16 %v4108_v29, %v4107_v28  ;;  %v5367_v45 = vpack.c.bf16 %v4056_v31, %v4055_v32  ;;  %v4085_v28 = vld [vmem:[%s8233_s5 + $0x498] sm:$0xff]  ;;  %v4087_v32 = vld [vmem:[%s8233_s5 + $0x4a8] sm:$0xff] }
 0x35d   :  { %5412 = vmatpush3.bf16.msra.mxu1 %v5411_v49  ;;  %v4127_v49 = vld [vmem:[%s8233_s5 + $0x5e0] sm:$0xff]  ;;  %v5393_v33 = vpack.c.bf16 %v4087_v32, %v4086_v10  ;;  %v4159_v10 = vld [vmem:[%s8235_s7 + $0x290] sm:$0xff] }
 0x35e   :  { %5414 = vmatprep.subr.bf16.mxu1 %v5413_v53  ;;  %v4128_v53 = vld [vmem:[%s8233_s5 + $0x5e8] sm:$0xff]  ;;  %v4163_v32 = vld [vmem:[%s8235_s7 + $0x2b0] sm:$0xff] }
 0x35f   :  { %5308 = vmatpush3.bf16.msra.mxu0 %v5307_v42  ;;  %v4059_v42 = vld [vmem:[%s8233_s5 + $0x3c8] sm:$0xff]  ;;  %v5437_v48 = vpack.c.bf16 %v4128_v53, %v4127_v49  ;;  %v4072_v49 = vld [vmem:[%s8233_s5 + $0x430] sm:$0xff]  ;;  %v4073_v53 = vld [vmem:[%s8233_s5 + $0x438] sm:$0xff] }
 0x360   :  { %5310 = vmatprep.subr.bf16.mxu0 %v5309_v50  ;;  %5021 = vmatmul.mubr.msk.f32.vlgmr.msra.gmra.mrb[86].mxu1 %vm1748_vm4, %v6693_v38  ;;  %v4122_v38 = vld [vmem:[%s8233_s5 + $0x5b8] sm:$0xff]  ;;  %v5435_v50 = vpack.c.bf16 %v4110_v44, %v4109_v40 }
 0x361   :  { %5416 = vmatpush3.bf16.msra.mxu1 %v5415_v52  ;;  %2513 = vmatprep.mubr.f32.mxu1 %v1574_v15  ;;  %v5425_v15 = vpack.c.bf16 %v4122_v38, %v4121_v14  ;;  %v4112_v52 = vld [vmem:[%s8233_s5 + $0x568] sm:$0xff]  ;;  %v5377_v14 = vpack.c.bf16 %v4079_v47, %v4078_v43  ;;  %v4089_v40 = vld [vmem:[%s8233_s5 + $0x4b8] sm:$0xff] }
 0x362   :  { %5418 = vmatprep.subr.bf16.mxu1 %v5417_v60  ;;  %v5371_v60 = vpack.c.bf16 %v4059_v42, %v4058_v56  ;;  %v4063_v38 = vld [vmem:[%s8233_s5 + $0x3e8] sm:$0xff]  ;;  %v4131_v56 = vld [vmem:[%s8233_s5 + $0x600] sm:$0xff]  ;;  %v4148_v47 = vld [vmem:[%s8235_s7 + $0x238] sm:$0xff] }
 0x363   :  { %5312 = vmatpush3.bf16.msra.mxu0 %v5311_v0  ;;  %v5373_v0 = vpack.c.bf16 %v4077_v35, %v4076_v46  ;;  %v4132_v42 = vld [vmem:[%s8233_s5 + $0x608] sm:$0xff]  ;;  %v4133_v35 = vld [vmem:[%s8233_s5 + $0x610] sm:$0xff] }
 0x364   :  { %5357 = vmatprep.subr.bf16.mxu0 %v5904_v3  ;;  %v5446_v46 = vpack.c.bf16 %v4132_v42, %v4131_v56  ;;  %v4171_v56 = vld [vmem:[%s8235_s7 + $0x2f0] sm:$0xff]  ;;  %v4174_v42 = vld [vmem:[%s8235_s7 + $0x308] sm:$0xff] }
 0x365   :  { %5420 = vmatpush3.bf16.msra.mxu1 %v5419_v63  ;;  %v5439_v63 = vpack.c.bf16 %v4112_v52, %v4111_v61  ;;  %v4135_v61 = vld [vmem:[%s8233_s5 + $0x620] sm:$0xff]  ;;  %v4136_v52 = vld [vmem:[%s8233_s5 + $0x628] sm:$0xff] }
 0x366   :  { %1960 = vmatmul.mubr.f32.vlgmr.msra.gmra.mrb[52].mxu0 %v6765_v21  ;;  %5422 = vmatprep.subr.bf16.mxu1 %v5421_v7  ;;  %v4124_v21 = vld [vmem:[%s8233_s5 + $0x5c8] sm:$0xff]  ;;  %v5441_v7 = vpack.c.bf16 %v4130_v54, %v4129_v62  ;;  %v4138_v62 = vld [vmem:[%s8233_s5 + $0x638] sm:$0xff] }
 0x367   :  { %5359 = vmatpush3.bf16.msra.mxu0 %v5358_v13  ;;  %5001 = vmatprep.mubr.msk.f32.mxu0 %vm5905_vm0, %v5906_v6  ;;  %v5429_v26 = vpack.c.bf16 %v4124_v21, %v4123_v5  ;;  %v5375_v13 = vpack.c.bf16 %v4061_v4, %v4060_v1  ;;  %v4083_v5 = vld [vmem:[%s8233_s5 + $0x488] sm:$0xff]  ;;  %v5383_v21 = vpack.c.bf16 %v4065_v22, %v4064_v20  ;;  %v4144_v4 = vld [vmem:[%s8235_s7 + $0x218] sm:$0xff]  ;;  %v4153_v20 = vld [vmem:[%s8235_s7 + $0x260] sm:$0xff] }
 0x368   :  { %5360 = vmatprep.subr.bf16.mxu0 %v5904_v3  ;;  %v4146_v1 = vld [vmem:[%s8235_s7 + $0x228] sm:$0xff]  ;;  %v4151_v22 = vld [vmem:[%s8235_s7 + $0x250] sm:$0xff] }
 0x369   :  { %5424 = vmatpush3.bf16.msra.mxu1 %v5423_v18 }
 0x36a   :  { %5426 = vmatprep.subr.bf16.mxu1 %v5425_v15  ;;  %v5381_v15 = vpack.c.bf16 %v4081_v17, %v4080_v55  ;;  %v4152_v55 = vld [vmem:[%s8235_s7 + $0x258] sm:$0xff] }
 0x36b   :  { %5362 = vmatpush3.bf16.msra.mxu0 %v5361_v24  ;;  %v4082_v24 = vld [vmem:[%s8233_s5 + $0x480] sm:$0xff]  ;;  %v4156_v17 = vld [vmem:[%s8235_s7 + $0x278] sm:$0xff] }
 0x36c   :  { %5363 = vmatprep.subr.bf16.mxu0 %v5904_v3  ;;  %v5385_v25 = vpack.c.bf16 %v4083_v5, %v4082_v24  ;;  %v4155_v5 = vld [vmem:[%s8235_s7 + $0x270] sm:$0xff] }
 0x36d   :  { %5428 = vmatpush3.bf16.msra.mxu1 %v5427_v8  ;;  %v4067_v8 = vld [vmem:[%s8233_s5 + $0x408] sm:$0xff] }
 0x36e   :  { %5430 = vmatprep.subr.bf16.mxu1 %v5429_v26  ;;  %v4084_v26 = vld [vmem:[%s8233_s5 + $0x490] sm:$0xff]  ;;  %v5387_v29 = vpack.c.bf16 %v4067_v8, %v4066_v19  ;;  %v4162_v19 = vld [vmem:[%s8235_s7 + $0x2a8] sm:$0xff]  ;;  %v4160_v8 = vld [vmem:[%s8235_s7 + $0x298] sm:$0xff] }
 0x36f   :  { %5365 = vmatpush3.bf16.msra.mxu0 %v5364_v30  ;;  %v5389_v30 = vpack.c.bf16 %v4085_v28, %v4084_v26  ;;  %v4164_v28 = vld [vmem:[%s8235_s7 + $0x2b8] sm:$0xff] }
 0x370   :  { %5366 = vmatprep.subr.bf16.mxu0 %v5904_v3 }
 0x371   :  { %5432 = vmatpush3.bf16.msra.mxu1 %v5431_v36  ;;  %v4071_v36 = vld [vmem:[%s8233_s5 + $0x428] sm:$0xff] }
 0x372   :  { %5434 = vmatprep.subr.bf16.mxu1 %v5433_v37  ;;  %v4088_v37 = vld [vmem:[%s8233_s5 + $0x4b0] sm:$0xff]  ;;  %v5395_v44 = vpack.c.bf16 %v4071_v36, %v4070_v34  ;;  %v4170_v34 = vld [vmem:[%s8235_s7 + $0x2e8] sm:$0xff]  ;;  %v4168_v36 = vld [vmem:[%s8235_s7 + $0x2d8] sm:$0xff] }
 0x373   :  { %5368 = vmatpush3.bf16.msra.mxu0 %v5367_v45  ;;  %v5397_v45 = vpack.c.bf16 %v4089_v40, %v4088_v37  ;;  %v4172_v40 = vld [vmem:[%s8235_s7 + $0x2f8] sm:$0xff] }
 0x374   :  { %5370 = vmatprep.subr.bf16.mxu0 %v5369_v12  ;;  %v5399_v12 = vpack.c.bf16 %v4073_v53, %v4072_v49  ;;  %v5501_v49 = vpack.c.bf16 %v4172_v40, %v4168_v36  ;;  %v2600_v40 = vld [vmem:[%s8235_s7 + $0x8] sm:$0xff] }
 0x375   :  { %5436 = vmatpush3.bf16.msra.mxu1 %v5435_v50  ;;  %v4134_v50 = vld [vmem:[%s8233_s5 + $0x618] sm:$0xff] }
 0x376   :  { %5002 = vmatmul.mubr.msk.f32.vlgmr.msra.gmra.mrb[54].mxu0 %vm1748_vm4, %v6678_v27  ;;  %5438 = vmatprep.subr.bf16.mxu1 %v5437_v48  ;;  %v4062_v27 = vld [vmem:[%s8233_s5 + $0x3e0] sm:$0xff]  ;;  %v5449_v48 = vpack.c.bf16 %v4134_v50, %v4133_v35  ;;  %v4178_v35 = vld [vmem:[%s8235_s7 + $0x328] sm:$0xff]  ;;  %v4176_v50 = vld [vmem:[%s8235_s7 + $0x318] sm:$0xff] }
 0x377   :  { %5372 = vmatpush3.bf16.msra.mxu0 %v5371_v60  ;;  %2328 = vmatprep.mubr.f32.mxu0 %v6841_v51  ;;  %v5443_v51 = vpack.c.bf16 %v4114_v11, %v4113_v9  ;;  %v5379_v18 = vpack.c.bf16 %v4063_v38, %v4062_v27  ;;  %v5452_v60 = vpack.c.bf16 %v4136_v52, %v4135_v61  ;;  %v4143_v11 = vld [vmem:[%s8235_s7 + $0x210] sm:$0xff]  ;;  %v4154_v38 = vld [vmem:[%s8235_s7 + $0x268] sm:$0xff] }
 0x378   :  { %5374 = vmatprep.subr.bf16.mxu0 %v5373_v0  ;;  %v4142_v0 = vld [vmem:[%s8235_s7 + $0x208] sm:$0xff]  ;;  %v5473_v61 = vpack.c.bf16 %v4178_v35, %v4174_v42 }
 0x379   :  { %5440 = vmatpush3.bf16.msra.mxu1 %v5439_v63  ;;  %v5457_v43 = vpack.c.bf16 %v4146_v1, %v4142_v0  ;;  %v4145_v63 = vld [vmem:[%s8235_s7 + $0x220] sm:$0xff]  ;;  %v4179_v0 = vld [vmem:[%s8235_s7 + $0x330] sm:$0xff]  ;;  %v4182_v1 = vld [vmem:[%s8235_s7 + $0x348] sm:$0xff] }
 0x37a   :  { %5442 = vmatprep.subr.bf16.mxu1 %v5441_v7  ;;  %v5489_v7 = vpack.c.bf16 %v4148_v47, %v4144_v4  ;;  %v4186_v4 = vld [vmem:[%s8235_s7 + $0x368] sm:$0xff] }
 0x37b   :  { %5376 = vmatpush3.bf16.msra.mxu0 %v5375_v13  ;;  %v4147_v13 = vld [vmem:[%s8235_s7 + $0x230] sm:$0xff]  ;;  %v5477_v47 = vpack.c.bf16 %v4186_v4, %v4182_v1 }
 0x37c   :  { %5378 = vmatprep.subr.bf16.mxu0 %v5377_v14  ;;  %v4150_v14 = vld [vmem:[%s8235_s7 + $0x248] sm:$0xff]  ;;  %v5491_v27 = vpack.c.bf16 %v4147_v13, %v4143_v11  ;;  %v4185_v13 = vld [vmem:[%s8235_s7 + $0x360] sm:$0xff] }
 0x37d   :  { %5444 = vmatpush3.bf16.msra.mxu1 %v5443_v51  ;;  %v5461_v51 = vpack.c.bf16 %v4154_v38, %v4150_v14  ;;  %v4183_v14 = vld [vmem:[%s8235_s7 + $0x350] sm:$0xff] }
 0x37e   :  { %5490 = vmatprep.subr.bf16.mxu1 %v5489_v7  ;;  %v4181_v7 = vld [vmem:[%s8235_s7 + $0x340] sm:$0xff] }
 0x37f   :  { %5380 = vmatpush3.bf16.msra.mxu0 %v5379_v18  ;;  %v5493_v18 = vpack.c.bf16 %v4156_v17, %v4152_v55  ;;  %v5479_v55 = vpack.c.bf16 %v4185_v13, %v4181_v7 }
 0x380   :  { %5382 = vmatprep.subr.bf16.mxu0 %v5381_v15  ;;  %2514 = vmatmul.mubr.f32.vlgmr.msra.gmra.mrb[88].mxu1 %v6856_v16  ;;  %v4069_v16 = vld [vmem:[%s8233_s5 + $0x418] sm:$0xff]  ;;  %v4149_v15 = vld [vmem:[%s8235_s7 + $0x240] sm:$0xff] }
 0x381   :  { %2866 = vmatprep.mubr.f32.mxu1 %v5906_v6  ;;  %v5391_v31 = vpack.c.bf16 %v4069_v16, %v4068_v23  ;;  %5492 = vmatpush1.bf16.msra.mxu1 %v5491_v27  ;;  %v5463_v24 = vpack.c.bf16 %v4153_v20, %v4149_v15  ;;  %v5497_v23 = vpack.c.bf16 %v4164_v28, %v4160_v8  ;;  %v4187_v27 = vld [vmem:[%s8235_s7 + $0x370] sm:$0xff]  ;;  %v4192_v15 = vld [vmem:[%s8235_s7 + $0x398] sm:$0xff]  ;;  %v4198_v28 = vld [vmem:[%s8235_s7 + $0x3c8] sm:$0xff] }
 0x382   :  { %5494 = vmatprep.subr.bf16.mxu1 %v5493_v18  ;;  %v5511_v17 = vpack.c.bf16 %v4187_v27, %v4183_v14  ;;  %v4194_v18 = vld [vmem:[%s8235_s7 + $0x3a8] sm:$0xff]  ;;  %v4195_v8 = vld [vmem:[%s8235_s7 + $0x3b0] sm:$0xff] }
 0x383   :  { %5384 = vmatpush3.bf16.msra.mxu0 %v5383_v21  ;;  %v5495_v21 = vpack.c.bf16 %v4155_v5, %v4151_v22  ;;  %v4196_v22 = vld [vmem:[%s8235_s7 + $0x3b8] sm:$0xff]  ;;  %v4193_v5 = vld [vmem:[%s8235_s7 + $0x3a0] sm:$0xff] }
 0x384   :  { %5386 = vmatprep.subr.bf16.mxu0 %v5385_v25  ;;  %v4158_v25 = vld [vmem:[%s8235_s7 + $0x288] sm:$0xff] }
 0x385   :  { %5496 = vmatpush1.bf16.msra.mxu1 %v5495_v21  ;;  %v5465_v26 = vpack.c.bf16 %v4162_v19, %v4158_v25  ;;  %v5513_v21 = vpack.c.bf16 %v4196_v22, %v4192_v15  ;;  %v4191_v19 = vld [vmem:[%s8235_s7 + $0x390] sm:$0xff] }
 0x386   :  { %5498 = vmatprep.subr.bf16.mxu1 %v5497_v23  ;;  %v4200_v23 = vld [vmem:[%s8235_s7 + $0x3d8] sm:$0xff] }
 0x387   :  { %5388 = vmatpush3.bf16.msra.mxu0 %v5387_v29  ;;  %v4157_v29 = vld [vmem:[%s8235_s7 + $0x280] sm:$0xff] }
 0x388   :  { %5390 = vmatprep.subr.bf16.mxu0 %v5389_v30  ;;  %v4161_v30 = vld [vmem:[%s8235_s7 + $0x2a0] sm:$0xff] }
 0x389   :  { %v5467_v16 = vpack.c.bf16 %v4161_v30, %v4157_v29  ;;  %v4202_v29 = vld [vmem:[%s8235_s7 + $0x3e8] sm:$0xff] }
 0x38a   :  { %v5485_v30 = vpack.c.bf16 %v4202_v29, %v4198_v28  ;;  %v2610_v28 = vld [vmem:[%s8235_s7 + $0x58] sm:$0xff] }
 0x38b   :  { %5392 = vmatpush3.bf16.msra.mxu0 %v5391_v31  ;;  %v5499_v31 = vpack.c.bf16 %v4163_v32, %v4159_v10  ;;  %v4197_v10 = vld [vmem:[%s8235_s7 + $0x3c0] sm:$0xff]  ;;  %v2614_v29 = vld [vmem:[%s8235_s7 + $0x78] sm:$0xff] }
 0x38c   :  { %5394 = vmatprep.subr.bf16.mxu0 %v5393_v33  ;;  %v4166_v33 = vld [vmem:[%s8235_s7 + $0x2c8] sm:$0xff] }
 0x38d   :  { %5500 = vmatpush1.bf16.msra.mxu1 %v5499_v31  ;;  %v5469_v37 = vpack.c.bf16 %v4170_v34, %v4166_v33  ;;  %v4201_v31 = vld [vmem:[%s8235_s7 + $0x3e0] sm:$0xff]  ;;  %v4199_v33 = vld [vmem:[%s8235_s7 + $0x3d0] sm:$0xff] }
 0x38e   :  { %5502 = vmatprep.subr.bf16.mxu1 %v5501_v49  ;;  %v4203_v34 = vld [vmem:[%s8235_s7 + $0x3f0] sm:$0xff]  ;;  %v5487_v36 = vpack.c.bf16 %v4201_v31, %v4197_v10  ;;  %v2607_v10 = vld [vmem:[%s8235_s7 + $0x40] sm:$0xff] }
 0x38f   :  { %5396 = vmatpush3.bf16.msra.mxu0 %v5395_v44  ;;  %v4165_v44 = vld [vmem:[%s8235_s7 + $0x2c0] sm:$0xff] }
 0x390   :  { %5398 = vmatprep.subr.bf16.mxu0 %v5397_v45  ;;  %v4169_v45 = vld [vmem:[%s8235_s7 + $0x2e0] sm:$0xff] }
 0x391   :  { %v5471_v53 = vpack.c.bf16 %v4169_v45, %v4165_v44  ;;  %v2604_v44 = vld [vmem:[%s8235_s7 + $0x28] sm:$0xff]  ;;  %v2602_v45 = vld [vmem:[%s8235_s7 + $0x18] sm:$0xff] }
 0x392   :  { %v5521_v49 = vpack.c.bf16 %v2604_v44, %v2600_v40  ;;  %v2616_v40 = vld [vmem:[%s8235_s7 + $0x88] sm:$0xff] }
 0x393   :  { %5400 = vmatpush3.bf16.msra.mxu0 %v5399_v12  ;;  %v4167_v12 = vld [vmem:[%s8235_s7 + $0x2d0] sm:$0xff]  ;;  %v2620_v44 = vld [vmem:[%s8235_s7 + $0xa8] sm:$0xff] }
 0x394   :  { %5445 = vmatprep.subr.bf16.mxu0 %v5904_v3 }
 0x396   :  { %2329 = vmatmul.mubr.f32.vlgmr.msra.gmra.mrb[56].mxu0 %v6833_v2  ;;  %v4137_v2 = vld [vmem:[%s8233_s5 + $0x630] sm:$0xff] }
 0x397   :  { %5447 = vmatpush3.bf16.msra.mxu0 %v5446_v46  ;;  %5039 = vmatprep.mubr.msk.f32.mxu0 %vm5905_vm0, %v5906_v6  ;;  %v5455_v54 = vpack.c.bf16 %v4138_v62, %v4137_v2  ;;  %v5503_v46 = vpack.c.bf16 %v4171_v56, %v4167_v12  ;;  %v4177_v2 = vld [vmem:[%s8235_s7 + $0x320] sm:$0xff]  ;;  %v4175_v62 = vld [vmem:[%s8235_s7 + $0x310] sm:$0xff] }
 0x398   :  { %5448 = vmatprep.subr.bf16.mxu0 %v5904_v3 }
 0x399   :  { %5504 = vmatpush1.bf16.msra.mxu1 %v5503_v46 }
 0x39b   :  { %5450 = vmatpush3.bf16.msra.mxu0 %v5449_v48  ;;  %v4180_v48 = vld [vmem:[%s8235_s7 + $0x338] sm:$0xff] }
 0x39c   :  { %5451 = vmatprep.subr.bf16.mxu0 %v5904_v3  ;;  %v5505_v52 = vpack.c.bf16 %v4180_v48, %v4176_v50 }
 0x39e   :  { %5506 = vmatprep.subr.bf16.mxu1 %v5505_v52 }
 0x39f   :  { %5453 = vmatpush3.bf16.msra.mxu0 %v5452_v60  ;;  %v4173_v60 = vld [vmem:[%s8235_s7 + $0x300] sm:$0xff] }
 0x3a0   :  { %5454 = vmatprep.subr.bf16.mxu0 %v5904_v3 }
 0x3a3   :  { %5456 = vmatpush3.bf16.msra.mxu0 %v5455_v54  ;;  %v5475_v54 = vpack.c.bf16 %v4177_v2, %v4173_v60 }
 0x3a4   :  { %5458 = vmatprep.subr.bf16.mxu0 %v5457_v43  ;;  %v5507_v43 = vpack.c.bf16 %v4179_v0, %v4175_v62 }
 0x3a6   :  { %5040 = vmatmul.mubr.msk.f32.vlgmr.msra.gmra.mrb[58].mxu0 %vm1748_vm4, %v6708_v57  ;;  %v4141_v57 = vld [vmem:[%s8235_s7 + $0x200] sm:$0xff]  ;;  %5508 = vmatpush1.bf16.msra.mxu1 %v5507_v43 }
 0x3a7   :  { %2795 = vmatprep.mubr.f32.mxu0 %v5906_v6  ;;  %v5459_v9 = vpack.c.bf16 %v4145_v63, %v4141_v57  ;;  %v4184_v57 = vld [vmem:[%s8235_s7 + $0x358] sm:$0xff] }
 0x3a8   :  { %v4188_v63 = vld [vmem:[%s8235_s7 + $0x378] sm:$0xff] }
 0x3a9   :  { %5460 = vmatpush1.bf16.msra.mxu0 %v5459_v9  ;;  %v5509_v11 = vpack.c.bf16 %v4188_v63, %v4184_v57 }
 0x3aa   :  { %5462 = vmatprep.subr.bf16.mxu0 %v5461_v51  ;;  %v4190_v51 = vld [vmem:[%s8235_s7 + $0x388] sm:$0xff] }
 0x3ab   :  { %5510 = vmatprep.subr.bf16.mxu1 %v5509_v11  ;;  %v5481_v20 = vpack.c.bf16 %v4194_v18, %v4190_v51 }
 0x3ac   :  { %5512 = vmatpush1.bf16.msra.mxu1 %v5511_v17 }
 0x3ad   :  { %5464 = vmatpush1.bf16.msra.mxu0 %v5463_v24  ;;  %v4189_v24 = vld [vmem:[%s8235_s7 + $0x380] sm:$0xff]  ;;  %5514 = vmatprep.subr.bf16.mxu1 %v5513_v21 }
 0x3ae   :  { %5466 = vmatprep.subr.bf16.mxu0 %v5465_v26  ;;  %v5483_v25 = vpack.c.bf16 %v4193_v5, %v4189_v24  ;;  %v5515_v26 = vpack.c.bf16 %v4195_v8, %v4191_v19  ;;  %v2599_v24 = vld [vmem:[%s8235_s7] sm:$0xff]  ;;  %v2605_v19 = vld [vmem:[%s8235_s7 + $0x30] sm:$0xff]  ;;  %v2608_v8 = vld [vmem:[%s8235_s7 + $0x48] sm:$0xff] }
 0x3af   :  { %v2603_v5 = vld [vmem:[%s8235_s7 + $0x20] sm:$0xff] }
 0x3b0   :  { %5516 = vmatpush1.bf16.msra.mxu1 %v5515_v26  ;;  %v2612_v26 = vld [vmem:[%s8235_s7 + $0x68] sm:$0xff] }
 0x3b1   :  { %5468 = vmatpush1.bf16.msra.mxu0 %v5467_v16  ;;  %v4204_v16 = vld [vmem:[%s8235_s7 + $0x3f8] sm:$0xff] }
 0x3b2   :  { %5470 = vmatprep.subr.bf16.mxu0 %v5469_v37  ;;  %v5517_v32 = vpack.c.bf16 %v4204_v16, %v4200_v23  ;;  %v5519_v37 = vpack.c.bf16 %v4203_v34, %v4199_v33  ;;  %v5523_v23 = vpack.c.bf16 %v2603_v5, %v2599_v24  ;;  %v5525_v33 = vpack.c.bf16 %v2612_v26, %v2608_v8  ;;  %v2646_v24 = vld [vmem:[%s8235_s7 + $0x178] sm:$0xff] }
 0x3b3   :  { %v5557_v34 = vpack.c.bf16 %v2614_v29, %v2610_v28  ;;  %v2641_v28 = vld [vmem:[%s8235_s7 + $0x150] sm:$0xff] }
 0x3b4   :  { %5518 = vmatprep.subr.bf16.mxu1 %v5517_v32  ;;  %v2611_v32 = vld [vmem:[%s8235_s7 + $0x60] sm:$0xff]  ;;  %v2645_v29 = vld [vmem:[%s8235_s7 + $0x170] sm:$0xff] }
 0x3b5   :  { %5472 = vmatpush1.bf16.msra.mxu0 %v5471_v53  ;;  %5520 = vmatpush1.bf16.msra.mxu1 %v5519_v37  ;;  %v2606_v53 = vld [vmem:[%s8235_s7 + $0x38] sm:$0xff]  ;;  %v2613_v37 = vld [vmem:[%s8235_s7 + $0x70] sm:$0xff] }
 0x3b6   :  { %5474 = vmatprep.subr.bf16.mxu0 %v5473_v61  ;;  %v5553_v12 = vpack.c.bf16 %v2606_v53, %v2602_v45  ;;  %v2618_v45 = vld [vmem:[%s8235_s7 + $0x98] sm:$0xff]  ;;  %v5527_v53 = vpack.c.bf16 %v2611_v32, %v2607_v10 }
 0x3b7   :  { %v2650_v10 = vld [vmem:[%s8235_s7 + $0x198] sm:$0xff] }
 0x3b8   :  { %5554 = vmatprep.subr.bf16.mxu1 %v5553_v12  ;;  %v2654_v32 = vld [vmem:[%s8235_s7 + $0x1b8] sm:$0xff] }
 0x3b9   :  { %5476 = vmatpush1.bf16.msra.mxu0 %v5475_v54 }
 0x3ba   :  { %5478 = vmatprep.subr.bf16.mxu0 %v5477_v47 }
 0x3bd   :  { %5480 = vmatpush1.bf16.msra.mxu0 %v5479_v55 }
 0x3be   :  { %5482 = vmatprep.subr.bf16.mxu0 %v5481_v20  ;;  %v4140_v20 = vld [vmem:[%s8234_s6] ss:$0 sm:$0xff] }
 0x3c1   :  { %5484 = vmatpush1.bf16.msra.mxu0 %v5483_v25  ;;  %v2601_v25 = vld [vmem:[%s8235_s7 + $0x10] sm:$0xff] }
 0x3c2   :  { %5486 = vmatprep.subr.bf16.mxu0 %v5485_v30  ;;  %v5555_v16 = vpack.c.bf16 %v2605_v19, %v2601_v25  ;;  %v2639_v25 = vld [vmem:[%s8235_s7 + $0x140] sm:$0xff] }
 0x3c3   :  { %v2643_v19 = vld [vmem:[%s8235_s7 + $0x160] sm:$0xff] }
 0x3c5   :  { %5488 = vmatpush1.bf16.msra.mxu0 %v5487_v36  ;;  %v2609_v36 = vld [vmem:[%s8235_s7 + $0x50] sm:$0xff] }
 0x3c6   :  { %5522 = vmatprep.subr.bf16.mxu0 %v5521_v49  ;;  %v2622_v49 = vld [vmem:[%s8235_s7 + $0xb8] sm:$0xff]  ;;  %v5559_v12 = vpack.c.bf16 %v2613_v37, %v2609_v36  ;;  %v2651_v36 = vld [vmem:[%s8235_s7 + $0x1a0] sm:$0xff] }
 0x3f3   :  { %v1888_v9 = vpop.f32.mrb[80].mxu1 }
 0x3f4   :  { %v4965_v38 = vpop.f32.mrb[81].mxu1 }
 0x403   :  { %v2031_v56 = vpop.f32.mrb[82].mxu1 }
 0x404   :  { %v4984_v42 = vpop.f32.mrb[83].mxu1 }
 0x405   :  { %v2619_v42 = vld [vmem:[%s8235_s7 + $0xa0] sm:$0xff] }
 0x419   :  { %v4488_v46 = vpop.f32.mrb[50].mxu0 }
 0x41a   :  { %v4489_v35 = vpop.f32.mrb[51].mxu0 }
 0x41b   :  { %v4490_v50 = vadd.f32 %v4489_v35, %v4488_v46  ;;  %v5529_v46 = vpack.c.bf16 %v2620_v44, %v2616_v40  ;;  %v5561_v35 = vpack.c.bf16 %v2622_v49, %v2618_v45  ;;  %v5577_v40 = vpack.c.bf16 %v2654_v32, %v2650_v10  ;;  %v2649_v44 = vld [vmem:[%s8235_s7 + $0x190] sm:$0xff]  ;;  %v2656_v49 = vld [vmem:[%s8235_s7 + $0x1c8] sm:$0xff] }
 0x41c   :  { %v2653_v45 = vld [vmem:[%s8235_s7 + $0x1b0] sm:$0xff]  ;;  %v4230_v32 = vld [vmem:[%s8235_s7 + $0x4c8] sm:$0xff] }
 0x41d   :  { %v1889_v48 = vadd.f32 %v4490_v50, %v1888_v9  ;;  %v2617_v50 = vld [vmem:[%s8235_s7 + $0x90] sm:$0xff] }
 0x41e   :  { %v4227_v10 = vld [vmem:[%s8235_s7 + $0x4b0] sm:$0xff] }
 0x423   :  { %v4576_v61 = vpop.f32.mrb[84].mxu1 }
 0x424   :  { %v4577_v52 = vpop.f32.mrb[85].mxu1 }
 0x425   :  { %v4578_v60 = vadd.f32 %v4577_v52, %v4576_v61  ;;  %v2624_v61 = vld [vmem:[%s8235_s7 + $0xc8] sm:$0xff] }
 0x426   :  { %v2628_v52 = vld [vmem:[%s8235_s7 + $0xe8] sm:$0xff] }
 0x433   :  { %v2400_v2 = vpop.f32.mrb[86].mxu1 }
 0x434   :  { %v5022_v62 = vpop.f32.mrb[87].mxu1 }
 0x439   :  { %v4532_v54 = vpop.f32.mrb[52].mxu0 }
 0x43a   :  { %v4533_v0 = vpop.f32.mrb[53].mxu0 }
 0x43b   :  { %v4534_v1 = vadd.f32 %v4533_v0, %v4532_v54  ;;  %v2623_v0 = vld [vmem:[%s8235_s7 + $0xc0] sm:$0xff] }
 0x43d   :  { %v1962_v4 = vadd.f32 %v4534_v1, %v1889_v48  ;;  %v2621_v48 = vld [vmem:[%s8235_s7 + $0xb0] sm:$0xff]  ;;  %v2627_v1 = vld [vmem:[%s8235_s7 + $0xe0] sm:$0xff] }
 0x43e   :  { %v5563_v54 = vpack.c.bf16 %v2621_v48, %v2617_v50  ;;  %v2659_v50 = vld [vmem:[%s8235_s7 + $0x1e0] sm:$0xff] }
 0x43f   :  { %v2032_v43 = vadd.f32 %v2031_v56, %v1962_v4  ;;  %v2615_v56 = vld [vmem:[%s8235_s7 + $0x80] sm:$0xff]  ;;  %v5533_v4 = vpack.c.bf16 %v2628_v52, %v2624_v61  ;;  %v2657_v52 = vld [vmem:[%s8235_s7 + $0x1d0] sm:$0xff] }
 0x440   :  { %v5531_v62 = vpack.c.bf16 %v2619_v42, %v2615_v56  ;;  %v2662_v56 = vld [vmem:[%s8235_s7 + $0x1f8] sm:$0xff] }
 0x449   :  { %v2215_v47 = vpop.f32.mrb[54].mxu0 }
 0x44a   :  { %v2216_v57 = vadd.f32 %v4578_v60, %v2215_v47  ;;  %v5003_v63 = vpop.f32.mrb[55].mxu0  ;;  %v2626_v60 = vld [vmem:[%s8235_s7 + $0xd8] sm:$0xff]  ;;  %v2625_v47 = vld [vmem:[%s8235_s7 + $0xd0] sm:$0xff] }
 0x44b   :  { %v2632_v63 = vld [vmem:[%s8235_s7 + $0x108] sm:$0xff] }
 0x44c   :  { %v2219_v7 = vadd.f32 %v2216_v57, %v2032_v43  ;;  %v2629_v57 = vld [vmem:[%s8235_s7 + $0xf0] sm:$0xff] }
 0x453   :  { %v4664_v11 = vpop.f32.mrb[88].mxu1 }
 0x454   :  { %v4665_v13 = vpop.f32.mrb[89].mxu1 }
 0x455   :  { %v4666_v14 = vadd.f32 %v4665_v13, %v4664_v11  ;;  %v2634_v11 = vld [vmem:[%s8235_s7 + $0x118] sm:$0xff] }
 0x456   :  { %v2638_v13 = vld [vmem:[%s8235_s7 + $0x138] sm:$0xff] }
 0x469   :  { %v4620_v27 = vpop.f32.mrb[56].mxu0 }
 0x46a   :  { %v4621_v38 = vpop.f32.mrb[57].mxu0 }
 0x46b   :  { %v4622_v9 = vadd.f32 %v4621_v38, %v4620_v27  ;;  %v5567_v27 = vpack.c.bf16 %v2629_v57, %v2625_v47  ;;  %v2631_v38 = vld [vmem:[%s8235_s7 + $0x100] sm:$0xff] }
 0x46c   :  { %v4209_v47 = vld [vmem:[%s8235_s7 + $0x420] sm:$0xff] }
 0x46d   :  { %v2401_v55 = vadd.f32 %v4622_v9, %v2400_v2  ;;  %v2630_v2 = vld [vmem:[%s8235_s7 + $0xf8] sm:$0xff]  ;;  %v2635_v9 = vld [vmem:[%s8235_s7 + $0x120] sm:$0xff] }
 0x46e   :  { %v5565_v43 = vpack.c.bf16 %v2630_v2, %v2626_v60  ;;  %v5539_v5 = vpack.c.bf16 %v2635_v9, %v2631_v38  ;;  %v2661_v60 = vld [vmem:[%s8235_s7 + $0x1f0] sm:$0xff]  ;;  %v4206_v2 = vld [vmem:[%s8235_s7 + $0x408] sm:$0xff]  ;;  %v4220_v38 = vld [vmem:[%s8235_s7 + $0x478] sm:$0xff] }
 0x46f   :  { %v2404_v17 = vadd.f32 %v2401_v55, %v2219_v7  ;;  %v2636_v7 = vld [vmem:[%s8235_s7 + $0x128] sm:$0xff] }
 0x470   :  { %v5537_v55 = vpack.c.bf16 %v2636_v7, %v2632_v63  ;;  %v4207_v7 = vld [vmem:[%s8235_s7 + $0x410] sm:$0xff] }
 0x479   :  { %v2585_v51 = vpop.f32.mrb[58].mxu0 }
 0x47a   :  { %v2586_v18 = vadd.f32 %v4666_v14, %v2585_v51  ;;  %v5041_v15 = vpop.f32.mrb[59].mxu0  ;;  %v5535_v14 = vpack.c.bf16 %v2627_v1, %v2623_v0  ;;  %v2633_v51 = vld [vmem:[%s8235_s7 + $0x110] sm:$0xff]  ;;  %v4212_v0 = vld [vmem:[%s8235_s7 + $0x438] sm:$0xff] }
 0x47b   :  { %v2640_v15 = vld [vmem:[%s8235_s7 + $0x148] sm:$0xff] }
 0x47c   :  { %v2589_v22 = vadd.f32 %v2586_v18, %v2404_v17  ;;  %v5569_v17 = vpack.c.bf16 %v2638_v13, %v2634_v11  ;;  %v2637_v18 = vld [vmem:[%s8235_s7 + $0x130] sm:$0xff]  ;;  %v4214_v13 = vld [vmem:[%s8235_s7 + $0x448] sm:$0xff] }
 0x47d   :  { %v4211_v11 = vld [vmem:[%s8235_s7 + $0x430] sm:$0xff] }
 0x47e   :  { %v2597_v21 = vadd.f32 %v4140_v20, %v2589_v22  ;;  %v2644_v20 = vld [vmem:[%s8235_s7 + $0x168] sm:$0xff]  ;;  %v2642_v22 = vld [vmem:[%s8235_s7 + $0x158] sm:$0xff] }
 0x47f   :  { %v5541_v8 = vpack.c.bf16 %v2644_v20, %v2640_v15  ;;  %v5573_v26 = vpack.c.bf16 %v2646_v24, %v2642_v22  ;;  %v4215_v20 = vld [vmem:[%s8235_s7 + $0x450] sm:$0xff]  ;;  %v4222_v24 = vld [vmem:[%s8235_s7 + $0x488] sm:$0xff] }
 0x480   :  { %v7412_v30 = vmax.f32 %v2597_v21, 0.0  ;;  %v5571_v21 = vpack.c.bf16 %v2637_v18, %v2633_v51  ;;  %v4217_v51 = vld [vmem:[%s8235_s7 + $0x460] sm:$0xff]  ;;  %v4219_v22 = vld [vmem:[%s8235_s7 + $0x470] sm:$0xff] }
 0x482   :  { %v2729_v31 = vrot.slane %v7412_v30, 2 }
 0x484   :  { %2796 = vmatmul.mubr.f32.vlgmr.msra.gmra.mrb[60].mxu0 %v2729_v31  ;;  %2867 = vmatmul.mubr.f32.vlgmr.msra.gmra.mrb[90].mxu1 %v2729_v31  ;;  %v5543_v31 = vpack.c.bf16 %v2643_v19, %v2639_v25  ;;  %v4228_v25 = vld [vmem:[%s8235_s7 + $0x4b8] sm:$0xff] }
 0x485   :  { %5524 = vmatpush1.bf16.msra.mxu0 %v5523_v23  ;;  %5556 = vmatpush1.bf16.msra.mxu1 %v5555_v16  ;;  %v2648_v23 = vld [vmem:[%s8235_s7 + $0x188] sm:$0xff] }
 0x486   :  { %5526 = vmatprep.subr.bf16.mxu0 %v5525_v33  ;;  %5558 = vmatprep.subr.bf16.mxu1 %v5557_v34  ;;  %v2652_v16 = vld [vmem:[%s8235_s7 + $0x1a8] sm:$0xff]  ;;  %v5575_v33 = vpack.c.bf16 %v2645_v29, %v2641_v28  ;;  %v2647_v34 = vld [vmem:[%s8235_s7 + $0x180] sm:$0xff] }
 0x487   :  { %2937 = vmatprep.mubr.f32.mxu0 %v5906_v6  ;;  %3008 = vmatprep.mubr.f32.mxu1 %v5906_v6  ;;  %v5545_v37 = vpack.c.bf16 %v2652_v16, %v2648_v23  ;;  %v5547_v42 = vpack.c.bf16 %v2651_v36, %v2647_v34  ;;  %v4225_v28 = vld [vmem:[%s8235_s7 + $0x4a0] sm:$0xff]  ;;  %v4223_v16 = vld [vmem:[%s8235_s7 + $0x490] sm:$0xff]  ;;  %v4236_v34 = vld [vmem:[%s8235_s7 + $0x4f8] sm:$0xff] }
 0x489   :  { %5528 = vmatpush1.bf16.msra.mxu0 %v5527_v53  ;;  %5560 = vmatpush1.bf16.msra.mxu1 %v5559_v12  ;;  %v2660_v53 = vld [vmem:[%s8235_s7 + $0x1e8] sm:$0xff]  ;;  %v2658_v12 = vld [vmem:[%s8235_s7 + $0x1d8] sm:$0xff] }
 0x48a   :  { %5530 = vmatprep.subr.bf16.mxu0 %v5529_v46  ;;  %5562 = vmatprep.subr.bf16.mxu1 %v5561_v35  ;;  %v5579_v46 = vpack.c.bf16 %v2653_v45, %v2649_v44  ;;  %v2655_v35 = vld [vmem:[%s8235_s7 + $0x1c0] sm:$0xff]  ;;  %v5549_v48 = vpack.c.bf16 %v2660_v53, %v2656_v49  ;;  %v5581_v61 = vpack.c.bf16 %v2662_v56, %v2658_v12  ;;  %v4231_v53 = vld [vmem:[%s8235_s7 + $0x4d0] sm:$0xff]  ;;  %v4238_v56 = vld [vmem:[%s8235_s7 + $0x508] sm:$0xff] }
 0x48b   :  { %v5551_v1 = vpack.c.bf16 %v2659_v50, %v2655_v35  ;;  %v4233_v44 = vld [vmem:[%s8235_s7 + $0x4e0] sm:$0xff]  ;;  %v4235_v12 = vld [vmem:[%s8235_s7 + $0x4f0] sm:$0xff]  ;;  %v4244_v35 = vld [vmem:[%s8235_s7 + $0x538] sm:$0xff] }
 0x48d   :  { %5532 = vmatpush1.bf16.msra.mxu0 %v5531_v62  ;;  %5564 = vmatpush1.bf16.msra.mxu1 %v5563_v54  ;;  %v4210_v62 = vld [vmem:[%s8235_s7 + $0x428] sm:$0xff]  ;;  %v4208_v54 = vld [vmem:[%s8235_s7 + $0x418] sm:$0xff] }
 0x48e   :  { %5534 = vmatprep.subr.bf16.mxu0 %v5533_v4  ;;  %5566 = vmatprep.subr.bf16.mxu1 %v5565_v43  ;;  %v5583_v4 = vpack.c.bf16 %v2661_v60, %v2657_v52  ;;  %v4205_v43 = vld [vmem:[%s8235_s7 + $0x400] sm:$0xff]  ;;  %v5585_v57 = vpack.c.bf16 %v4210_v62, %v4206_v2  ;;  %v5617_v63 = vpack.c.bf16 %v4212_v0, %v4208_v54  ;;  %v4239_v62 = vld [vmem:[%s8235_s7 + $0x510] sm:$0xff]  ;;  %v4246_v0 = vld [vmem:[%s8235_s7 + $0x548] sm:$0xff] }
 0x48f   :  { %v5587_v9 = vpack.c.bf16 %v4209_v47, %v4205_v43  ;;  %v4241_v52 = vld [vmem:[%s8235_s7 + $0x520] sm:$0xff]  ;;  %v4243_v54 = vld [vmem:[%s8235_s7 + $0x530] sm:$0xff]  ;;  %v4252_v43 = vld [vmem:[%s8235_s7 + $0x578] sm:$0xff] }
 0x491   :  { %5536 = vmatpush1.bf16.msra.mxu0 %v5535_v14  ;;  %5568 = vmatpush1.bf16.msra.mxu1 %v5567_v27  ;;  %v4218_v14 = vld [vmem:[%s8235_s7 + $0x468] sm:$0xff]  ;;  %v4216_v27 = vld [vmem:[%s8235_s7 + $0x458] sm:$0xff] }
 0x492   :  { %5538 = vmatprep.subr.bf16.mxu0 %v5537_v55  ;;  %5570 = vmatprep.subr.bf16.mxu1 %v5569_v17  ;;  %v5619_v55 = vpack.c.bf16 %v4211_v11, %v4207_v7  ;;  %v4213_v17 = vld [vmem:[%s8235_s7 + $0x440] sm:$0xff]  ;;  %v5589_v18 = vpack.c.bf16 %v4218_v14, %v4214_v13  ;;  %v5621_v15 = vpack.c.bf16 %v4220_v38, %v4216_v27  ;;  %v4247_v14 = vld [vmem:[%s8235_s7 + $0x550] sm:$0xff]  ;;  %v4254_v38 = vld [vmem:[%s8235_s7 + $0x588] sm:$0xff] }
 0x493   :  { %v5591_v19 = vpack.c.bf16 %v4217_v51, %v4213_v17  ;;  %v4249_v7 = vld [vmem:[%s8235_s7 + $0x560] sm:$0xff]  ;;  %v4251_v27 = vld [vmem:[%s8235_s7 + $0x570] sm:$0xff]  ;;  %v4260_v17 = vld [vmem:[%s8235_s7 + $0x5b8] sm:$0xff] }
 0x495   :  { %5540 = vmatpush1.bf16.msra.mxu0 %v5539_v5  ;;  %5572 = vmatpush1.bf16.msra.mxu1 %v5571_v21  ;;  %v4226_v5 = vld [vmem:[%s8235_s7 + $0x4a8] sm:$0xff]  ;;  %v4224_v21 = vld [vmem:[%s8235_s7 + $0x498] sm:$0xff] }
 0x496   :  { %5542 = vmatprep.subr.bf16.mxu0 %v5541_v8  ;;  %5574 = vmatprep.subr.bf16.mxu1 %v5573_v26  ;;  %v5623_v8 = vpack.c.bf16 %v4219_v22, %v4215_v20  ;;  %v4221_v26 = vld [vmem:[%s8235_s7 + $0x480] sm:$0xff]  ;;  %v5593_v29 = vpack.c.bf16 %v4226_v5, %v4222_v24  ;;  %v5625_v23 = vpack.c.bf16 %v4228_v25, %v4224_v21  ;;  %v4255_v5 = vld [vmem:[%s8235_s7 + $0x590] sm:$0xff]  ;;  %v4262_v25 = vld [vmem:[%s8235_s7 + $0x5c8] sm:$0xff] }
 0x497   :  { %v5595_v36 = vpack.c.bf16 %v4225_v28, %v4221_v26  ;;  %v4257_v20 = vld [vmem:[%s8235_s7 + $0x5a0] sm:$0xff]  ;;  %v4259_v21 = vld [vmem:[%s8235_s7 + $0x5b0] sm:$0xff]  ;;  %v4268_v26 = vld [vmem:[%s8235_s7 + $0x5f8] sm:$0xff] }
 0x499   :  { %5544 = vmatpush1.bf16.msra.mxu0 %v5543_v31  ;;  %5576 = vmatpush1.bf16.msra.mxu1 %v5575_v33  ;;  %v4234_v31 = vld [vmem:[%s8235_s7 + $0x4e8] sm:$0xff]  ;;  %v4232_v33 = vld [vmem:[%s8235_s7 + $0x4d8] sm:$0xff] }
 0x49a   :  { %5546 = vmatprep.subr.bf16.mxu0 %v5545_v37  ;;  %5578 = vmatprep.subr.bf16.mxu1 %v5577_v40  ;;  %v5627_v37 = vpack.c.bf16 %v4227_v10, %v4223_v16  ;;  %v4229_v40 = vld [vmem:[%s8235_s7 + $0x4c0] sm:$0xff]  ;;  %v5597_v45 = vpack.c.bf16 %v4234_v31, %v4230_v32  ;;  %v5629_v49 = vpack.c.bf16 %v4236_v34, %v4232_v33  ;;  %v4263_v31 = vld [vmem:[%s8235_s7 + $0x5d0] sm:$0xff]  ;;  %v4270_v34 = vld [vmem:[%s8235_s7 + $0x608] sm:$0xff] }
 0x49b   :  { %v5599_v50 = vpack.c.bf16 %v4233_v44, %v4229_v40  ;;  %v4265_v16 = vld [vmem:[%s8235_s7 + $0x5e0] sm:$0xff]  ;;  %v4267_v33 = vld [vmem:[%s8235_s7 + $0x5f0] sm:$0xff]  ;;  %v4276_v40 = vld [vmem:[%s8235_s7 + $0x638] sm:$0xff] }
 0x49d   :  { %5548 = vmatpush1.bf16.msra.mxu0 %v5547_v42  ;;  %5580 = vmatpush1.bf16.msra.mxu1 %v5579_v46  ;;  %v4242_v42 = vld [vmem:[%s8235_s7 + $0x528] sm:$0xff]  ;;  %v4240_v46 = vld [vmem:[%s8235_s7 + $0x518] sm:$0xff] }
 0x49e   :  { %5550 = vmatprep.subr.bf16.mxu0 %v5549_v48  ;;  %5582 = vmatprep.subr.bf16.mxu1 %v5581_v61  ;;  %v5631_v48 = vpack.c.bf16 %v4235_v12, %v4231_v53  ;;  %v4237_v61 = vld [vmem:[%s8235_s7 + $0x500] sm:$0xff]  ;;  %v5601_v60 = vpack.c.bf16 %v4242_v42, %v4238_v56  ;;  %v5633_v2 = vpack.c.bf16 %v4244_v35, %v4240_v46  ;;  %v4271_v42 = vld [vmem:[%s8235_s7 + $0x610] sm:$0xff]  ;;  %v4278_v35 = vld [vmem:[%s8235_s7 + $0x648] sm:$0xff] }
 0x49f   :  { %v5603_v47 = vpack.c.bf16 %v4241_v52, %v4237_v61  ;;  %v4273_v53 = vld [vmem:[%s8235_s7 + $0x620] sm:$0xff]  ;;  %v4275_v46 = vld [vmem:[%s8235_s7 + $0x630] sm:$0xff]  ;;  %v4284_v61 = vld [vmem:[%s8235_s7 + $0x678] sm:$0xff] }
 0x4a1   :  { %5552 = vmatpush1.bf16.msra.mxu0 %v5551_v1  ;;  %5584 = vmatpush1.bf16.msra.mxu1 %v5583_v4  ;;  %v4250_v1 = vld [vmem:[%s8235_s7 + $0x568] sm:$0xff]  ;;  %v4248_v4 = vld [vmem:[%s8235_s7 + $0x558] sm:$0xff] }
 0x4a2   :  { %5586 = vmatprep.subr.bf16.mxu0 %v5585_v57  ;;  %5618 = vmatprep.subr.bf16.mxu1 %v5617_v63  ;;  %v5635_v57 = vpack.c.bf16 %v4243_v54, %v4239_v62  ;;  %v4245_v63 = vld [vmem:[%s8235_s7 + $0x540] sm:$0xff]  ;;  %v5605_v11 = vpack.c.bf16 %v4250_v1, %v4246_v0  ;;  %v5637_v13 = vpack.c.bf16 %v4252_v43, %v4248_v4  ;;  %v3080_v54 = vrot.slane %v7412_v30, 4  ;;  %v4279_v4 = vld [vmem:[%s8235_s7 + $0x650] sm:$0xff] }
 0x4a3   :  { %v5607_v51 = vpack.c.bf16 %v4249_v7, %v4245_v63  ;;  %v4281_v62 = vld [vmem:[%s8235_s7 + $0x660] sm:$0xff]  ;;  %v4283_v43 = vld [vmem:[%s8235_s7 + $0x670] sm:$0xff]  ;;  %v4288_v63 = vld [vmem:[%s8235_s7 + $0x698] sm:$0xff] }
 0x4a4   :  { %2938 = vmatmul.mubr.f32.vlgmr.msra.gmra.mrb[60].mxu0 %v7412_v30  ;;  %3009 = vmatmul.mubr.f32.vlgmr.msra.gmra.mrb[90].mxu1 %v7412_v30  ;;  %v4292_v7 = vld [vmem:[%s8235_s7 + $0x6b8] sm:$0xff] }
 0x4a5   :  { %5588 = vmatpush1.bf16.msra.mxu0 %v5587_v9  ;;  %5620 = vmatpush1.bf16.msra.mxu1 %v5619_v55  ;;  %v4258_v9 = vld [vmem:[%s8235_s7 + $0x5a8] sm:$0xff]  ;;  %v4256_v55 = vld [vmem:[%s8235_s7 + $0x598] sm:$0xff] }
 0x4a6   :  { %5590 = vmatprep.subr.bf16.mxu0 %v5589_v18  ;;  %5622 = vmatprep.subr.bf16.mxu1 %v5621_v15  ;;  %v5639_v18 = vpack.c.bf16 %v4251_v27, %v4247_v14  ;;  %v4253_v15 = vld [vmem:[%s8235_s7 + $0x580] sm:$0xff]  ;;  %v5609_v22 = vpack.c.bf16 %v4258_v9, %v4254_v38  ;;  %v5641_v24 = vpack.c.bf16 %v4260_v17, %v4256_v55  ;;  %v4287_v55 = vld [vmem:[%s8235_s7 + $0x690] sm:$0xff] }
 0x4a7   :  { %3146 = vmatprep.mubr.f32.mxu0 %v5906_v6  ;;  %3217 = vmatprep.mubr.f32.mxu1 %v5906_v6  ;;  %v5611_v28 = vpack.c.bf16 %v4257_v20, %v4253_v15  ;;  %v4285_v14 = vld [vmem:[%s8235_s7 + $0x680] sm:$0xff]  ;;  %v5689_v9 = vpack.c.bf16 %v4292_v7, %v4288_v63  ;;  %v4291_v17 = vld [vmem:[%s8235_s7 + $0x6b0] sm:$0xff]  ;;  %v4296_v15 = vld [vmem:[%s8235_s7 + $0x6d8] sm:$0xff] }
 0x4a8   :  { %v4289_v27 = vld [vmem:[%s8235_s7 + $0x6a0] sm:$0xff]  ;;  %v4300_v20 = vld [vmem:[%s8235_s7 + $0x6f8] sm:$0xff]  ;;  %v4323_v63 = vld [vmem:[%s8235_s7 + $0x7b0] sm:$0xff] }
 0x4a9   :  { %5592 = vmatpush1.bf16.msra.mxu0 %v5591_v19  ;;  %5624 = vmatpush1.bf16.msra.mxu1 %v5623_v8  ;;  %v4266_v19 = vld [vmem:[%s8235_s7 + $0x5e8] sm:$0xff]  ;;  %v4264_v8 = vld [vmem:[%s8235_s7 + $0x5d8] sm:$0xff] }
 0x4aa   :  { %5594 = vmatprep.subr.bf16.mxu0 %v5593_v29  ;;  %5626 = vmatprep.subr.bf16.mxu1 %v5625_v23  ;;  %v5643_v29 = vpack.c.bf16 %v4259_v21, %v4255_v5  ;;  %v4261_v23 = vld [vmem:[%s8235_s7 + $0x5c0] sm:$0xff]  ;;  %v5613_v10 = vpack.c.bf16 %v4266_v19, %v4262_v25  ;;  %v5645_v32 = vpack.c.bf16 %v4268_v26, %v4264_v8  ;;  %v4295_v8 = vld [vmem:[%s8235_s7 + $0x6d0] sm:$0xff]  ;;  %v4326_v7 = vld [vmem:[%s8235_s7 + $0x7c8] sm:$0xff] }
 0x4ab   :  { %v5615_v44 = vpack.c.bf16 %v4265_v16, %v4261_v23  ;;  %v4293_v5 = vld [vmem:[%s8235_s7 + $0x6c0] sm:$0xff]  ;;  %v5693_v19 = vpack.c.bf16 %v4300_v20, %v4296_v15  ;;  %v4299_v26 = vld [vmem:[%s8235_s7 + $0x6f0] sm:$0xff]  ;;  %v4304_v23 = vld [vmem:[%s8235_s7 + $0x718] sm:$0xff] }
 0x4ac   :  { %v4297_v21 = vld [vmem:[%s8235_s7 + $0x6e0] sm:$0xff]  ;;  %v4308_v16 = vld [vmem:[%s8235_s7 + $0x738] sm:$0xff]  ;;  %v4331_v15 = vld [vmem:[%s8235_s7 + $0x7f0] sm:$0xff] }
 0x4ad   :  { %5596 = vmatpush1.bf16.msra.mxu0 %v5595_v36  ;;  %5628 = vmatpush1.bf16.msra.mxu1 %v5627_v37  ;;  %v4274_v36 = vld [vmem:[%s8235_s7 + $0x628] sm:$0xff]  ;;  %v4272_v37 = vld [vmem:[%s8235_s7 + $0x618] sm:$0xff] }
 0x4ae   :  { %5598 = vmatprep.subr.bf16.mxu0 %v5597_v45  ;;  %5630 = vmatprep.subr.bf16.mxu1 %v5629_v49  ;;  %v5647_v45 = vpack.c.bf16 %v4267_v33, %v4263_v31  ;;  %v4269_v49 = vld [vmem:[%s8235_s7 + $0x600] sm:$0xff]  ;;  %v5649_v12 = vpack.c.bf16 %v4274_v36, %v4270_v34  ;;  %v5681_v56 = vpack.c.bf16 %v4276_v40, %v4272_v37  ;;  %v4303_v37 = vld [vmem:[%s8235_s7 + $0x710] sm:$0xff] }
 0x4af   :  { %v5651_v52 = vpack.c.bf16 %v4273_v53, %v4269_v49  ;;  %v4301_v31 = vld [vmem:[%s8235_s7 + $0x700] sm:$0xff]  ;;  %v5697_v36 = vpack.c.bf16 %v4308_v16, %v4304_v23  ;;  %v4307_v40 = vld [vmem:[%s8235_s7 + $0x730] sm:$0xff]  ;;  %v4312_v49 = vld [vmem:[%s8235_s7 + $0x758] sm:$0xff] }
 0x4b0   :  { %v4305_v33 = vld [vmem:[%s8235_s7 + $0x720] sm:$0xff]  ;;  %v4316_v53 = vld [vmem:[%s8235_s7 + $0x778] sm:$0xff]  ;;  %v3478_v23 = vld [vmem:[%s8237_s9 + $0x30] sm:$0xff] }
 0x4b1   :  { %5600 = vmatpush1.bf16.msra.mxu0 %v5599_v50  ;;  %5632 = vmatpush1.bf16.msra.mxu1 %v5631_v48  ;;  %v4282_v50 = vld [vmem:[%s8235_s7 + $0x668] sm:$0xff]  ;;  %v4280_v48 = vld [vmem:[%s8235_s7 + $0x658] sm:$0xff] }
 0x4b2   :  { %5602 = vmatprep.subr.bf16.mxu0 %v5601_v60  ;;  %5634 = vmatprep.subr.bf16.mxu1 %v5633_v2  ;;  %v5683_v60 = vpack.c.bf16 %v4275_v46, %v4271_v42  ;;  %v4277_v2 = vld [vmem:[%s8235_s7 + $0x640] sm:$0xff]  ;;  %v5653_v0 = vpack.c.bf16 %v4282_v50, %v4278_v35  ;;  %v5685_v1 = vpack.c.bf16 %v4284_v61, %v4280_v48  ;;  %v4311_v48 = vld [vmem:[%s8235_s7 + $0x750] sm:$0xff]  ;;  %v3479_v16 = vld [vmem:[%s8237_s9 + $0x38] sm:$0xff] }
 0x4b3   :  { %v4309_v42 = vld [vmem:[%s8235_s7 + $0x740] sm:$0xff]  ;;  %v5701_v50 = vpack.c.bf16 %v4316_v53, %v4312_v49  ;;  %v4315_v61 = vld [vmem:[%s8235_s7 + $0x770] sm:$0xff]  ;;  %v3487_v53 = vld [vmem:[%s8237_s9 + $0x78] sm:$0xff] }
 0x4b4   :  { %v4313_v46 = vld [vmem:[%s8235_s7 + $0x760] sm:$0xff]  ;;  %v3486_v49 = vld [vmem:[%s8237_s9 + $0x70] sm:$0xff] }
 0x4b5   :  { %5604 = vmatpush1.bf16.msra.mxu0 %v5603_v47  ;;  %5636 = vmatpush1.bf16.msra.mxu1 %v5635_v57  ;;  %v4286_v47 = vld [vmem:[%s8235_s7 + $0x688] sm:$0xff] }
 0x4b6   :  { %5606 = vmatprep.subr.bf16.mxu0 %v5605_v11  ;;  %5638 = vmatprep.subr.bf16.mxu1 %v5637_v13  ;;  %v4290_v57 = vld [vmem:[%s8235_s7 + $0x6a8] sm:$0xff]  ;;  %v5655_v11 = vpack.c.bf16 %v4281_v62, %v4277_v2  ;;  %v5687_v13 = vpack.c.bf16 %v4283_v43, %v4279_v4  ;;  %v4320_v2 = vld [vmem:[%s8235_s7 + $0x798] sm:$0xff]  ;;  %v4321_v4 = vld [vmem:[%s8235_s7 + $0x7a0] sm:$0xff] }
 0x4b7   :  { %v5657_v38 = vpack.c.bf16 %v4290_v57, %v4286_v47  ;;  %v4324_v62 = vld [vmem:[%s8235_s7 + $0x7b8] sm:$0xff]  ;;  %v4319_v57 = vld [vmem:[%s8235_s7 + $0x790] sm:$0xff] }
 0x4b8   :  { %v5705_v47 = vpack.c.bf16 %v4324_v62, %v4320_v2 }
 0x4b9   :  { %5608 = vmatpush1.bf16.msra.mxu0 %v5607_v51  ;;  %5640 = vmatpush1.bf16.msra.mxu1 %v5639_v18  ;;  %v4294_v51 = vld [vmem:[%s8235_s7 + $0x6c8] sm:$0xff] }
 0x4ba   :  { %5610 = vmatprep.subr.bf16.mxu0 %v5609_v22  ;;  %5642 = vmatprep.subr.bf16.mxu1 %v5641_v24  ;;  %v4298_v18 = vld [vmem:[%s8235_s7 + $0x6e8] sm:$0xff]  ;;  %v5659_v22 = vpack.c.bf16 %v4289_v27, %v4285_v14  ;;  %v5691_v24 = vpack.c.bf16 %v4291_v17, %v4287_v55  ;;  %v4332_v14 = vld [vmem:[%s8235_s7 + $0x7f8] sm:$0xff] }
 0x4bb   :  { %v5661_v25 = vpack.c.bf16 %v4298_v18, %v4294_v51  ;;  %v4329_v51 = vld [vmem:[%s8235_s7 + $0x7e0] sm:$0xff]  ;;  %v4327_v18 = vld [vmem:[%s8235_s7 + $0x7d0] sm:$0xff] }
 0x4bd   :  { %5612 = vmatpush1.bf16.msra.mxu0 %v5611_v28  ;;  %5644 = vmatpush1.bf16.msra.mxu1 %v5643_v29  ;;  %v4302_v28 = vld [vmem:[%s8235_s7 + $0x708] sm:$0xff] }
 0x4be   :  { %5614 = vmatprep.subr.bf16.mxu0 %v5613_v10  ;;  %5646 = vmatprep.subr.bf16.mxu1 %v5645_v32  ;;  %v4306_v29 = vld [vmem:[%s8235_s7 + $0x728] sm:$0xff]  ;;  %v5663_v10 = vpack.c.bf16 %v4297_v21, %v4293_v5  ;;  %v5695_v32 = vpack.c.bf16 %v4299_v26, %v4295_v8  ;;  %v3475_v8 = vld [vmem:[%s8237_s9 + $0x18] sm:$0xff] }
 0x4bf   :  { %v5665_v34 = vpack.c.bf16 %v4306_v29, %v4302_v28  ;;  %v3473_v5 = vld [vmem:[%s8237_s9 + $0x8] sm:$0xff] }
 0x4c0   :  { %v3477_v28 = vld [vmem:[%s8237_s9 + $0x28] sm:$0xff] }
 0x4c1   :  { %5616 = vmatpush1.bf16.msra.mxu0 %v5615_v44  ;;  %5648 = vmatpush1.bf16.msra.mxu1 %v5647_v45  ;;  %v4310_v44 = vld [vmem:[%s8235_s7 + $0x748] sm:$0xff] }
 0x4c2   :  { %5650 = vmatprep.subr.bf16.mxu0 %v5649_v12  ;;  %5682 = vmatprep.subr.bf16.mxu1 %v5681_v56  ;;  %v4314_v45 = vld [vmem:[%s8235_s7 + $0x768] sm:$0xff]  ;;  %v5667_v12 = vpack.c.bf16 %v4305_v33, %v4301_v31  ;;  %v5699_v56 = vpack.c.bf16 %v4307_v40, %v4303_v37  ;;  %v3484_v40 = vld [vmem:[%s8237_s9 + $0x60] sm:$0xff] }
 0x4c3   :  { %v5669_v35 = vpack.c.bf16 %v4314_v45, %v4310_v44  ;;  %v3481_v31 = vld [vmem:[%s8237_s9 + $0x48] sm:$0xff] }
 0x4c4   :  { %3147 = vmatmul.mubr.f32.vlgmr.msra.gmra.mrb[60].mxu0 %v3080_v54  ;;  %3218 = vmatmul.mubr.f32.vlgmr.msra.gmra.mrb[90].mxu1 %v3080_v54  ;;  %v5671_v54 = vpack.c.bf16 %v4313_v46, %v4309_v42  ;;  %v3485_v44 = vld [vmem:[%s8237_s9 + $0x68] sm:$0xff]  ;;  %v3457_v42 = vsub.s32 3, %v6443_v58  ;;  %v4350_v58 = vld [vmem:[%s8237_s9 + $0x100] sm:$0xff] }
 0x4c5   :  { %5652 = vmatpush1.bf16.msra.mxu0 %v5651_v52  ;;  %5684 = vmatpush1.bf16.msra.mxu1 %v5683_v60  ;;  %v4318_v52 = vld [vmem:[%s8235_s7 + $0x788] sm:$0xff]  ;;  %v5732_v45 = vpack.c.bf16 %v3485_v44, %v3484_v40  ;;  %v4361_v40 = vld [vmem:[%s8237_s9 + $0x158] sm:$0xff] }
 0x4c6   :  { %5654 = vmatprep.subr.bf16.mxu0 %v5653_v0  ;;  %5686 = vmatprep.subr.bf16.mxu1 %v5685_v1  ;;  %v4322_v60 = vld [vmem:[%s8235_s7 + $0x7a8] sm:$0xff]  ;;  %v5703_v0 = vpack.c.bf16 %v4315_v61, %v4311_v48  ;;  %v4317_v1 = vld [vmem:[%s8235_s7 + $0x780] sm:$0xff] }
 0x4c7   :  { %3359 = vmatprep.mubr.f32.mxu0 %v5906_v6  ;;  %3430 = vmatprep.mubr.f32.mxu1 %v5906_v6  ;;  %v5673_v43 = vpack.c.bf16 %v4322_v60, %v4318_v52  ;;  %v5675_v27 = vpack.c.bf16 %v4321_v4, %v4317_v1  ;;  %v4334_v48 = vld [vmem:[%s8237_s9 + $0x80] sm:$0xff]  ;;  %v4335_v61 = vld [vmem:[%s8237_s9 + $0x88] sm:$0xff]  ;;  %v4336_v4 = vld [vmem:[%s8237_s9 + $0x90] sm:$0xff] }
 0x4c8   :  { %v5738_v1 = vpack.c.bf16 %v4335_v61, %v4334_v48  ;;  %v4368_v61 = vld [vmem:[%s8237_s9 + $0x190] sm:$0xff] }
 0x4c9   :  { %5656 = vmatpush1.bf16.msra.mxu0 %v5655_v11  ;;  %5688 = vmatpush1.bf16.msra.mxu1 %v5687_v13  ;;  %v4330_v11 = vld [vmem:[%s8235_s7 + $0x7e8] sm:$0xff]  ;;  %v4328_v13 = vld [vmem:[%s8235_s7 + $0x7d8] sm:$0xff] }
 0x4ca   :  { %5658 = vmatprep.subr.bf16.mxu0 %v5657_v38  ;;  %5690 = vmatprep.subr.bf16.mxu1 %v5689_v9  ;;  %v5707_v38 = vpack.c.bf16 %v4323_v63, %v4319_v57  ;;  %v4325_v9 = vld [vmem:[%s8235_s7 + $0x7c0] sm:$0xff]  ;;  %v5677_v55 = vpack.c.bf16 %v4330_v11, %v4326_v7  ;;  %v5709_v17 = vpack.c.bf16 %v4332_v14, %v4328_v13  ;;  %v4339_v63 = vld [vmem:[%s8237_s9 + $0xa8] sm:$0xff]  ;;  %v4340_v11 = vld [vmem:[%s8237_s9 + $0xb0] sm:$0xff] }
 0x4cb   :  { %v5679_v20 = vpack.c.bf16 %v4329_v51, %v4325_v9  ;;  %v4338_v57 = vld [vmem:[%s8237_s9 + $0xa0] sm:$0xff]  ;;  %v4341_v13 = vld [vmem:[%s8237_s9 + $0xb8] sm:$0xff] }
 0x4cc   :  { %v5744_v7 = vpack.c.bf16 %v4339_v63, %v4338_v57  ;;  %v5747_v14 = vpack.c.bf16 %v4341_v13, %v4340_v11  ;;  %v4377_v57 = vld [vmem:[%s8237_s9 + $0x1d8] sm:$0xff]  ;;  %v4379_v11 = vld [vmem:[%s8237_s9 + $0x1e8] sm:$0xff] }
 0x4cd   :  { %5660 = vmatpush1.bf16.msra.mxu0 %v5659_v22  ;;  %5692 = vmatpush1.bf16.msra.mxu1 %v5691_v24  ;;  %v5711_v22 = vpack.c.bf16 %v4331_v15, %v4327_v18  ;;  %v3472_v24 = vld [vmem:[%s8237_s9] sm:$0xff]  ;;  %v4347_v15 = vld [vmem:[%s8237_s9 + $0xe8] sm:$0xff] }
 0x4ce   :  { %5662 = vmatprep.subr.bf16.mxu0 %v5661_v25  ;;  %5694 = vmatprep.subr.bf16.mxu1 %v5693_v19  ;;  %v5714_v21 = vpack.c.bf16 %v3473_v5, %v3472_v24  ;;  %v3293_v25 = vrot.slane %v7412_v30, 6  ;;  %v3474_v19 = vld [vmem:[%s8237_s9 + $0x10] sm:$0xff]  ;;  %v3476_v30 = vld [vmem:[%s8237_s9 + $0x20] sm:$0xff]  ;;  %v4349_v5 = vld [vmem:[%s8237_s9 + $0xf8] sm:$0xff] }
 0x4cf   :  { %v5717_v26 = vpack.c.bf16 %v3475_v8, %v3474_v19  ;;  %v5720_v29 = vpack.c.bf16 %v3477_v28, %v3476_v30  ;;  %v4346_v18 = vld [vmem:[%s8237_s9 + $0xe0] sm:$0xff]  ;;  %v4348_v24 = vld [vmem:[%s8237_s9 + $0xf0] sm:$0xff]  ;;  %v4353_v30 = vld [vmem:[%s8237_s9 + $0x118] sm:$0xff] }
 0x4d1   :  { %5664 = vmatpush1.bf16.msra.mxu0 %v5663_v10  ;;  %5696 = vmatpush1.bf16.msra.mxu1 %v5695_v32  ;;  %v5723_v10 = vpack.c.bf16 %v3479_v16, %v3478_v23  ;;  %v3480_v32 = vld [vmem:[%s8237_s9 + $0x40] sm:$0xff]  ;;  %v4355_v23 = vld [vmem:[%s8237_s9 + $0x128] sm:$0xff] }
 0x4d2   :  { %5666 = vmatprep.subr.bf16.mxu0 %v5665_v34  ;;  %5698 = vmatprep.subr.bf16.mxu1 %v5697_v36  ;;  %v5726_v33 = vpack.c.bf16 %v3481_v31, %v3480_v32  ;;  %v3482_v34 = vld [vmem:[%s8237_s9 + $0x50] sm:$0xff]  ;;  %v3483_v36 = vld [vmem:[%s8237_s9 + $0x58] sm:$0xff] }
 0x4d3   :  { %v5729_v37 = vpack.c.bf16 %v3483_v36, %v3482_v34  ;;  %v4357_v32 = vld [vmem:[%s8237_s9 + $0x138] sm:$0xff]  ;;  %v4359_v34 = vld [vmem:[%s8237_s9 + $0x148] sm:$0xff] }
 0x4d5   :  { %5668 = vmatpush1.bf16.msra.mxu0 %v5667_v12  ;;  %5700 = vmatpush1.bf16.msra.mxu1 %v5699_v56  ;;  %v5735_v12 = vpack.c.bf16 %v3487_v53, %v3486_v49  ;;  %v3441_v56 = vld [vmem:[%s8236_s8] sm:$0xf]  ;;  %v4363_v49 = vld [vmem:[%s8237_s9 + $0x168] sm:$0xff] }
 0x4d6   :  { %5670 = vmatprep.subr.bf16.mxu0 %v5669_v35  ;;  %5702 = vmatprep.subr.bf16.mxu1 %v5701_v50  ;;  %v3446_v46 = vrot.slane %v3441_v56, %v1418_v39  ;;  %v3454_v35 = vrot.slane %v3441_v56, %v1426_v59  ;;  %v3458_v50 = vrot.slane %v3441_v56, %v3457_v42 }
 0x4d9   :  { %5672 = vmatpush1.bf16.msra.mxu0 %v5671_v54  ;;  %5704 = vmatpush1.bf16.msra.mxu1 %v5703_v0 }
 0x4da   :  { %5674 = vmatprep.subr.bf16.mxu0 %v5673_v43  ;;  %5706 = vmatprep.subr.bf16.mxu1 %v5705_v47  ;;  %v4337_v43 = vld [vmem:[%s8237_s9 + $0x98] sm:$0xff] }
 0x4db   :  { %v5741_v47 = vpack.c.bf16 %v4337_v43, %v4336_v4  ;;  %v4375_v4 = vld [vmem:[%s8237_s9 + $0x1c8] sm:$0xff] }
 0x4dd   :  { %5676 = vmatpush1.bf16.msra.mxu0 %v5675_v27  ;;  %5708 = vmatpush1.bf16.msra.mxu1 %v5707_v38  ;;  %v4342_v27 = vld [vmem:[%s8237_s9 + $0xc0] sm:$0xff]  ;;  %v4343_v38 = vld [vmem:[%s8237_s9 + $0xc8] sm:$0xff] }
 0x4de   :  { %5678 = vmatprep.subr.bf16.mxu0 %v5677_v55  ;;  %5710 = vmatprep.subr.bf16.mxu1 %v5709_v17  ;;  %v5750_v9 = vpack.c.bf16 %v4343_v38, %v4342_v27  ;;  %v4344_v55 = vld [vmem:[%s8237_s9 + $0xd0] sm:$0xff]  ;;  %v4345_v17 = vld [vmem:[%s8237_s9 + $0xd8] sm:$0xff] }
 0x4df   :  { %v5753_v51 = vpack.c.bf16 %v4345_v17, %v4344_v55  ;;  %v4381_v27 = vld [vmem:[%s8237_s9 + $0x1f8] sm:$0xff]  ;;  %v4333_v55 = vld [vmem:[%s8238_s10] ss:$0 sm:$0xff]  ;;  %s5908_s10 = smov [#allocation2]  }
 0x4e0   :  { %s3858_s30 = sshll.u32 %s5908_s10, 4  ;;  %s3859_s30 = int_to_ptr.vmem [resolvable:$true] %s3858_s30 }
 0x4e1   :  { %5680 = vmatpush1.bf16.msra.mxu0 %v5679_v20  ;;  %5712 = vmatpush1.bf16.msra.mxu1 %v5711_v22  ;;  %v5756_v20 = vpack.c.bf16 %v4347_v15, %v4346_v18  ;;  %v3450_v22 = vrot.slane %v3441_v56, %v1422_v41  ;;  %v4351_v41 = vld [vmem:[%s8237_s9 + $0x108] sm:$0xff]  ;;  %v4365_v56 = vld [vmem:[%s8237_s9 + $0x178] sm:$0xff]  ;;  %s5880_s2 = scalar_lea.vmem %s3859_s30, 32  ;;  %p5885_p1 = scmp.lt.s32.totalorder %s3859_s30, %s3859_s30 }
 0x4e2   :  { %5713 = vmatprep.subr.bf16.mxu0 %v5904_v3  ;;  %v5762_v19 = vpack.c.bf16 %v4351_v41, %v4350_v58  ;;  %p5881_p0 = scmp.ne.s32.totalorder %s3859_s30, %s5880_s2  ;;  %p5886_p2 = scmp.lt.s32.totalorder %s5880_s2, %s5880_s2 }
 0x4e4   :  { %3360 = vmatmul.mubr.f32.vlgmr.msra.gmra.mrb[60].mxu0 %v3293_v25  ;;  %3431 = vmatmul.mubr.f32.vlgmr.msra.gmra.mrb[90].mxu1 %v3293_v25  ;;  %p5887_p3 = por %p5886_p2, %p5885_p1 }
 0x4e5   :  { %5715 = vmatpush3.bf16.msra.mxu0 %v5714_v21  ;;  %5074 = vmatprep.mubr.msk.f32.mxu0 %vm5905_vm0, %v5906_v6  ;;  %v5759_v21 = vpack.c.bf16 %v4349_v5, %v4348_v24 }
 0x4e6   :  { %5716 = vmatprep.subr.bf16.mxu0 %v5904_v3  ;;  %p5888_p4 = pnand %p5887_p3, %p5881_p0 }
 0x4e9   :  { %5718 = vmatpush3.bf16.msra.mxu0 %v5717_v26  ;;  %v4352_v26 = vld [vmem:[%s8237_s9 + $0x110] sm:$0xff] }
 0x4ea   :  { %5719 = vmatprep.subr.bf16.mxu0 %v5904_v3  ;;  %v5765_v28 = vpack.c.bf16 %v4353_v30, %v4352_v26 }
 0x4ed   :  { %5721 = vmatpush3.bf16.msra.mxu0 %v5720_v29  ;;  %v4354_v29 = vld [vmem:[%s8237_s9 + $0x120] sm:$0xff] }
 0x4ee   :  { %5722 = vmatprep.subr.bf16.mxu0 %v5904_v3  ;;  %v5768_v16 = vpack.c.bf16 %v4355_v23, %v4354_v29 }
 0x4f1   :  { %5724 = vmatpush3.bf16.msra.mxu0 %v5723_v10  ;;  %v4356_v10 = vld [vmem:[%s8237_s9 + $0x130] sm:$0xff] }
 0x4f2   :  { %5725 = vmatprep.subr.bf16.mxu0 %v5904_v3  ;;  %v5771_v31 = vpack.c.bf16 %v4357_v32, %v4356_v10 }
 0x4f5   :  { %5727 = vmatpush3.bf16.msra.mxu0 %v5726_v33  ;;  %v4358_v33 = vld [vmem:[%s8237_s9 + $0x140] sm:$0xff] }
 0x4f6   :  { %5728 = vmatprep.subr.bf16.mxu0 %v5904_v3  ;;  %v5774_v36 = vpack.c.bf16 %v4359_v34, %v4358_v33 }
 0x4f9   :  { %5730 = vmatpush3.bf16.msra.mxu0 %v5729_v37  ;;  %v4360_v37 = vld [vmem:[%s8237_s9 + $0x150] sm:$0xff] }
 0x4fa   :  { %5731 = vmatprep.subr.bf16.mxu0 %v5904_v3  ;;  %v5777_v44 = vpack.c.bf16 %v4361_v40, %v4360_v37 }
 0x4fd   :  { %5733 = vmatpush3.bf16.msra.mxu0 %v5732_v45  ;;  %v4362_v45 = vld [vmem:[%s8237_s9 + $0x160] sm:$0xff] }
 0x4fe   :  { %5734 = vmatprep.subr.bf16.mxu0 %v5904_v3  ;;  %v5780_v53 = vpack.c.bf16 %v4363_v49, %v4362_v45 }
 0x501   :  { %5736 = vmatpush3.bf16.msra.mxu0 %v5735_v12  ;;  %v4364_v12 = vld [vmem:[%s8237_s9 + $0x170] sm:$0xff] }
 0x502   :  { %5737 = vmatprep.subr.bf16.mxu0 %v5904_v3  ;;  %v5783_v42 = vpack.c.bf16 %v4365_v56, %v4364_v12 }
 0x5b7   :  { %v3361_v52 = vpop.f32.mrb[60].mxu0  ;;  %v3432_v60 = vpop.f32.mrb[90].mxu1 }
 0x5b8   :  { %v3463_v2 = vadd.f32 %v3446_v46, %v3361_v52  ;;  %v8038_v62 = vadd.f32 %v3454_v35, %v3432_v60  ;;  %v3363_v54 = vpop.f32.mrb[61].mxu0  ;;  %v3434_v0 = vpop.f32.mrb[91].mxu1  ;;  %v4366_v46 = vld [vmem:[%s8237_s9 + $0x180] sm:$0xff]  ;;  %v4367_v35 = vld [vmem:[%s8237_s9 + $0x188] sm:$0xff]  ;;  %v4369_v52 = vld [vmem:[%s8237_s9 + $0x198] sm:$0xff] }
 0x5b9   :  { %v8040_v39 = vadd.f32 %v3458_v50, %v3434_v0  ;;  %v3464_v25 = vadd.f32 %v3450_v22, %v3363_v54  ;;  %v5786_v50 = vpack.c.bf16 %v4367_v35, %v4366_v46  ;;  %v5789_v60 = vpack.c.bf16 %v4369_v52, %v4368_v61  ;;  %v4372_v0 = vld [vmem:[%s8237_s9 + $0x1b0] sm:$0xff] }
 0x5ba   :  { %v3467_v59 = vmax.f32 %v3463_v2, 0.0  ;;  %v3469_v48 = vmax.f32 %v8038_v62, 0.0  ;;  %v4370_v2 = vld [vmem:[%s8237_s9 + $0x1a0] sm:$0xff]  ;;  %v4371_v62 = vld [vmem:[%s8237_s9 + $0x1a8] sm:$0xff] }
 0x5bb   :  { %v3468_v8 = vmax.f32 %v3464_v25, 0.0  ;;  %v5792_v54 = vpack.c.bf16 %v4371_v62, %v4370_v2 }
 0x5bc   :  { %5075 = vmatmul.mubr.f32.vlgmr.msra.gmra.mrb[62].mxu0 %v3467_v59  ;;  %v4374_v59 = vld [vmem:[%s8237_s9 + $0x1c0] sm:$0xff] }
 0x5bd   :  { %5739 = vmatpush3.bf16.msra.mxu0 %v5738_v1  ;;  %5109 = vmatprep.mubr.msk.f32.mxu0 %vm5905_vm0, %v5906_v6  ;;  %v5798_v43 = vpack.c.bf16 %v4375_v4, %v4374_v59 }
 0x5be   :  { %5740 = vmatprep.subr.bf16.mxu0 %v5904_v3 }
 0x5c1   :  { %5742 = vmatpush3.bf16.msra.mxu0 %v5741_v47  ;;  %v4376_v47 = vld [vmem:[%s8237_s9 + $0x1d0] sm:$0xff] }
 0x5c2   :  { %5743 = vmatprep.subr.bf16.mxu0 %v5904_v3  ;;  %v5801_v63 = vpack.c.bf16 %v4377_v57, %v4376_v47 }
 0x5c5   :  { %5745 = vmatpush3.bf16.msra.mxu0 %v5744_v7  ;;  %v4378_v7 = vld [vmem:[%s8237_s9 + $0x1e0] sm:$0xff] }
 0x5c6   :  { %5746 = vmatprep.subr.bf16.mxu0 %v5904_v3  ;;  %v5804_v13 = vpack.c.bf16 %v4379_v11, %v4378_v7 }
 0x5c9   :  { %5748 = vmatpush3.bf16.msra.mxu0 %v5747_v14  ;;  %v4380_v14 = vld [vmem:[%s8237_s9 + $0x1f0] sm:$0xff] }
 0x5ca   :  { %5749 = vmatprep.subr.bf16.mxu0 %v5904_v3  ;;  %v5807_v38 = vpack.c.bf16 %v4381_v27, %v4380_v14 }
 0x5cd   :  { %5751 = vmatpush3.bf16.msra.mxu0 %v5750_v9  ;;  %v3470_v9 = vmax.f32 %v8040_v39, 0.0 }
 0x5ce   :  { %5752 = vmatprep.subr.bf16.mxu0 %v5904_v3 }
 0x5d1   :  { %5754 = vmatpush3.bf16.msra.mxu0 %v5753_v51 }
 0x5d2   :  { %5755 = vmatprep.subr.bf16.mxu0 %v5904_v3 }
 0x5d5   :  { %5757 = vmatpush3.bf16.msra.mxu0 %v5756_v20  ;;  %v5907_v20 = vmov 5  }
 0x5d6   :  { %5758 = vmatprep.subr.bf16.mxu0 %v5904_v3  ;;  %5879 = vset.pattern.permute.xlu0 %v5907_v20 }
 0x5d9   :  { %5760 = vmatpush3.bf16.msra.mxu0 %v5759_v21 }
 0x5da   :  { %5761 = vmatprep.subr.bf16.mxu0 %v5904_v3 }
 0x5dc   :  { %5110 = vmatmul.mubr.f32.vlgmr.msra.gmra.mrb[62].mxu0 %v3468_v8 }
 0x5dd   :  { %5763 = vmatpush3.bf16.msra.mxu0 %v5762_v19  ;;  %5144 = vmatprep.mubr.msk.f32.mxu0 %vm5905_vm0, %v5906_v6 }
 0x5de   :  { %5764 = vmatprep.subr.bf16.mxu0 %v5904_v3 }
 0x5e1   :  { %5766 = vmatpush3.bf16.msra.mxu0 %v5765_v28 }
 0x5e2   :  { %5767 = vmatprep.subr.bf16.mxu0 %v5904_v3 }
 0x5e5   :  { %5769 = vmatpush3.bf16.msra.mxu0 %v5768_v16 }
 0x5e6   :  { %5770 = vmatprep.subr.bf16.mxu0 %v5904_v3 }
 0x5e9   :  { %5772 = vmatpush3.bf16.msra.mxu0 %v5771_v31 }
 0x5ea   :  { %5773 = vmatprep.subr.bf16.mxu0 %v5904_v3 }
 0x5ed   :  { %5775 = vmatpush3.bf16.msra.mxu0 %v5774_v36 }
 0x5ee   :  { %5776 = vmatprep.subr.bf16.mxu0 %v5904_v3 }
 0x5f1   :  { %5778 = vmatpush3.bf16.msra.mxu0 %v5777_v44 }
 0x5f2   :  { %5779 = vmatprep.subr.bf16.mxu0 %v5904_v3 }
 0x5f5   :  { %5781 = vmatpush3.bf16.msra.mxu0 %v5780_v53 }
 0x5f6   :  { %5782 = vmatprep.subr.bf16.mxu0 %v5904_v3 }
 0x5f9   :  { %5784 = vmatpush3.bf16.msra.mxu0 %v5783_v42 }
 0x5fa   :  { %5785 = vmatprep.subr.bf16.mxu0 %v5904_v3 }
 0x5fc   :  { %5145 = vmatmul.mubr.f32.vlgmr.msra.gmra.mrb[62].mxu0 %v3469_v48 }
 0x5fd   :  { %5787 = vmatpush3.bf16.msra.mxu0 %v5786_v50  ;;  %5179 = vmatprep.mubr.msk.f32.mxu0 %vm5905_vm0, %v5906_v6  ;;  %v4373_v6 = vld [vmem:[%s8237_s9 + $0x1b8] sm:$0xff] }
 0x5fe   :  { %5788 = vmatprep.subr.bf16.mxu0 %v5904_v3  ;;  %v5795_v1 = vpack.c.bf16 %v4373_v6, %v4372_v0 }
 0x601   :  { %5790 = vmatpush3.bf16.msra.mxu0 %v5789_v60 }
 0x602   :  { %5791 = vmatprep.subr.bf16.mxu0 %v5904_v3 }
 0x605   :  { %5793 = vmatpush3.bf16.msra.mxu0 %v5792_v54 }
 0x606   :  { %5794 = vmatprep.subr.bf16.mxu0 %v5904_v3 }
 0x609   :  { %5796 = vmatpush3.bf16.msra.mxu0 %v5795_v1 }
 0x60a   :  { %5797 = vmatprep.subr.bf16.mxu0 %v5904_v3 }
 0x60d   :  { %5799 = vmatpush3.bf16.msra.mxu0 %v5798_v43 }
 0x60e   :  { %5800 = vmatprep.subr.bf16.mxu0 %v5904_v3 }
 0x611   :  { %5802 = vmatpush3.bf16.msra.mxu0 %v5801_v63 }
 0x612   :  { %5803 = vmatprep.subr.bf16.mxu0 %v5904_v3 }
 0x615   :  { %5805 = vmatpush3.bf16.msra.mxu0 %v5804_v13 }
 0x616   :  { %5806 = vmatprep.subr.bf16.mxu0 %v5904_v3 }
 0x619   :  { %5808 = vmatpush3.bf16.msra.mxu0 %v5807_v38 }
 0x61c   :  { %5180 = vmatmul.mubr.f32.vlgmr.msra.gmra.mrb[62].mxu0 %v3470_v9 }
 0x6ef   :  { %v3824_v17 = vpop.f32.mrb[62].mxu0 }
 0x6f0   :  { %v5813_v51 = vadd.f32 %v4333_v55, %v3824_v17  ;;  %v5181_v18 = vpop.f32.mrb[63].mxu0 }
 0x6f2   :  { %v3830_v15 = vsel %vm3829_vm5, %v5813_v51, 0.0 }
 0x6f3   :  { %3831 = vadd.xlane.f32.xlu0 %v3830_v15 }
 0x780   :  { %v3832_v22 = vpop.xlane.xlu0 %3831 }
 0x781   :  { %v3833_v24 = vrot.slane %v3832_v22, 4 }
 0x783   :  { %v3834_v5 = vadd.f32 %v3833_v24, %v3832_v22 }
 0x785   :  { %v3835_v3 = vrot.slane %v3834_v5, 2 }
 0x787   :  { %v3836_v21 = vadd.f32 %v3835_v3, %v3834_v5 }
 0x789   :  { %v3837_v25 = vrot.slane %v3836_v21, 1 }
 0x78b   :  { %v3838_v39 = vadd.f32 %v3837_v25, %v3836_v21 }
 0x78d   :  { %5872 = vpush %v3838_v39 }
 0x7be   :  { %s5873_s9 = spop %5872 }
 0x7bf   :  { %s3842_s29 = smul.f32 0.1, %s5873_s9 }
 0x7c1   :  { %v3843_v58 = vstv %s3842_s29 }
 0x7c2   :  { %v3844_v41 = vsub.f32 %v5813_v51, %v3843_v58 }
 0x7c4   :  { %3847 = vperm.xlu0 %5879, %v3844_v41  }
 0x843   :  { %v3848_v19 = vpop.permute.xlu0 %3847 }
 0x844   :  { %v3850_v8 = vadd.f32 %v5813_v51, %v3848_v19 }
 0x846   :  { %3851 = vst [vmem:[#allocation2] sm:$0x3] %v3850_v8 }
 0x847   :  { %5891 = shalt.err (!%p5888_p4)
}
 0x848   :  { %s5892_s3 = scalar_lea.hbm %s8239_s11, 32 }
 0x849   :  { %p5893_p5 = scmp.ne.s32.totalorder %s8239_s11, %s5892_s3  ;;  %p5896_p6 = scmp.lt.u32.totalorder %s5892_s3, %s8239_s11 }
 0x84b   :  { %p5898_p7 = pnand %p5896_p6, %p5893_p5 }
 0x84d   :  { %5901 = shalt.err (!%p5898_p7)
}
 0x84e   :  { %3861 = dma.vmem_to_hbm [thread:$0]  %s3859_s30, 32, %s8239_s11, [#allocation3]  }
 0x84f   :  { %5902 = dma.done.wait [#allocation3], 32  }
 0x850   :  { %5903 = vsyncadd [#allocation3], 4294967264 }
 0x851   :  { %3865 = vsyncpa [#allocation3], 1 }

</bundles_post_ra>
